<compile_context>
chip_gen: v6e
topology: v6e:2x2x1
jax: 0.10.0
libtpu: 0.0.40
codegen_flags: <defaults>
</compile_context>

<pallas_src>
import functools

import jax
import jax.numpy as jnp
import numpy as np
from jax import lax
from jax.experimental import pallas as pl
from jax.experimental.pallas import tpu as pltpu


def _sandglass_kernel(x_ref, w1_ref, b1_ref, wd_ref, bd_ref, w3t_ref, b3_ref,
                      o_ref, *, stride, use_res, rows_out, H, W):
    # x_ref   : (1, H+2, W+2, Cin)  zero-padded input image (resident across strips)
    # w1_ref  : (Cin, hidden)       folded 1x1 expand weight
    # b1_ref  : (1, hidden)
    # wd_ref  : (3, 3, hidden)      folded depthwise weight
    # bd_ref  : (1, hidden)
    # w3t_ref : (oup, hidden)       folded 1x1 project weight (pre-transposed)
    # b3_ref  : (oup,) in SMEM      folded project bias (scalars)
    # o_ref   : (1, 1, oup, rows_out * Wout)  lane-dense channel-major output slab
    Cin = x_ref.shape[3]
    hidden = w1_ref.shape[1]
    oup = w3t_ref.shape[0]
    Wp = W + 2
    win_rows = (rows_out - 1) * stride + 3          # input rows (incl. halo) per strip
    w_out = W // stride

    s = pl.program_id(1)
    row0 = pl.multiple_of(s * (rows_out * stride), rows_out * stride)

    # ---- input window for this H-strip (1-row halo each side, already padded) ----
    xw = x_ref[0, pl.ds(row0, win_rows), :, :]       # (win_rows, Wp, Cin) f32

    # ---- 1x1 expand conv (+ folded BN) + ReLU6 as VPU FMA over Cin ----
    # K = Cin is tiny; outer-product accumulation avoids MXU push/pop and the
    # reshape relayouts a matmul would need.  (bf16 MXU feed is moot here.)
    w1 = w1_ref[...]                                 # (Cin, hidden), hoisted
    h = jnp.zeros((win_rows, Wp, hidden), jnp.float32)
    for c in range(Cin):
        h = h + xw[:, :, c:c + 1] * w1[c]
    h = jnp.clip(h + b1_ref[0], 0.0, 6.0)

    # Zero the positions that correspond to the depthwise conv's zero padding
    # (the wrapper zero-pads x, but expand(0)+bias+relu6 is generally nonzero).
    prow = row0 + lax.broadcasted_iota(jnp.int32, (win_rows, Wp, 1), 0)
    pcol = lax.broadcasted_iota(jnp.int32, (win_rows, Wp, 1), 1)
    interior = (prow > 0) & (prow < H + 1) & (pcol > 0) & (pcol < W + 1)
    h = jnp.where(interior, h, 0.0)

    # ---- 3x3 depthwise conv (+ folded BN) + ReLU6, taps kept in registers ----
    wd = wd_ref[...]                                 # (3, 3, hidden), hoisted once
    bd = bd_ref[0]                                   # (hidden,)
    acc = jnp.zeros((rows_out, W, hidden), jnp.float32)
    for di in range(3):
        # H taps: leading-axis (cheap) slice; stride handled here for H.
        rows = h[di:di + (rows_out - 1) * stride + 1:stride]   # (rows_out, Wp, hidden)
        for dj in range(3):
            acc = acc + rows[:, dj:dj + W, :] * wd[di, dj]
    acc = jnp.clip(acc + bd, 0.0, 6.0)
    if stride == 2:
        # W decimation once, after full-width accumulation (not 9 strided gathers).
        acc = acc.reshape(rows_out, W // 2, 2, hidden)[:, :, 0, :]

    # ---- 1x1 project conv (+ folded BN), per output channel via lane reduction;
    #      output assembled channel-major so the final store is lane-dense ----
    w3t = w3t_ref[...]                               # (oup, hidden), hoisted
    if use_res:
        x_res = xw[1:1 + rows_out, 1:1 + W, :]       # (rows_out, W, Cin)
    planes = []
    for o in range(oup):
        yo = jnp.sum(acc * w3t[o], axis=-1) + b3_ref[o]        # (rows_out, w_out)
        if use_res:
            yo = yo + x_res[:, :, o]
        planes.append(yo)
    y = jnp.stack(planes, axis=0).reshape(oup, rows_out * w_out)
    o_ref[0, 0] = y.astype(o_ref.dtype)


def _pick_rows_per_strip(h_out, w_out):
    """Largest strip height giving >=2 strips with a 128-multiple flat lane dim."""
    for r in range(h_out // 2, 0, -1):
        if h_out % r == 0 and (r * w_out) % 128 == 0:
            return r
    return h_out  # single-strip fallback (output block then equals full extent)


def init_params(key, inp, oup, expand_ratio, eps=1e-5):
    """Deterministic synthetic params; BN (gamma,beta,mean,var) folded into convs."""
    hidden = int(round(inp * expand_ratio))
    ks = jax.random.split(key, 6)
    # PyTorch-shaped conv weights
    w1 = jax.random.normal(ks[0], (hidden, inp, 1, 1), jnp.float32) * 0.3
    wd = jax.random.normal(ks[1], (hidden, 1, 3, 3), jnp.float32) * 0.3
    w3 = jax.random.normal(ks[2], (oup, hidden, 1, 1), jnp.float32) * 0.3

    def bn(k, c):
        k1, k2, k3, k4 = jax.random.split(k, 4)
        gamma = 1.0 + 0.1 * jax.random.normal(k1, (c,), jnp.float32)
        beta = 0.1 * jax.random.normal(k2, (c,), jnp.float32)
        mean = 0.1 * jax.random.normal(k3, (c,), jnp.float32)
        var = 0.5 + jnp.abs(jax.random.normal(k4, (c,), jnp.float32))
        return gamma, beta, mean, var

    g1, be1, m1, v1 = bn(ks[3], hidden)
    g2, be2, m2, v2 = bn(ks[4], hidden)
    g3, be3, m3, v3 = bn(ks[5], oup)
    s1 = g1 / jnp.sqrt(v1 + eps)
    s2 = g2 / jnp.sqrt(v2 + eps)
    s3 = g3 / jnp.sqrt(v3 + eps)

    # 1x1 expand: (hidden, inp, 1, 1) -> (inp, hidden)
    w1_f = jnp.transpose(w1[:, :, 0, 0], (1, 0)) * s1[None, :]
    b1_f = (be1 - m1 * s1).reshape(1, hidden)
    # depthwise: (hidden, 1, 3, 3) -> (3, 3, hidden)
    wd_f = jnp.transpose(wd[:, 0], (1, 2, 0)) * s2[None, None, :]
    bd_f = (be2 - m2 * s2).reshape(1, hidden)
    # 1x1 project: (oup, hidden, 1, 1) -> (oup, hidden)   (row o = output channel o)
    w3_f = w3[:, :, 0, 0] * s3[:, None]
    b3_f = (be3 - m3 * s3)                              # (oup,) scalars -> SMEM
    return dict(w1_f=w1_f, b1_f=b1_f, wd_f=wd_f, bd_f=bd_f,
                w3_f=w3_f, b3_f=b3_f, hidden=hidden)


def sandglass_forward(x_nchw, p, *, stride, inp, oup):
    assert stride in (1, 2)
    use_res = (stride == 1 and inp == oup)
    x = jnp.transpose(x_nchw, (0, 2, 3, 1)).astype(jnp.float32)   # NHWC
    N, H, W, Cin = x.shape
    hidden = p["hidden"]
    Hout = (H - 1) // stride + 1
    Wout = (W - 1) // stride + 1
    if stride == 2:
        assert W % 2 == 0, "stride-2 path assumes even W"

    rows_out = _pick_rows_per_strip(Hout, Wout)
    n_strips = Hout // rows_out
    flat = rows_out * Wout

    # zero-pad spatial dims by 1 (kernel masks out the expand-conv bias there)
    x_pad = jnp.pad(x, ((0, 0), (1, 1), (1, 1), (0, 0)))

    kernel = functools.partial(_sandglass_kernel, stride=stride, use_res=use_res,
                               rows_out=rows_out, H=H, W=W)
    out = pl.pallas_call(
        kernel,
        out_shape=jax.ShapeDtypeStruct((N, n_strips, oup, flat), jnp.float32),
        grid_spec=pltpu.PrefetchScalarGridSpec(
            num_scalar_prefetch=0,
            grid=(N, n_strips),
            in_specs=[
                # full padded image, block index depends only on b -> stays
                # resident in VMEM across the strips of one image
                pl.BlockSpec((1, H + 2, W + 2, Cin), lambda b, s: (b, 0, 0, 0)),
                pl.BlockSpec((Cin, hidden), lambda b, s: (0, 0)),
                pl.BlockSpec((1, hidden), lambda b, s: (0, 0)),
                pl.BlockSpec((3, 3, hidden), lambda b, s: (0, 0, 0)),
                pl.BlockSpec((1, hidden), lambda b, s: (0, 0)),
                pl.BlockSpec((oup, hidden), lambda b, s: (0, 0)),
                pl.BlockSpec(memory_space=pltpu.MemorySpace.SMEM),   # b3 scalars
            ],
            out_specs=pl.BlockSpec((1, 1, oup, flat), lambda b, s: (b, s, 0, 0)),
        ),
        compiler_params=pltpu.CompilerParams(
            dimension_semantics=("parallel", "parallel"),
            vmem_limit_bytes=32 * 1024 * 1024,
        ),
    )(x_pad, p["w1_f"], p["b1_f"], p["wd_f"], p["bd_f"], p["w3_f"], p["b3_f"])

    # (N, n_strips, oup, rows*Wout) -> NCHW
    out = out.reshape(N, n_strips, oup, rows_out, Wout)
    out = jnp.transpose(out, (0, 2, 1, 3, 4)).reshape(N, oup, Hout, Wout)
    return out


def ref_forward(x_nchw, p, stride, use_res):
    """Pure-JAX reference (same folded-BN inference semantics)."""
    x = jnp.transpose(x_nchw, (0, 2, 3, 1)).astype(jnp.float32)
    hidden = p["hidden"]
    h = jnp.einsum("nhwc,ck->nhwk", x, p["w1_f"],
                   precision=lax.Precision.HIGHEST) + p["b1_f"].reshape(1, 1, 1, -1)
    h = jnp.clip(h, 0.0, 6.0)
    rhs = p["wd_f"].reshape(3, 3, 1, hidden)
    h = lax.conv_general_dilated(
        h, rhs, window_strides=(stride, stride), padding=((1, 1), (1, 1)),
        dimension_numbers=("NHWC", "HWIO", "NHWC"),
        feature_group_count=hidden, precision=lax.Precision.HIGHEST)
    h = jnp.clip(h + p["bd_f"].reshape(1, 1, 1, -1), 0.0, 6.0)
    y = jnp.einsum("nhwk,ok->nhwo", h, p["w3_f"],
                   precision=lax.Precision.HIGHEST) + p["b3_f"].reshape(1, 1, 1, -1)
    if use_res:
        y = y + x
    return jnp.transpose(y, (0, 3, 1, 2))


if __name__ == "__main__":
    key = jax.random.PRNGKey(0)
    kx, kp = jax.random.split(key)

    N, inp, H, W = 2, 4, 16, 16
    oup, stride, expand_ratio = 4, 1, 6          # stride=1, inp==oup -> residual path

    x = jax.random.normal(kx, (N, inp, H, W), jnp.float32)   # NCHW like PyTorch
    params = init_params(kp, inp, oup, expand_ratio)

    out = sandglass_forward(x, params, stride=stride, inp=inp, oup=oup)
    out = jax.block_until_ready(out)

    ref = ref_forward(x, params, stride, use_res=(stride == 1 and inp == oup))
    np.testing.assert_allclose(np.asarray(out), np.asarray(ref), rtol=2e-2, atol=2e-2)

    # TODO(synk): training-mode BatchNorm (batch statistics + running-stat update)
    # is not implemented; BN is folded with fixed (inference) statistics.
    print("KERNEL_OK")
</pallas_src>

<mosaic_0001>
module attributes {stable_mosaic.version = 11 : i64} {
  func.func @_sandglass_kernel(%arg0: i32, %arg1: i32, %arg2: memref<1x18x18x4xf32, #tpu.memory_space<vmem>>, %arg3: memref<4x24xf32, #tpu.memory_space<vmem>>, %arg4: memref<1x24xf32, #tpu.memory_space<vmem>>, %arg5: memref<3x3x24xf32, #tpu.memory_space<vmem>>, %arg6: memref<1x24xf32, #tpu.memory_space<vmem>>, %arg7: memref<4x24xf32, #tpu.memory_space<vmem>>, %arg8: memref<4xf32, #tpu.memory_space<smem>>, %arg9: memref<1x1x4x128xf32, #tpu.memory_space<vmem>>) attributes {dimension_semantics = [#tpu.dimension_semantics<parallel>, #tpu.dimension_semantics<parallel>], iteration_bounds = array<i64: 2, 2>, scalar_prefetch = 0 : i64, scratch_operands = 0 : i64, tpu.core_type = #tpu.core_type<tc>, window_params = [{transform_indices = @transform_0, window_bounds = array<i64: 1, 18, 18, 4>}, {pipeline_mode = #tpu.pipeline_mode<synchronous>, transform_indices = @transform_1, window_bounds = array<i64: 4, 24>}, {pipeline_mode = #tpu.pipeline_mode<synchronous>, transform_indices = @transform_2, window_bounds = array<i64: 1, 24>}, {pipeline_mode = #tpu.pipeline_mode<synchronous>, transform_indices = @transform_3, window_bounds = array<i64: 3, 3, 24>}, {pipeline_mode = #tpu.pipeline_mode<synchronous>, transform_indices = @transform_4, window_bounds = array<i64: 1, 24>}, {pipeline_mode = #tpu.pipeline_mode<synchronous>, transform_indices = @transform_5, window_bounds = array<i64: 4, 24>}, {transform_indices = @transform_6, window_bounds = array<i64: 4>}, {transform_indices = @transform_7, window_bounds = array<i64: 1, 1, 4, 128>}]} {
    %c8_i32 = arith.constant 8 : i32
    %0 = arith.muli %arg1, %c8_i32 : i32
    %1 = tpu.assume_multiple %0, 8 : i32
    %c0 = arith.constant 0 : index
    %2 = arith.index_cast %1 : i32 to index
    %c0_0 = arith.constant 0 : index
    %c0_1 = arith.constant 0 : index
    %3 = vector.load %arg2[%c0, %2, %c0_0, %c0_1] : memref<1x18x18x4xf32, #tpu.memory_space<vmem>>, vector<1x10x18x4xf32>
    %4 = vector.shape_cast %3 : vector<1x10x18x4xf32> to vector<10x18x4xf32>
    %c0_2 = arith.constant 0 : index
    %c0_3 = arith.constant 0 : index
    %5 = vector.load %arg3[%c0_2, %c0_3] : memref<4x24xf32, #tpu.memory_space<vmem>>, vector<4x24xf32>
    %cst = arith.constant 0.000000e+00 : f32
    %6 = vector.broadcast %cst : f32 to vector<10x18x24xf32>
    %7 = vector.extract_strided_slice %4 {offsets = [0, 0, 0], sizes = [10, 18, 1], strides = [1, 1, 1]} : vector<10x18x4xf32> to vector<10x18x1xf32>
    %8 = vector.extract_strided_slice %5 {offsets = [0, 0], sizes = [1, 24], strides = [1, 1]} : vector<4x24xf32> to vector<1x24xf32>
    %9 = vector.shape_cast %8 : vector<1x24xf32> to vector<24xf32>
    %10 = vector.shape_cast %9 : vector<24xf32> to vector<1x1x24xf32>
    %11 = vector.broadcast %7 : vector<10x18x1xf32> to vector<10x18x24xf32>
    %12 = vector.broadcast %10 : vector<1x1x24xf32> to vector<10x18x24xf32>
    %13 = arith.mulf %11, %12 : vector<10x18x24xf32>
    %14 = arith.addf %6, %13 : vector<10x18x24xf32>
    %15 = vector.extract_strided_slice %4 {offsets = [0, 0, 1], sizes = [10, 18, 1], strides = [1, 1, 1]} : vector<10x18x4xf32> to vector<10x18x1xf32>
    %16 = vector.extract_strided_slice %5 {offsets = [1, 0], sizes = [1, 24], strides = [1, 1]} : vector<4x24xf32> to vector<1x24xf32>
    %17 = vector.shape_cast %16 : vector<1x24xf32> to vector<24xf32>
    %18 = vector.shape_cast %17 : vector<24xf32> to vector<1x1x24xf32>
    %19 = vector.broadcast %15 : vector<10x18x1xf32> to vector<10x18x24xf32>
    %20 = vector.broadcast %18 : vector<1x1x24xf32> to vector<10x18x24xf32>
    %21 = arith.mulf %19, %20 : vector<10x18x24xf32>
    %22 = arith.addf %14, %21 : vector<10x18x24xf32>
    %23 = vector.extract_strided_slice %4 {offsets = [0, 0, 2], sizes = [10, 18, 1], strides = [1, 1, 1]} : vector<10x18x4xf32> to vector<10x18x1xf32>
    %24 = vector.extract_strided_slice %5 {offsets = [2, 0], sizes = [1, 24], strides = [1, 1]} : vector<4x24xf32> to vector<1x24xf32>
    %25 = vector.shape_cast %24 : vector<1x24xf32> to vector<24xf32>
    %26 = vector.shape_cast %25 : vector<24xf32> to vector<1x1x24xf32>
    %27 = vector.broadcast %23 : vector<10x18x1xf32> to vector<10x18x24xf32>
    %28 = vector.broadcast %26 : vector<1x1x24xf32> to vector<10x18x24xf32>
    %29 = arith.mulf %27, %28 : vector<10x18x24xf32>
    %30 = arith.addf %22, %29 : vector<10x18x24xf32>
    %31 = vector.extract_strided_slice %4 {offsets = [0, 0, 3], sizes = [10, 18, 1], strides = [1, 1, 1]} : vector<10x18x4xf32> to vector<10x18x1xf32>
    %32 = vector.extract_strided_slice %5 {offsets = [3, 0], sizes = [1, 24], strides = [1, 1]} : vector<4x24xf32> to vector<1x24xf32>
    %33 = vector.shape_cast %32 : vector<1x24xf32> to vector<24xf32>
    %34 = vector.shape_cast %33 : vector<24xf32> to vector<1x1x24xf32>
    %35 = vector.broadcast %31 : vector<10x18x1xf32> to vector<10x18x24xf32>
    %36 = vector.broadcast %34 : vector<1x1x24xf32> to vector<10x18x24xf32>
    %37 = arith.mulf %35, %36 : vector<10x18x24xf32>
    %38 = arith.addf %30, %37 : vector<10x18x24xf32>
    %c0_4 = arith.constant 0 : index
    %c0_5 = arith.constant 0 : index
    %39 = vector.load %arg4[%c0_4, %c0_5] : memref<1x24xf32, #tpu.memory_space<vmem>>, vector<1x24xf32>
    %40 = vector.shape_cast %39 : vector<1x24xf32> to vector<24xf32>
    %41 = vector.shape_cast %40 : vector<24xf32> to vector<1x1x24xf32>
    %42 = vector.broadcast %41 : vector<1x1x24xf32> to vector<10x18x24xf32>
    %43 = arith.addf %38, %42 : vector<10x18x24xf32>
    %cst_6 = arith.constant 0.000000e+00 : f32
    %cst_7 = arith.constant 6.000000e+00 : f32
    %44 = vector.broadcast %cst_6 : f32 to vector<10x18x24xf32>
    %45 = arith.maximumf %44, %43 : vector<10x18x24xf32>
    %46 = vector.broadcast %cst_7 : f32 to vector<10x18x24xf32>
    %47 = arith.minimumf %46, %45 : vector<10x18x24xf32>
    %48 = tpu.iota {dimensions = array<i32: 0>} : vector<10x18x1xi32>
    %49 = vector.broadcast %1 : i32 to vector<10x18x1xi32>
    %50 = arith.addi %49, %48 : vector<10x18x1xi32>
    %51 = tpu.iota {dimensions = array<i32: 1>} : vector<10x18x1xi32>
    %c0_i32 = arith.constant 0 : i32
    %52 = vector.broadcast %c0_i32 : i32 to vector<10x18x1xi32>
    %53 = arith.cmpi sgt, %50, %52 : vector<10x18x1xi32>
    %c17_i32 = arith.constant 17 : i32
    %54 = vector.broadcast %c17_i32 : i32 to vector<10x18x1xi32>
    %55 = arith.cmpi slt, %50, %54 : vector<10x18x1xi32>
    %56 = arith.andi %53, %55 : vector<10x18x1xi1>
    %c0_i32_8 = arith.constant 0 : i32
    %57 = vector.broadcast %c0_i32_8 : i32 to vector<10x18x1xi32>
    %58 = arith.cmpi sgt, %51, %57 : vector<10x18x1xi32>
    %59 = arith.andi %56, %58 : vector<10x18x1xi1>
    %c17_i32_9 = arith.constant 17 : i32
    %60 = vector.broadcast %c17_i32_9 : i32 to vector<10x18x1xi32>
    %61 = arith.cmpi slt, %51, %60 : vector<10x18x1xi32>
    %62 = arith.andi %59, %61 : vector<10x18x1xi1>
    %cst_10 = arith.constant 0.000000e+00 : f32
    %63 = vector.shape_cast %62 : vector<10x18x1xi1> to vector<10x18x1xi1>
    %64 = vector.broadcast %63 : vector<10x18x1xi1> to vector<10x18x24xi1>
    %65 = vector.broadcast %cst_10 : f32 to vector<10x18x24xf32>
    %66 = arith.select %64, %47, %65 : vector<10x18x24xi1>, vector<10x18x24xf32>
    %c0_11 = arith.constant 0 : index
    %c0_12 = arith.constant 0 : index
    %c0_13 = arith.constant 0 : index
    %67 = vector.load %arg5[%c0_11, %c0_12, %c0_13] : memref<3x3x24xf32, #tpu.memory_space<vmem>>, vector<3x3x24xf32>
    %c0_14 = arith.constant 0 : index
    %c0_15 = arith.constant 0 : index
    %68 = vector.load %arg6[%c0_14, %c0_15] : memref<1x24xf32, #tpu.memory_space<vmem>>, vector<1x24xf32>
    %69 = vector.shape_cast %68 : vector<1x24xf32> to vector<24xf32>
    %cst_16 = arith.constant 0.000000e+00 : f32
    %70 = vector.broadcast %cst_16 : f32 to vector<8x16x24xf32>
    %71 = vector.extract_strided_slice %66 {offsets = [0, 0, 0], sizes = [8, 18, 24], strides = [1, 1, 1]} : vector<10x18x24xf32> to vector<8x18x24xf32>
    %72 = vector.extract_strided_slice %71 {offsets = [0, 0, 0], sizes = [8, 16, 24], strides = [1, 1, 1]} : vector<8x18x24xf32> to vector<8x16x24xf32>
    %73 = vector.extract_strided_slice %67 {offsets = [0, 0, 0], sizes = [1, 1, 24], strides = [1, 1, 1]} : vector<3x3x24xf32> to vector<1x1x24xf32>
    %74 = vector.shape_cast %73 : vector<1x1x24xf32> to vector<24xf32>
    %75 = vector.shape_cast %74 : vector<24xf32> to vector<1x1x24xf32>
    %76 = vector.broadcast %75 : vector<1x1x24xf32> to vector<8x16x24xf32>
    %77 = arith.mulf %72, %76 : vector<8x16x24xf32>
    %78 = arith.addf %70, %77 : vector<8x16x24xf32>
    %79 = vector.extract_strided_slice %71 {offsets = [0, 1, 0], sizes = [8, 16, 24], strides = [1, 1, 1]} : vector<8x18x24xf32> to vector<8x16x24xf32>
    %80 = vector.extract_strided_slice %67 {offsets = [0, 1, 0], sizes = [1, 1, 24], strides = [1, 1, 1]} : vector<3x3x24xf32> to vector<1x1x24xf32>
    %81 = vector.shape_cast %80 : vector<1x1x24xf32> to vector<24xf32>
    %82 = vector.shape_cast %81 : vector<24xf32> to vector<1x1x24xf32>
    %83 = vector.broadcast %82 : vector<1x1x24xf32> to vector<8x16x24xf32>
    %84 = arith.mulf %79, %83 : vector<8x16x24xf32>
    %85 = arith.addf %78, %84 : vector<8x16x24xf32>
    %86 = vector.extract_strided_slice %71 {offsets = [0, 2, 0], sizes = [8, 16, 24], strides = [1, 1, 1]} : vector<8x18x24xf32> to vector<8x16x24xf32>
    %87 = vector.extract_strided_slice %67 {offsets = [0, 2, 0], sizes = [1, 1, 24], strides = [1, 1, 1]} : vector<3x3x24xf32> to vector<1x1x24xf32>
    %88 = vector.shape_cast %87 : vector<1x1x24xf32> to vector<24xf32>
    %89 = vector.shape_cast %88 : vector<24xf32> to vector<1x1x24xf32>
    %90 = vector.broadcast %89 : vector<1x1x24xf32> to vector<8x16x24xf32>
    %91 = arith.mulf %86, %90 : vector<8x16x24xf32>
    %92 = arith.addf %85, %91 : vector<8x16x24xf32>
    %93 = vector.extract_strided_slice %66 {offsets = [1, 0, 0], sizes = [8, 18, 24], strides = [1, 1, 1]} : vector<10x18x24xf32> to vector<8x18x24xf32>
    %94 = vector.extract_strided_slice %93 {offsets = [0, 0, 0], sizes = [8, 16, 24], strides = [1, 1, 1]} : vector<8x18x24xf32> to vector<8x16x24xf32>
    %95 = vector.extract_strided_slice %67 {offsets = [1, 0, 0], sizes = [1, 1, 24], strides = [1, 1, 1]} : vector<3x3x24xf32> to vector<1x1x24xf32>
    %96 = vector.shape_cast %95 : vector<1x1x24xf32> to vector<24xf32>
    %97 = vector.shape_cast %96 : vector<24xf32> to vector<1x1x24xf32>
    %98 = vector.broadcast %97 : vector<1x1x24xf32> to vector<8x16x24xf32>
    %99 = arith.mulf %94, %98 : vector<8x16x24xf32>
    %100 = arith.addf %92, %99 : vector<8x16x24xf32>
    %101 = vector.extract_strided_slice %93 {offsets = [0, 1, 0], sizes = [8, 16, 24], strides = [1, 1, 1]} : vector<8x18x24xf32> to vector<8x16x24xf32>
    %102 = vector.extract_strided_slice %67 {offsets = [1, 1, 0], sizes = [1, 1, 24], strides = [1, 1, 1]} : vector<3x3x24xf32> to vector<1x1x24xf32>
    %103 = vector.shape_cast %102 : vector<1x1x24xf32> to vector<24xf32>
    %104 = vector.shape_cast %103 : vector<24xf32> to vector<1x1x24xf32>
    %105 = vector.broadcast %104 : vector<1x1x24xf32> to vector<8x16x24xf32>
    %106 = arith.mulf %101, %105 : vector<8x16x24xf32>
    %107 = arith.addf %100, %106 : vector<8x16x24xf32>
    %108 = vector.extract_strided_slice %93 {offsets = [0, 2, 0], sizes = [8, 16, 24], strides = [1, 1, 1]} : vector<8x18x24xf32> to vector<8x16x24xf32>
    %109 = vector.extract_strided_slice %67 {offsets = [1, 2, 0], sizes = [1, 1, 24], strides = [1, 1, 1]} : vector<3x3x24xf32> to vector<1x1x24xf32>
    %110 = vector.shape_cast %109 : vector<1x1x24xf32> to vector<24xf32>
    %111 = vector.shape_cast %110 : vector<24xf32> to vector<1x1x24xf32>
    %112 = vector.broadcast %111 : vector<1x1x24xf32> to vector<8x16x24xf32>
    %113 = arith.mulf %108, %112 : vector<8x16x24xf32>
    %114 = arith.addf %107, %113 : vector<8x16x24xf32>
    %115 = vector.extract_strided_slice %66 {offsets = [2, 0, 0], sizes = [8, 18, 24], strides = [1, 1, 1]} : vector<10x18x24xf32> to vector<8x18x24xf32>
    %116 = vector.extract_strided_slice %115 {offsets = [0, 0, 0], sizes = [8, 16, 24], strides = [1, 1, 1]} : vector<8x18x24xf32> to vector<8x16x24xf32>
    %117 = vector.extract_strided_slice %67 {offsets = [2, 0, 0], sizes = [1, 1, 24], strides = [1, 1, 1]} : vector<3x3x24xf32> to vector<1x1x24xf32>
    %118 = vector.shape_cast %117 : vector<1x1x24xf32> to vector<24xf32>
    %119 = vector.shape_cast %118 : vector<24xf32> to vector<1x1x24xf32>
    %120 = vector.broadcast %119 : vector<1x1x24xf32> to vector<8x16x24xf32>
    %121 = arith.mulf %116, %120 : vector<8x16x24xf32>
    %122 = arith.addf %114, %121 : vector<8x16x24xf32>
    %123 = vector.extract_strided_slice %115 {offsets = [0, 1, 0], sizes = [8, 16, 24], strides = [1, 1, 1]} : vector<8x18x24xf32> to vector<8x16x24xf32>
    %124 = vector.extract_strided_slice %67 {offsets = [2, 1, 0], sizes = [1, 1, 24], strides = [1, 1, 1]} : vector<3x3x24xf32> to vector<1x1x24xf32>
    %125 = vector.shape_cast %124 : vector<1x1x24xf32> to vector<24xf32>
    %126 = vector.shape_cast %125 : vector<24xf32> to vector<1x1x24xf32>
    %127 = vector.broadcast %126 : vector<1x1x24xf32> to vector<8x16x24xf32>
    %128 = arith.mulf %123, %127 : vector<8x16x24xf32>
    %129 = arith.addf %122, %128 : vector<8x16x24xf32>
    %130 = vector.extract_strided_slice %115 {offsets = [0, 2, 0], sizes = [8, 16, 24], strides = [1, 1, 1]} : vector<8x18x24xf32> to vector<8x16x24xf32>
    %131 = vector.extract_strided_slice %67 {offsets = [2, 2, 0], sizes = [1, 1, 24], strides = [1, 1, 1]} : vector<3x3x24xf32> to vector<1x1x24xf32>
    %132 = vector.shape_cast %131 : vector<1x1x24xf32> to vector<24xf32>
    %133 = vector.shape_cast %132 : vector<24xf32> to vector<1x1x24xf32>
    %134 = vector.broadcast %133 : vector<1x1x24xf32> to vector<8x16x24xf32>
    %135 = arith.mulf %130, %134 : vector<8x16x24xf32>
    %136 = arith.addf %129, %135 : vector<8x16x24xf32>
    %137 = vector.shape_cast %69 : vector<24xf32> to vector<1x1x24xf32>
    %138 = vector.broadcast %137 : vector<1x1x24xf32> to vector<8x16x24xf32>
    %139 = arith.addf %136, %138 : vector<8x16x24xf32>
    %cst_17 = arith.constant 0.000000e+00 : f32
    %cst_18 = arith.constant 6.000000e+00 : f32
    %140 = vector.broadcast %cst_17 : f32 to vector<8x16x24xf32>
    %141 = arith.maximumf %140, %139 : vector<8x16x24xf32>
    %142 = vector.broadcast %cst_18 : f32 to vector<8x16x24xf32>
    %143 = arith.minimumf %142, %141 : vector<8x16x24xf32>
    %c0_19 = arith.constant 0 : index
    %c0_20 = arith.constant 0 : index
    %144 = vector.load %arg7[%c0_19, %c0_20] : memref<4x24xf32, #tpu.memory_space<vmem>>, vector<4x24xf32>
    %145 = vector.extract_strided_slice %4 {offsets = [1, 1, 0], sizes = [8, 16, 4], strides = [1, 1, 1]} : vector<10x18x4xf32> to vector<8x16x4xf32>
    %146 = vector.extract_strided_slice %144 {offsets = [0, 0], sizes = [1, 24], strides = [1, 1]} : vector<4x24xf32> to vector<1x24xf32>
    %147 = vector.shape_cast %146 : vector<1x24xf32> to vector<24xf32>
    %148 = vector.shape_cast %147 : vector<24xf32> to vector<1x1x24xf32>
    %149 = vector.broadcast %148 : vector<1x1x24xf32> to vector<8x16x24xf32>
    %150 = arith.mulf %143, %149 : vector<8x16x24xf32>
    %cst_21 = arith.constant dense<0.000000e+00> : vector<8x16xf32>
    %151 = vector.multi_reduction <add>, %150, %cst_21 [2] : vector<8x16x24xf32> to vector<8x16xf32>
    %c0_22 = arith.constant 0 : index
    %152 = memref.load %arg8[%c0_22] : memref<4xf32, #tpu.memory_space<smem>>
    %153 = vector.broadcast %152 : f32 to vector<8x16xf32>
    %154 = arith.addf %151, %153 : vector<8x16xf32>
    %155 = vector.extract_strided_slice %145 {offsets = [0, 0, 0], sizes = [8, 16, 1], strides = [1, 1, 1]} : vector<8x16x4xf32> to vector<8x16x1xf32>
    %156 = vector.shape_cast %155 : vector<8x16x1xf32> to vector<8x16xf32>
    %157 = arith.addf %154, %156 : vector<8x16xf32>
    %158 = vector.extract_strided_slice %144 {offsets = [1, 0], sizes = [1, 24], strides = [1, 1]} : vector<4x24xf32> to vector<1x24xf32>
    %159 = vector.shape_cast %158 : vector<1x24xf32> to vector<24xf32>
    %160 = vector.shape_cast %159 : vector<24xf32> to vector<1x1x24xf32>
    %161 = vector.broadcast %160 : vector<1x1x24xf32> to vector<8x16x24xf32>
    %162 = arith.mulf %143, %161 : vector<8x16x24xf32>
    %cst_23 = arith.constant dense<0.000000e+00> : vector<8x16xf32>
    %163 = vector.multi_reduction <add>, %162, %cst_23 [2] : vector<8x16x24xf32> to vector<8x16xf32>
    %c1 = arith.constant 1 : index
    %164 = memref.load %arg8[%c1] : memref<4xf32, #tpu.memory_space<smem>>
    %165 = vector.broadcast %164 : f32 to vector<8x16xf32>
    %166 = arith.addf %163, %165 : vector<8x16xf32>
    %167 = vector.extract_strided_slice %145 {offsets = [0, 0, 1], sizes = [8, 16, 1], strides = [1, 1, 1]} : vector<8x16x4xf32> to vector<8x16x1xf32>
    %168 = vector.shape_cast %167 : vector<8x16x1xf32> to vector<8x16xf32>
    %169 = arith.addf %166, %168 : vector<8x16xf32>
    %170 = vector.extract_strided_slice %144 {offsets = [2, 0], sizes = [1, 24], strides = [1, 1]} : vector<4x24xf32> to vector<1x24xf32>
    %171 = vector.shape_cast %170 : vector<1x24xf32> to vector<24xf32>
    %172 = vector.shape_cast %171 : vector<24xf32> to vector<1x1x24xf32>
    %173 = vector.broadcast %172 : vector<1x1x24xf32> to vector<8x16x24xf32>
    %174 = arith.mulf %143, %173 : vector<8x16x24xf32>
    %cst_24 = arith.constant dense<0.000000e+00> : vector<8x16xf32>
    %175 = vector.multi_reduction <add>, %174, %cst_24 [2] : vector<8x16x24xf32> to vector<8x16xf32>
    %c2 = arith.constant 2 : index
    %176 = memref.load %arg8[%c2] : memref<4xf32, #tpu.memory_space<smem>>
    %177 = vector.broadcast %176 : f32 to vector<8x16xf32>
    %178 = arith.addf %175, %177 : vector<8x16xf32>
    %179 = vector.extract_strided_slice %145 {offsets = [0, 0, 2], sizes = [8, 16, 1], strides = [1, 1, 1]} : vector<8x16x4xf32> to vector<8x16x1xf32>
    %180 = vector.shape_cast %179 : vector<8x16x1xf32> to vector<8x16xf32>
    %181 = arith.addf %178, %180 : vector<8x16xf32>
    %182 = vector.extract_strided_slice %144 {offsets = [3, 0], sizes = [1, 24], strides = [1, 1]} : vector<4x24xf32> to vector<1x24xf32>
    %183 = vector.shape_cast %182 : vector<1x24xf32> to vector<24xf32>
    %184 = vector.shape_cast %183 : vector<24xf32> to vector<1x1x24xf32>
    %185 = vector.broadcast %184 : vector<1x1x24xf32> to vector<8x16x24xf32>
    %186 = arith.mulf %143, %185 : vector<8x16x24xf32>
    %cst_25 = arith.constant dense<0.000000e+00> : vector<8x16xf32>
    %187 = vector.multi_reduction <add>, %186, %cst_25 [2] : vector<8x16x24xf32> to vector<8x16xf32>
    %c3 = arith.constant 3 : index
    %188 = memref.load %arg8[%c3] : memref<4xf32, #tpu.memory_space<smem>>
    %189 = vector.broadcast %188 : f32 to vector<8x16xf32>
    %190 = arith.addf %187, %189 : vector<8x16xf32>
    %191 = vector.extract_strided_slice %145 {offsets = [0, 0, 3], sizes = [8, 16, 1], strides = [1, 1, 1]} : vector<8x16x4xf32> to vector<8x16x1xf32>
    %192 = vector.shape_cast %191 : vector<8x16x1xf32> to vector<8x16xf32>
    %193 = arith.addf %190, %192 : vector<8x16xf32>
    %194 = vector.shape_cast %157 : vector<8x16xf32> to vector<1x8x16xf32>
    %195 = vector.shape_cast %169 : vector<8x16xf32> to vector<1x8x16xf32>
    %196 = vector.shape_cast %181 : vector<8x16xf32> to vector<1x8x16xf32>
    %197 = vector.shape_cast %193 : vector<8x16xf32> to vector<1x8x16xf32>
    %198 = tpu.concatenate %194, %195, %196, %197 in 0 : vector<1x8x16xf32>, vector<1x8x16xf32>, vector<1x8x16xf32>, vector<1x8x16xf32> -> vector<4x8x16xf32>
    %199 = vector.shape_cast %198 : vector<4x8x16xf32> to vector<4x128xf32>
    %c0_26 = arith.constant 0 : index
    %c0_27 = arith.constant 0 : index
    %c0_28 = arith.constant 0 : index
    %c0_29 = arith.constant 0 : index
    %200 = vector.load %arg9[%c0_26, %c0_27, %c0_28, %c0_29] : memref<1x1x4x128xf32, #tpu.memory_space<vmem>>, vector<1x1x4x128xf32>
    %201 = vector.shape_cast %200 : vector<1x1x4x128xf32> to vector<4x128xf32>
    %202 = vector.shape_cast %199 : vector<4x128xf32> to vector<1x1x4x128xf32>
    tpu.vector_store %arg9[%c0_26, %c0_27, %c0_28, %c0_29], %202 {strides = array<i32>} : memref<1x1x4x128xf32, #tpu.memory_space<vmem>>, vector<1x1x4x128xf32>,
    return
  }
  func.func @transform_0(%arg0: i32, %arg1: i32) -> (i32, i32, i32, i32) {
    %c0_i32 = arith.constant 0 : i32
    %c0_i32_0 = arith.constant 0 : i32
    %c0_i32_1 = arith.constant 0 : i32
    %c0_i32_2 = arith.constant 0 : i32
    return %arg0, %c0_i32, %c0_i32_0, %c0_i32_1 : i32, i32, i32, i32
  }
  func.func @transform_1(%arg0: i32, %arg1: i32) -> (i32, i32) {
    %c0_i32 = arith.constant 0 : i32
    %c0_i32_0 = arith.constant 0 : i32
    %c0_i32_1 = arith.constant 0 : i32
    return %c0_i32, %c0_i32_0 : i32, i32
  }
  func.func @transform_2(%arg0: i32, %arg1: i32) -> (i32, i32) {
    %c0_i32 = arith.constant 0 : i32
    %c0_i32_0 = arith.constant 0 : i32
    %c0_i32_1 = arith.constant 0 : i32
    return %c0_i32, %c0_i32_0 : i32, i32
  }
  func.func @transform_3(%arg0: i32, %arg1: i32) -> (i32, i32, i32) {
    %c0_i32 = arith.constant 0 : i32
    %c0_i32_0 = arith.constant 0 : i32
    %c0_i32_1 = arith.constant 0 : i32
    %c0_i32_2 = arith.constant 0 : i32
    return %c0_i32, %c0_i32_0, %c0_i32_1 : i32, i32, i32
  }
  func.func @transform_4(%arg0: i32, %arg1: i32) -> (i32, i32) {
    %c0_i32 = arith.constant 0 : i32
    %c0_i32_0 = arith.constant 0 : i32
    %c0_i32_1 = arith.constant 0 : i32
    return %c0_i32, %c0_i32_0 : i32, i32
  }
  func.func @transform_5(%arg0: i32, %arg1: i32) -> (i32, i32) {
    %c0_i32 = arith.constant 0 : i32
    %c0_i32_0 = arith.constant 0 : i32
    %c0_i32_1 = arith.constant 0 : i32
    return %c0_i32, %c0_i32_0 : i32, i32
  }
  func.func @transform_6(%arg0: i32, %arg1: i32) -> i32 {
    %c0_i32 = arith.constant 0 : i32
    %c0_i32_0 = arith.constant 0 : i32
    return %c0_i32 : i32
  }
  func.func @transform_7(%arg0: i32, %arg1: i32) -> (i32, i32, i32, i32) {
    %c0_i32 = arith.constant 0 : i32
    %c0_i32_0 = arith.constant 0 : i32
    %c0_i32_1 = arith.constant 0 : i32
    return %arg0, %arg1, %c0_i32, %c0_i32_0 : i32, i32, i32, i32
  }
}

</mosaic_0001>

<bundles_post_ra>
// kernel: tpu_custom_call.1
= control target key start
LH: loop header
LB: loop body
LE: loop exit
PB: predicated region body
PF: predicated region fallthrough
CT: control target
= control target key end

     0   :  { %12 = vsyncpa [#allocation4], 0  ;;  %s7071_s0 = inlined_call_operand.vmem [shape: f32[2,18,18,4], index: 0, kind: input, shape index: {}]   ;;  %s7072_s1 = inlined_call_operand.vmem [shape: f32[4,24], index: 1, kind: input, shape index: {}]   ;;  %s7073_s2 = inlined_call_operand.vmem [shape: f32[1,24], index: 2, kind: input, shape index: {}]   ;;  %s7074_s3 = inlined_call_operand.vmem [shape: f32[3,3,24], index: 3, kind: input, shape index: {}]   ;;  %s7075_s4 = inlined_call_operand.vmem [shape: f32[1,24], index: 4, kind: input, shape index: {}]   ;;  %s7076_s5 = inlined_call_operand.vmem [shape: f32[4,24], index: 5, kind: input, shape index: {}]   ;;  %s7077_s6 = inlined_call_operand.vmem [shape: f32[4], index: 6, kind: input, shape index: {}]   ;;  %s7078_s7 = inlined_call_operand.hbm [shape: f32[2,2,4,128], index: 7, kind: output, shape index: {}]  }
   0x1   :  { %13 = vsyncpa [#allocation3], 0 }
   0x2   :  { %15 = vsyncpa [#allocation3 + $0x1], 0  ;;  %s4052_s24 = smov 0   ;;  %s4054_s25 = smov 0  }
   0x3   :  { %s4056_s26 = smov 0   ;;  %s4058_s27 = smov 0  }
   0x4   :  { %s4060_s28 = smov 0   ;;  %s4062_s29 = smov 0  }
   0x5   :  { %s4064_s30 = smov 0   ;;  %s4066_s8 = smov 0  }
   0x6 LB: > { %s3724_s9 = sadd.s32 4294967295, %s3991_s8   ;;  %s3725_s10 = sadd.s32 4294967294, %s3991_s8   ;;  %s3991_s8 = sphi %s4066_s8, %s21_s8   ;;  %s3987_s30 = sphi %s4064_s30, %s7655_s30   ;;  %s3983_s29 = sphi %s4062_s29, %s7654_s29   ;;  %s3979_s28 = sphi %s4060_s28, %s7653_s28   ;;  %s3975_s27 = sphi %s4058_s27, %s7652_s27   ;;  %s3971_s26 = sphi %s4056_s26, %s7651_s26   ;;  %s3967_s25 = sphi %s4054_s25, %s7650_s25   ;;  %s3963_s24 = sphi %s4052_s24, %s7649_s24  }
   0x7   : > { %s30_s11 = sadd.s32 1, %s3983_s29  ;;  %s33_s12 = sadd.s32 1, %s3987_s30 }
   0x8   : > { %p31_p0 = scmp.ge.s32.totalorder %s30_s11, 2  ;;  %s194_s13 = sadd.s32 1, %s3971_s26 }
   0x9   : > { %p204_p1 = scmp.ne.s32.totalorder %s3971_s26, %s3967_s25  ;;  %p205_p2 = scmp.eq.s32.totalorder %s3724_s9, 3 }
   0xa   : > { %s7657_s11 = smov (%p31_p0, %s30_s11), 0  ;;  %s7659_s12 = smov (!%p31_p0, %s33_s12), %s3987_s30 }
   0xb   : > { %s190_s14 = ssub.s32 %s3983_s29, %s7657_s11  ;;  %p4104_p3 = por %p205_p2, %p204_p1 }
   0xc   : > { %p35_p4 = scmp.ge.s32.totalorder %s7659_s12, 2  ;;  %p210_p5 = scmp.ne.s32.totalorder %s3967_s25, %s3963_s24 }
   0xd   : > { %p211_p6 = scmp.eq.s32.totalorder %s3725_s10, 3  ;;  %p3726_p7 = scmp.ge.s32.totalorder %s3991_s8, 1 }
   0xe   : > { %s7661_s12 = smov (%p35_p4, %s7659_s12), 0  ;;  %p218_p9 = scmp.lt.s32.totalorder %s3991_s8, 5 }
   0xf   : > { %p4113_p8 = por %p211_p6, %p210_p5  ;;  %s189_s17 = ssub.s32 %s3987_s30, %s7661_s12 }
  0x10   : > { %s191_s18 = sor.u32 %s190_s14, %s189_s17  ;;  %p4120_p10 = pnand %p3726_p7, %p218_p9 }
  0x11   : > { %s7184_s16 = scalar_select %p4113_p8, 1, 0 }
  0x12   : > { %p192_p11 = scmp.eq.s32.totalorder %s191_s18, 0  ;;  %p4124_p12 = scmp.eq.s32.totalorder %s3724_s9, 0 }
  0x13   : > { %p3752_p13 = pneg %p4120_p10  ;;  %s246_s23 = sshll.u32 %s7077_s6, 4  ;;  %s247_s23 = int_to_ptr.vmem [resolvable:$true] %s246_s23 }
  0x14   : > { %s4134_s10 = scalar_select %p192_p11, %s3971_s26, %s194_s13  }
  0x15   : > { %p3753_p0 = pnand %p4124_p12, %p3752_p13  ;;  %s3880_s14 = scalar_lea.vmem %s247_s23, 16 }
  0x16   : > { %p3881_p1 = scmp.ne.s32.totalorder %s247_s23, %s3880_s14  ;;  %p3888_p6 = scmp.lt.s32.totalorder %s247_s23, %s247_s23 }
  0x17   : > { %p3882_p2 = pneg %p3753_p0  ;;  %p3889_p7 = scmp.lt.s32.totalorder %s3880_s14, %s3880_s14 }
  0x19   : > { %p3883_p4 = pnand %p3882_p2, %p3881_p1  ;;  %p3890_p9 = por %p3889_p7, %p3888_p6 }
  0x1b   : > { %p3884_p5 = pneg %p3883_p4 }
  0x1d   : > { %p3891_p8 = pnand %p3890_p9, %p3884_p5 }
  0x1f   : > { %3894 = shalt.err (!%p3891_p8)
}
  0x20   : > { %s3993_s9 = smov [#allocation2]   ;;  %267 = sbr.rel (%p4120_p10) target bundleno = 1290 (0x50a), region = 48 }
  0x21   : > { %3755 = dma.vmem_to_smem (!%p3753_p0), %s247_s23, 16, %s3993_s9, [#allocation4]  }
  0x25   : > { %3954 = dma.done.wait (%p4124_p12), [#allocation4], 16  }
  0x26   : > { %3956 = vsyncadd (%p4124_p12), [#allocation4], 4294967280 }
  0x27   : > { %273 = sfence }
  0x28   : > { %p300_p11 = scmp.lt.s32.totalorder %s3979_s28, 1  ;;  %v3994_v0 = vmov 1   ;;  %v7079_v1 = vmov 0   ;;  %s3734_s17 = smul.u32 192, %s3975_s27  ;;  %v3996_v19 = vmov 2   ;;  %v3997_v33 = vmov 3  }
  0x29   : > { %3846 = vset.pattern.permute.xlu0 %v3994_v0  ;;  %3845 = vset.pattern.permute.xlu1 %v7079_v1  ;;  %s3733_s9 = sshll.u32 %s3975_s27, 3  ;;  %s3998_s14 = smov 127  }
  0x2a   : > { %s301_s13 = scalar_select %p300_p11, %s3979_s28, 1 }
  0x2b   : > { %s3739_s19 = sld [smem:[#allocation2 + $0x3]]  ;;  %s4003_s21 = smov 32  }
  0x2c   : > { %s3745_s18 = smul.u32 432, %s301_s13  ;;  %s2384_s13 = sld [smem:[#allocation2]] }
  0x2d   : > { %s4006_s20 = smov 64  }
  0x2e   : > { %s304_s22 = scalar_lea.vmem %s7071_s0, %s3745_s18  ;;  %s3738_s18 = sld [smem:[#allocation2 + $0x2]] }
  0x2f   : > { %s4151_s23 = scalar_lea.vmem %s304_s22, %s3734_s17  ;;  %s3737_s17 = sld [smem:[#allocation2 + $0x1]] }
  0x30   : > { %v4154_v2 = vld [vmem:[%s4151_s23 + $0x10] sm:$0x3]  ;;  %v4157_v3 = vld [vmem:[%s4151_s23] sm:$0xff]  ;;  %v4162_v4 = vld [vmem:[%s4151_s23 + $0x18] sm:$0xff]  ;;  %s4005_s22 = smov 16  }
  0x31   : > { %351 = vperm.xlu1 %3845, %v4154_v2   ;;  %554 = vperm.xlu0 %3846, %v4157_v3   ;;  %v4167_v5 = vld [vmem:[%s4151_s23 + $0x28] sm:$0x3]  ;;  %v4172_v6 = vld [vmem:[%s4151_s23 + $0x38] sm:$0xff]  ;;  %v4237_v20 = vld [vmem:[%s4151_s23 + $0x20] sm:$0xff] }
  0x32   : > { %v4177_v7 = vld [vmem:[%s4151_s23 + $0x48] sm:$0xff]  ;;  %v4182_v8 = vld [vmem:[%s4151_s23 + $0x58] sm:$0x3]  ;;  %v4242_v21 = vld [vmem:[%s4151_s23 + $0x30] sm:$0xff] }
  0x33   : > { %v4187_v9 = vld [vmem:[%s4151_s23 + $0x68] sm:$0xff]  ;;  %v4192_v10 = vld [vmem:[%s4151_s23 + $0x78] sm:$0xff]  ;;  %v4247_v22 = vld [vmem:[%s4151_s23 + $0x40] sm:$0x3] }
  0x34   : > { %v4197_v11 = vld [vmem:[%s4151_s23 + $0x88] sm:$0x3]  ;;  %v4202_v12 = vld [vmem:[%s4151_s23 + $0x98] sm:$0xff]  ;;  %v4252_v23 = vld [vmem:[%s4151_s23 + $0x50] sm:$0xff] }
  0x35   : > { %356 = vperm.xlu1 %3845, %v4162_v4   ;;  %566 = vperm.xlu0 %3846, %v4162_v4   ;;  %v4207_v13 = vld [vmem:[%s4151_s23 + $0xa8] sm:$0xff]  ;;  %v4212_v14 = vld [vmem:[%s4151_s23 + $0xb8] sm:$0x3]  ;;  %v4257_v24 = vld [vmem:[%s4151_s23 + $0x60] sm:$0xff] }
  0x36   : > { %v4217_v15 = vld [vmem:[%s4151_s23 + $0xc8] sm:$0xff]  ;;  %v4222_v16 = vld [vmem:[%s4151_s23 + $0xd8] sm:$0xff]  ;;  %v4262_v25 = vld [vmem:[%s4151_s23 + $0x70] sm:$0x3] }
  0x37   : > { %v4227_v17 = vld [vmem:[%s4151_s23 + $0xe8] sm:$0x3]  ;;  %v4267_v26 = vld [vmem:[%s4151_s23 + $0x80] sm:$0xff]  ;;  %v4272_v27 = vld [vmem:[%s4151_s23 + $0x90] sm:$0xff] }
  0x38   : > { %v4232_v18 = vld [vmem:[%s4151_s23 + $0x8] sm:$0xff]  ;;  %v4277_v28 = vld [vmem:[%s4151_s23 + $0xa0] sm:$0x3]  ;;  %v4282_v29 = vld [vmem:[%s4151_s23 + $0xb0] sm:$0xff] }
  0x39   : > { %366 = vperm.xlu1 %3845, %v4167_v5   ;;  %574 = vperm.xlu0 %3846, %v4167_v5   ;;  %v4287_v30 = vld [vmem:[%s4151_s23 + $0xc0] sm:$0xff]  ;;  %v4292_v31 = vld [vmem:[%s4151_s23 + $0xd0] sm:$0x3] }
  0x3a   : > { %v4297_v32 = vld [vmem:[%s4151_s23 + $0xe0] sm:$0xff] }
  0x3d   : > { %376 = vperm.xlu1 %3845, %v4172_v6   ;;  %582 = vperm.xlu0 %3846, %v4172_v6  }
  0x41   : > { %386 = vperm.xlu1 %3845, %v4177_v7   ;;  %590 = vperm.xlu0 %3846, %v4177_v7  }
  0x45   : > { %396 = vperm.xlu1 %3845, %v4182_v8   ;;  %598 = vperm.xlu0 %3846, %v4182_v8  }
  0x49   : > { %406 = vperm.xlu1 %3845, %v4187_v9   ;;  %606 = vperm.xlu0 %3846, %v4187_v9  }
  0x4d   : > { %416 = vperm.xlu1 %3845, %v4192_v10   ;;  %614 = vperm.xlu0 %3846, %v4192_v10  }
  0x51   : > { %426 = vperm.xlu1 %3845, %v4197_v11   ;;  %622 = vperm.xlu0 %3846, %v4197_v11  }
  0x55   : > { %436 = vperm.xlu1 %3845, %v4202_v12   ;;  %630 = vperm.xlu0 %3846, %v4202_v12  }
  0x59   : > { %446 = vperm.xlu1 %3845, %v4207_v13   ;;  %638 = vperm.xlu0 %3846, %v4207_v13  }
  0x5d   : > { %456 = vperm.xlu1 %3845, %v4212_v14   ;;  %646 = vperm.xlu0 %3846, %v4212_v14  }
  0x61   : > { %466 = vperm.xlu1 %3845, %v4217_v15   ;;  %654 = vperm.xlu0 %3846, %v4217_v15  }
  0x65   : > { %476 = vperm.xlu1 %3845, %v4222_v16   ;;  %662 = vperm.xlu0 %3846, %v4222_v16  }
  0x69   : > { %486 = vperm.xlu1 %3845, %v4227_v17   ;;  %670 = vperm.xlu0 %3846, %v4227_v17  }
  0x6d   : > { %3847 = vset.pattern.permute.xlu1 %v3994_v0  ;;  %3849 = vset.pattern.permute.xlu0 %v3996_v19 }
  0x6e   : > { %558 = vperm.xlu1 %3847, %v4232_v18   ;;  %742 = vperm.xlu0 %3849, %v4232_v18  }
  0x72   : > { %562 = vperm.xlu1 %3847, %v4154_v2   ;;  %754 = vperm.xlu0 %3849, %v4237_v20  }
  0x76   : > { %570 = vperm.xlu1 %3847, %v4237_v20   ;;  %762 = vperm.xlu0 %3849, %v4242_v21  }
  0x7a   : > { %578 = vperm.xlu1 %3847, %v4242_v21   ;;  %770 = vperm.xlu0 %3849, %v4247_v22  }
  0x7e   : > { %586 = vperm.xlu1 %3847, %v4247_v22   ;;  %778 = vperm.xlu0 %3849, %v4252_v23  }
  0x82   : > { %594 = vperm.xlu1 %3847, %v4252_v23   ;;  %786 = vperm.xlu0 %3849, %v4257_v24  }
  0x86   : > { %602 = vperm.xlu1 %3847, %v4257_v24   ;;  %794 = vperm.xlu0 %3849, %v4262_v25  }
  0x8a   : > { %610 = vperm.xlu1 %3847, %v4262_v25   ;;  %802 = vperm.xlu0 %3849, %v4267_v26  }
  0x8e   : > { %618 = vperm.xlu1 %3847, %v4267_v26   ;;  %810 = vperm.xlu0 %3849, %v4272_v27  }
  0x92   : > { %626 = vperm.xlu1 %3847, %v4272_v27   ;;  %818 = vperm.xlu0 %3849, %v4277_v28  }
  0x96   : > { %634 = vperm.xlu1 %3847, %v4277_v28   ;;  %826 = vperm.xlu0 %3849, %v4282_v29  }
  0x9a   : > { %642 = vperm.xlu1 %3847, %v4282_v29   ;;  %834 = vperm.xlu0 %3849, %v4287_v30  }
  0x9e   : > { %650 = vperm.xlu1 %3847, %v4287_v30   ;;  %842 = vperm.xlu0 %3849, %v4292_v31  }
  0xa2   : > { %658 = vperm.xlu1 %3847, %v4292_v31   ;;  %850 = vperm.xlu0 %3849, %v4297_v32  }
  0xa6   : > { %666 = vperm.xlu1 %3847, %v4297_v32   ;;  %3850 = vset.pattern.permute.xlu0 %v3997_v33 }
  0xa7   : > { %922 = vperm.xlu0 %3850, %v4157_v3  }
  0xaa   : > { %3848 = vset.pattern.permute.xlu1 %v3996_v19 }
  0xab   : > { %738 = vperm.xlu1 %3848, %v4157_v3   ;;  %934 = vperm.xlu0 %3850, %v4162_v4  }
  0xac   : > { %v4306_v34 = vpop.permute.xlu1 %351  ;;  %v4308_v35 = vpop.permute.xlu0 %554 }
  0xaf   : > { %746 = vperm.xlu1 %3848, %v4154_v2   ;;  %942 = vperm.xlu0 %3850, %v4167_v5  }
  0xb0   : > { %v4312_v36 = vpop.permute.xlu1 %356  ;;  %v4314_v37 = vpop.permute.xlu0 %566 }
  0xb3   : > { %750 = vperm.xlu1 %3848, %v4162_v4   ;;  %950 = vperm.xlu0 %3850, %v4172_v6  }
  0xb4   : > { %v4318_v38 = vpop.permute.xlu1 %366  ;;  %v4320_v39 = vpop.permute.xlu0 %574 }
  0xb7   : > { %758 = vperm.xlu1 %3848, %v4167_v5   ;;  %958 = vperm.xlu0 %3850, %v4177_v7  }
  0xb8   : > { %v4324_v40 = vpop.permute.xlu1 %376  ;;  %v4326_v41 = vpop.permute.xlu0 %582 }
  0xbb   : > { %766 = vperm.xlu1 %3848, %v4172_v6   ;;  %966 = vperm.xlu0 %3850, %v4182_v8  }
  0xbc   : > { %v4330_v42 = vpop.permute.xlu1 %386  ;;  %v4332_v43 = vpop.permute.xlu0 %590 }
  0xbf   : > { %774 = vperm.xlu1 %3848, %v4177_v7   ;;  %974 = vperm.xlu0 %3850, %v4187_v9  }
  0xc0   : > { %v4336_v44 = vpop.permute.xlu1 %396  ;;  %v4338_v45 = vpop.permute.xlu0 %598 }
  0xc3   : > { %782 = vperm.xlu1 %3848, %v4182_v8   ;;  %982 = vperm.xlu0 %3850, %v4192_v10  }
  0xc4   : > { %v4342_v46 = vpop.permute.xlu1 %406  ;;  %v4344_v47 = vpop.permute.xlu0 %606 }
  0xc7   : > { %790 = vperm.xlu1 %3848, %v4187_v9   ;;  %990 = vperm.xlu0 %3850, %v4197_v11  }
  0xc8   : > { %v4348_v48 = vpop.permute.xlu1 %416  ;;  %v4350_v49 = vpop.permute.xlu0 %614 }
  0xcb   : > { %798 = vperm.xlu1 %3848, %v4192_v10   ;;  %998 = vperm.xlu0 %3850, %v4202_v12  }
  0xcc   : > { %v4354_v50 = vpop.permute.xlu1 %426  ;;  %v4356_v51 = vpop.permute.xlu0 %622 }
  0xcf   : > { %806 = vperm.xlu1 %3848, %v4197_v11   ;;  %1006 = vperm.xlu0 %3850, %v4207_v13  }
  0xd0   : > { %v4360_v52 = vpop.permute.xlu1 %436  ;;  %v4362_v53 = vpop.permute.xlu0 %630 }
  0xd3   : > { %814 = vperm.xlu1 %3848, %v4202_v12   ;;  %1014 = vperm.xlu0 %3850, %v4212_v14  }
  0xd4   : > { %v4366_v54 = vpop.permute.xlu1 %446  ;;  %v4368_v55 = vpop.permute.xlu0 %638 }
  0xd7   : > { %822 = vperm.xlu1 %3848, %v4207_v13   ;;  %1022 = vperm.xlu0 %3850, %v4217_v15  }
  0xd8   : > { %v4372_v56 = vpop.permute.xlu1 %456  ;;  %v4374_v57 = vpop.permute.xlu0 %646 }
  0xdb   : > { %830 = vperm.xlu1 %3848, %v4212_v14   ;;  %1030 = vperm.xlu0 %3850, %v4222_v16  }
  0xdc   : > { %v4378_v58 = vpop.permute.xlu1 %466  ;;  %v4380_v59 = vpop.permute.xlu0 %654 }
  0xdf   : > { %838 = vperm.xlu1 %3848, %v4217_v15   ;;  %1038 = vperm.xlu0 %3850, %v4227_v17  }
  0xe0   : > { %v4384_v60 = vpop.permute.xlu1 %476  ;;  %v4386_v61 = vpop.permute.xlu0 %662 }
  0xe3   : > { %846 = vperm.xlu1 %3848, %v4222_v16   ;;  %3852 = vset.pattern.permute.xlu0 %v7079_v1 }
  0xe4   : > { %v4390_v62 = vpop.permute.xlu1 %486  ;;  %341 = vperm.xlu0 %3852, %v4157_v3   ;;  %v4393_v63 = vpop.permute.xlu0 %670 }
  0xe7   : > { %854 = vperm.xlu1 %3848, %v4227_v17  }
  0xe8   : > { %346 = vperm.xlu0 %3852, %v4232_v18  }
  0xe9   : > { %v4397_v0 = vpop.permute.xlu1 %558  ;;  %v4399_v4 = vpop.permute.xlu0 %742 }
  0xeb   : > { %3851 = vset.pattern.permute.xlu1 %v3997_v33  ;;  %v338_v33 = vld [vmem:[%s7072_s1] sm:$0xf] }
  0xec   : > { %926 = vperm.xlu1 %3851, %v4232_v18   ;;  %361 = vperm.xlu0 %3852, %v4237_v20  }
  0xed   : > { %v4404_v5 = vpop.permute.xlu1 %562  ;;  %v4406_v6 = vpop.permute.xlu0 %754 }
  0xf0   : > { %930 = vperm.xlu1 %3851, %v4154_v2   ;;  %371 = vperm.xlu0 %3852, %v4242_v21  }
  0xf1   : > { %v4410_v3 = vpop.permute.xlu1 %570  ;;  %v4412_v7 = vpop.permute.xlu0 %762 }
  0xf4   : > { %938 = vperm.xlu1 %3851, %v4237_v20   ;;  %381 = vperm.xlu0 %3852, %v4247_v22  }
  0xf5   : > { %v4416_v8 = vpop.permute.xlu1 %578  ;;  %v4418_v9 = vpop.permute.xlu0 %770 }
  0xf8   : > { %946 = vperm.xlu1 %3851, %v4242_v21   ;;  %391 = vperm.xlu0 %3852, %v4252_v23   ;;  %v7080_v21 = vlaneseq }
  0xf9   : > { %v4422_v10 = vpop.permute.xlu1 %586  ;;  %v4424_v2 = vpop.permute.xlu0 %778 }
  0xfc   : > { %954 = vperm.xlu1 %3851, %v4247_v22   ;;  %401 = vperm.xlu0 %3852, %v4257_v24  }
  0xfd   : > { %v4428_v11 = vpop.permute.xlu1 %594  ;;  %v4430_v12 = vpop.permute.xlu0 %786 }
 0x100   : > { %962 = vperm.xlu1 %3851, %v4252_v23   ;;  %411 = vperm.xlu0 %3852, %v4262_v25  }
 0x101   : > { %v4434_v13 = vpop.permute.xlu1 %602  ;;  %v4436_v14 = vpop.permute.xlu0 %794 }
 0x104   : > { %970 = vperm.xlu1 %3851, %v4257_v24   ;;  %421 = vperm.xlu0 %3852, %v4267_v26   ;;  %v4463_v24 = vshrl.u32 %v7080_v21, 7 }
 0x105   : > { %v4440_v15 = vpop.permute.xlu1 %610  ;;  %v4442_v16 = vpop.permute.xlu0 %802 }
 0x106   : > { %7187 = vst [vmem:[#allocation8_spill] sm:$0xff] %v4440_v15  ;;  %7188 = vst [vmem:[#allocation9_spill] sm:$0xff] %v4442_v16  ;;  %v4478_v1 = vsub.s32 1, %v4463_v24  ;;  %vm7124_vm2 = vcmp.gt.s32.totalorder %v4463_v24, 0 }
 0x107   : > { %7195 = vst [vmem:[#allocation16_spill] sm:$0xff] %v4463_v24 }
 0x108   : > { %978 = vperm.xlu1 %3851, %v4262_v25   ;;  %431 = vperm.xlu0 %3852, %v4272_v27   ;;  %7198 = vst [vmem:[#allocation19_spill] sm:$0xff] %v4478_v1 }
 0x109   : > { %v4446_v17 = vpop.permute.xlu1 %618  ;;  %v4448_v18 = vpop.permute.xlu0 %810 }
 0x10a   : > { %7189 = vst [vmem:[#allocation10_spill] sm:$0xff] %v4446_v17  ;;  %7190 = vst [vmem:[#allocation11_spill] sm:$0xff] %v4448_v18  ;;  %v4514_v18 = vstv %s3733_s9  ;;  %s4000_s9 = smov 125  }
 0x10c   : > { %986 = vperm.xlu1 %3851, %v4267_v26   ;;  %441 = vperm.xlu0 %3852, %v4277_v28  }
 0x10d   : > { %v4452_v19 = vpop.permute.xlu1 %626  ;;  %v4454_v20 = vpop.permute.xlu0 %818 }
 0x10e   : > { %7191 = vst [vmem:[#allocation12_spill] sm:$0xff] %v4452_v19  ;;  %7192 = vst [vmem:[#allocation13_spill] sm:$0xff] %v4454_v20 }
 0x110   : > { %994 = vperm.xlu1 %3851, %v4272_v27   ;;  %451 = vperm.xlu0 %3852, %v4282_v29   ;;  %v4472_v27 = vsub.s32 0, %v4463_v24 }
 0x111   : > { %v4458_v22 = vpop.permute.xlu1 %634  ;;  %v4460_v23 = vpop.permute.xlu0 %826 }
 0x112   : > { %7193 = vst [vmem:[#allocation14_spill] sm:$0xff] %v4458_v22  ;;  %7194 = vst [vmem:[#allocation15_spill] sm:$0xff] %v4460_v23  ;;  %v7081_v23 = vsub.s32 3, %v4463_v24  ;;  %v4494_v22 = vrot.slane %v338_v33, %v4478_v1 }
 0x114   : > { %1002 = vperm.xlu1 %3851, %v4277_v28   ;;  %461 = vperm.xlu0 %3852, %v4287_v30   ;;  %v4512_v19 = vrot.slane %v338_v33, %v7081_v23  ;;  %v682_v17 = vmul.f32 %v4494_v22, %v4320_v39 }
 0x115   : > { %v4467_v25 = vpop.permute.xlu1 %642  ;;  %v4469_v26 = vpop.permute.xlu0 %834 }
 0x116   : > { %7196 = vst [vmem:[#allocation17_spill] sm:$0xff] %v4467_v25  ;;  %7197 = vst [vmem:[#allocation18_spill] sm:$0xff] %v4469_v26  ;;  %v4487_v26 = vrot.slane %v338_v33, %v4472_v27  ;;  %v4490_v25 = vsub.s32 2, %v4463_v24 }
 0x118   : > { %1010 = vperm.xlu1 %3851, %v4282_v29   ;;  %471 = vperm.xlu0 %3852, %v4292_v31   ;;  %7201 = vst [vmem:[#allocation22_spill] sm:$0xff] %v4490_v25  ;;  %v4508_v20 = vrot.slane %v338_v33, %v4490_v25  ;;  %v1403_v33 = vld [vmem:[%s7074_s3 + $0x4] sm:$0x7]  ;;  %v500_v23 = vmul.f32 %v4487_v26, %v4324_v40 }
 0x119   : > { %v4482_v28 = vpop.permute.xlu1 %650  ;;  %v4484_v21 = vpop.permute.xlu0 %842  ;;  %v504_v39 = vmul.f32 %v4487_v26, %v4336_v44  ;;  %v688_v40 = vmul.f32 %v4494_v22, %v4338_v45 }
 0x11a   : > { %7199 = vst [vmem:[#allocation20_spill] sm:$0xff] %v4482_v28  ;;  %7200 = vst [vmem:[#allocation21_spill] sm:$0xff] %v4484_v21  ;;  %v4505_v21 = vmul.f32 %v4487_v26, %v4306_v34  ;;  %v680_v34 = vmul.f32 %v4494_v22, %v4314_v37  ;;  %v502_v37 = vmul.f32 %v4487_v26, %v4330_v42  ;;  %v4555_v42 = vadd.s32 1, %v4514_v18 }
 0x11c   : > { %1018 = vperm.xlu1 %3851, %v4287_v30   ;;  %481 = vperm.xlu0 %3852, %v4297_v32   ;;  %v1402_v30 = vld [vmem:[%s7074_s3] sm:$0x7]  ;;  %vm1217_vm0 = vcmp.gt.s32.totalorder %v4555_v42, 0  ;;  %vm1227_vm1 = vcmp.lt.s32.totalorder %v4555_v42, 17  ;;  %v7236_v42 = vld [vmem:[#allocation13_spill] sm:$0xff] }
 0x11d   : > { %v4499_v29 = vpop.permute.xlu1 %658  ;;  %v4501_v28 = vpop.permute.xlu0 %850  ;;  %vm4768_vm4 = vmand %vm1217_vm0, %vm1227_vm1 }
 0x11e   : > { %7202 = vst [vmem:[#allocation23_spill] sm:$0xff] %v4499_v29  ;;  %7203 = vst [vmem:[#allocation24_spill] sm:$0xff] %v4501_v28  ;;  %v496_v28 = vmul.f32 %v4487_v26, %v4312_v36  ;;  %v498_v29 = vmul.f32 %v4487_v26, %v4318_v38  ;;  %v684_v36 = vmul.f32 %v4494_v22, %v4326_v41 }
 0x11f   : > { %v686_v38 = vmul.f32 %v4494_v22, %v4332_v43  ;;  %v4552_v41 = vrot.slane %v1402_v30, %v4472_v27  ;;  %v4558_v43 = vrot.slane %v1402_v30, %v4478_v1  ;;  %vm1252_vm7 = vmand %vm4768_vm4, %vm7124_vm2 }
 0x120   : > { %1026 = vperm.xlu1 %3851, %v4292_v31   ;;  %v4543_v31 = vmul.f32 %v4494_v22, %v4308_v35  ;;  %v4561_v35 = vrot.slane %v1402_v30, %v4490_v25  ;;  %v4566_v44 = vadd.f32 %v680_v34, %v496_v28  ;;  %v4568_v45 = vadd.f32 %v682_v17, %v498_v29  ;;  %v1404_v30 = vld [vmem:[%s7074_s3 + $0x8] sm:$0x7] }
 0x121   : > { %v4539_v16 = vpop.permute.xlu1 %666  ;;  %7206 = vst [vmem:[#allocation27_spill] sm:$0xff] %v4552_v41  ;;  %7207 = vst [vmem:[#allocation28_spill] sm:$0xff] %v4558_v43  ;;  %v4572_v41 = vrot.slane %v1403_v33, %v4478_v1  ;;  %v4582_v43 = vadd.f32 %v686_v38, %v502_v37  ;;  %v4585_v28 = vadd.s32 16, %v4463_v24  ;;  %v4588_v17 = vadd.s32 2, %v4514_v18 }
 0x122   : > { %7204 = vst [vmem:[#allocation25_spill] sm:$0xff] %v4543_v31  ;;  %v4549_v15 = vpop.permute.xlu0 %922  ;;  %7208 = vst [vmem:[#allocation29_spill] sm:$0xff] %v4561_v35  ;;  %v4564_v31 = vrot.slane %v1403_v33, %v4472_v27  ;;  %v4580_v35 = vadd.f32 %v684_v36, %v500_v23  ;;  %v506_v29 = vmul.f32 %v4487_v26, %v4342_v46  ;;  %v4599_v36 = vadd.s32 3, %v4514_v18 }
 0x123   : > { %7205 = vst [vmem:[#allocation26_spill] sm:$0xff] %v4549_v15  ;;  %v4575_v15 = vrot.slane %v1403_v33, %v4490_v25  ;;  %v690_v34 = vmul.f32 %v4494_v22, %v4344_v47  ;;  %v508_v37 = vmul.f32 %v4487_v26, %v4348_v48  ;;  %v692_v38 = vmul.f32 %v4494_v22, %v4350_v49 }
 0x124   : > { %1034 = vperm.xlu1 %3851, %v4297_v32   ;;  %v4590_v32 = vadd.f32 %v688_v40, %v504_v39  ;;  %v4606_v39 = vrot.slane %v1404_v30, %v4478_v1  ;;  %v4609_v46 = vrot.slane %v1404_v30, %v4490_v25  ;;  %v510_v47 = vmul.f32 %v4487_v26, %v4354_v50 }
 0x125   : > { %7209 = vst [vmem:[#allocation30_spill] sm:$0xff] %v4575_v15  ;;  %v694_v40 = vmul.f32 %v4494_v22, %v4356_v51  ;;  %v696_v48 = vmul.f32 %v4494_v22, %v4362_v53  ;;  %v7213_v15 = vmov 0   ;;  %v514_v49 = vmul.f32 %v4487_v26, %v4366_v54 }
 0x126   : > { %7210 = vst [vmem:[#allocation31_spill] sm:$0xff] %v4590_v32  ;;  %v4596_v33 = vpop.permute.xlu1 %738  ;;  %v935_v23 = vpop.permute.xlu0 %934  ;;  %7211 = vst [vmem:[#allocation32_spill] sm:$0xff] %v4606_v39  ;;  %v512_v32 = vmul.f32 %v4487_v26, %v4360_v52  ;;  %v698_v25 = vmul.f32 %v4494_v22, %v4368_v55  ;;  %v516_v50 = vmul.f32 %v4487_v26, %v4372_v56  ;;  %v4656_v39 = vadd.s32 4, %v4514_v18 }
 0x127   : > { %7212 = vst [vmem:[#allocation33_spill] sm:$0xff] %v4609_v46  ;;  %v700_v51 = vmul.f32 %v4494_v22, %v4374_v57  ;;  %v518_v52 = vmul.f32 %v4487_v26, %v4378_v58  ;;  %v702_v53 = vmul.f32 %v4494_v22, %v4380_v59  ;;  %v704_v54 = vmul.f32 %v4494_v22, %v4386_v61 }
 0x128   : > { %3853 = vset.pattern.permute.xlu1 %v7213_v15  ;;  %v520_v15 = vmul.f32 %v4487_v26, %v4384_v60  ;;  %v4640_v56 = vadd.f32 %v690_v34, %v506_v29  ;;  %v522_v57 = vmul.f32 %v4487_v26, %v4390_v62  ;;  %v706_v58 = vmul.f32 %v4494_v22, %v4393_v63 }
 0x129   : > { %v4647_v59 = vrot.slane %v1404_v30, %v4472_v27  ;;  %v4649_v60 = vadd.f32 %v692_v38, %v508_v37  ;;  %v4651_v61 = vadd.f32 %v694_v40, %v510_v47  ;;  %v679_v46 = vmul.f32 %v4494_v22, %v4404_v5 }
 0x12a   : > { %v4636_v1 = vpop.permute.xlu1 %746  ;;  %v943_v55 = vpop.permute.xlu0 %942  ;;  %v4658_v29 = vadd.f32 %v696_v48, %v512_v32  ;;  %v4660_v34 = vadd.f32 %v698_v25, %v514_v49  ;;  %v4664_v62 = vadd.s32 5, %v4514_v18  ;;  %v4667_v63 = vadd.s32 6, %v4514_v18 }
 0x12b   : > { %v4669_v30 = vadd.f32 %v700_v51, %v516_v50  ;;  %v4671_v37 = vadd.f32 %v702_v53, %v518_v52  ;;  %v4673_v5 = vadd.f32 %v704_v54, %v520_v15  ;;  %v4676_v32 = vadd.s32 7, %v4514_v18 }
 0x12c   : > { %v4678_v25 = vadd.f32 %v706_v58, %v522_v57  ;;  %v4682_v40 = vmul.f32 %v4494_v22, %v4397_v0  ;;  %v4686_v49 = vadd.s32 8, %v4514_v18  ;;  %v4690_v50 = vmul.f32 %v4508_v20, %v4399_v4 }
 0x12d   : > { %v4693_v51 = vadd.f32 %v679_v46, %v4505_v21  ;;  %v4697_v52 = vmul.f32 %v4508_v20, %v4406_v6  ;;  %v4700_v53 = vadd.s32 9, %v4514_v18  ;;  %v4704_v0 = vmul.f32 %v4494_v22, %v4410_v3 }
 0x12e   : > { %v751_v38 = vpop.permute.xlu1 %750  ;;  %v951_v47 = vpop.permute.xlu0 %950  ;;  %v4708_v15 = vmul.f32 %v4508_v20, %v4412_v7  ;;  %v1048_v4 = vmul.f32 %v4512_v19, %v935_v23  ;;  %vm1281_vm3 = vcmp.lt.s32.totalorder %v4585_v28, 17  ;;  %v4715_v6 = vmul.f32 %v4494_v22, %v4416_v8 }
 0x12f   : > { %v864_v48 = vmul.f32 %v4508_v20, %v751_v38  ;;  %v4719_v46 = vmul.f32 %v4508_v20, %v4418_v9  ;;  %v4723_v3 = vmul.f32 %v4494_v22, %v4422_v10  ;;  %v4727_v7 = vmul.f32 %v4508_v20, %v4424_v2  ;;  %v7223_v38 = vld [vmem:[#allocation8_spill] sm:$0xff]  ;;  %vm1287_vm10 = vmand %vm4768_vm4, %vm1281_vm3 }
 0x130   : > { %7214 = vst [vmem:[#allocation34_spill] sm:$0xff] %v4708_v15  ;;  %7215 = vst [vmem:[#allocation35_spill] sm:$0xff] %v4715_v6  ;;  %v4736_v54 = vmul.f32 %v4494_v22, %v4428_v11  ;;  %v4740_v9 = vmul.f32 %v4508_v20, %v4430_v12  ;;  %v4745_v2 = vmul.f32 %v4494_v22, %v4434_v13  ;;  %v7225_v11 = vld [vmem:[#allocation9_spill] sm:$0xff]  ;;  %v7227_v12 = vld [vmem:[#allocation10_spill] sm:$0xff]  ;;  %v7229_v13 = vmov 0 }
 0x131   : > { %v894_v21 = vadd.f32 %v864_v48, %v4566_v44  ;;  %7216 = vst [vmem:[#allocation36_spill] sm:$0xff] %v4719_v46  ;;  %7217 = vst [vmem:[#allocation37_spill] sm:$0xff] %v4723_v3  ;;  %v4732_v44 = vld [vmem:[%s7073_s2] ss:$0 sm:$0xff]  ;;  %v4749_v58 = vmul.f32 %v4508_v20, %v4436_v14  ;;  %v4753_v48 = vmul.f32 %v4494_v22, %v7223_v38  ;;  %v7230_v13 = vsel %vm4768_vm4, 4294967295, %v7229_v13 }
 0x132   : > { %7218 = vst [vmem:[#allocation38_spill] sm:$0xff] %v4727_v7  ;;  %v759_v23 = vpop.permute.xlu1 %758  ;;  %v959_v8 = vpop.permute.xlu0 %958  ;;  %7219 = vst [vmem:[#allocation39_spill] sm:$0xff] %v4736_v54  ;;  %v4757_v7 = vmul.f32 %v4508_v20, %v7225_v11  ;;  %vm1218_vm5 = vcmp.gt.s32.totalorder %v4588_v17, 0  ;;  %vm1228_vm6 = vcmp.lt.s32.totalorder %v4588_v17, 17  ;;  %v7232_v38 = vld [vmem:[#allocation11_spill] sm:$0xff]  ;;  %vm1219_vm8 = vcmp.gt.s32.totalorder %v4599_v36, 0 }
 0x133   : > { %7220 = vst [vmem:[#allocation40_spill] sm:$0xff] %v4740_v9  ;;  %v1078_v10 = vadd.f32 %v1048_v4, %v894_v21  ;;  %v866_v57 = vmul.f32 %v4508_v20, %v759_v23  ;;  %7221 = vst [vmem:[#allocation41_spill] sm:$0xff] %v4745_v2  ;;  %v4761_v4 = vmul.f32 %v4494_v22, %v7227_v12  ;;  %vm1229_vm9 = vcmp.lt.s32.totalorder %v4599_v36, 17  ;;  %v7281_v36 = vld [vmem:[#allocation32_spill] sm:$0xff] }
 0x134   : > { %7222 = vst [vmem:[#allocation42_spill] sm:$0xff] %v4749_v58  ;;  %7224 = vst [vmem:[#allocation8_spill] sm:$0xff] %v4753_v48  ;;  %v1050_v21 = vmul.f32 %v4512_v19, %v943_v55  ;;  %v4778_v11 = vmul.f32 %v4508_v20, %v7232_v38  ;;  %v7234_v55 = vld [vmem:[#allocation12_spill] sm:$0xff]  ;;  %v7238_v58 = vld [vmem:[#allocation14_spill] sm:$0xff]  ;;  %vm1221_vm12 = vcmp.gt.s32.totalorder %v4664_v62, 0  ;;  %vm1231_vm13 = vcmp.lt.s32.totalorder %v4664_v62, 17 }
 0x135   : > { %7226 = vst [vmem:[#allocation9_spill] sm:$0xff] %v4757_v7  ;;  %7228 = vst [vmem:[#allocation10_spill] sm:$0xff] %v4761_v4  ;;  %v1115_v14 = vadd.f32 %v4732_v44, %v1078_v10  ;;  %v896_v23 = vadd.f32 %v866_v57, %v4568_v45  ;;  %v4782_v12 = vmul.f32 %v4494_v22, %v7234_v55  ;;  %v7240_v4 = vld [vmem:[#allocation15_spill] sm:$0xff]  ;;  %v7242_v55 = vld [vmem:[#allocation17_spill] sm:$0xff]  ;;  %vm1220_vm15 = vcmp.gt.s32.totalorder %v4656_v39, 0 }
 0x136   : > { %7231 = vst [vmem:[#allocation43_spill] sm:$0xff] %v7230_v13  ;;  %7233 = vst [vmem:[#allocation11_spill] sm:$0xff] %v4778_v11  ;;  %v4786_v7 = vmul.f32 %v4508_v20, %v7236_v42  ;;  %v4790_v10 = vmul.f32 %v4494_v22, %v7238_v58  ;;  %v767_v45 = vpop.permute.xlu1 %766  ;;  %v967_v57 = vpop.permute.xlu0 %966  ;;  %v4794_v9 = vmul.f32 %v4508_v20, %v7240_v4  ;;  %v7244_v42 = vld [vmem:[#allocation18_spill] sm:$0xff]  ;;  %v7246_v58 = vld [vmem:[#allocation20_spill] sm:$0xff]  ;;  %vm1230_vm0 = vcmp.lt.s32.totalorder %v4656_v39, 17 }
 0x137   : > { %7235 = vst [vmem:[#allocation12_spill] sm:$0xff] %v4782_v12  ;;  %v1145_v38 = vmax.f32 %v1115_v14, 0.0  ;;  %v1080_v11 = vadd.f32 %v1050_v21, %v896_v23  ;;  %v868_v48 = vmul.f32 %v4508_v20, %v767_v45  ;;  %v4799_v12 = vmul.f32 %v4494_v22, %v7242_v55  ;;  %v7248_v55 = vld [vmem:[#allocation21_spill] sm:$0xff]  ;;  %vm4891_vm11 = vmand %vm1218_vm5, %vm1228_vm6 }
 0x138   : > { %7237 = vst [vmem:[#allocation13_spill] sm:$0xff] %v4786_v7  ;;  %7239 = vst [vmem:[#allocation14_spill] sm:$0xff] %v4790_v10  ;;  %v4803_v7 = vmul.f32 %v4508_v20, %v7244_v42  ;;  %v4807_v10 = vmul.f32 %v4494_v22, %v7246_v58  ;;  %v863_v4 = vmul.f32 %v4508_v20, %v4636_v1  ;;  %v7250_v1 = vld [vmem:[#allocation23_spill] sm:$0xff] }
 0x139   : > { %7241 = vst [vmem:[#allocation15_spill] sm:$0xff] %v4794_v9  ;;  %7243 = vst [vmem:[#allocation17_spill] sm:$0xff] %v4799_v12  ;;  %v1175_v21 = vmin.f32 %v1145_v38, 6.0  ;;  %v1052_v14 = vmul.f32 %v4512_v19, %v951_v47  ;;  %v1117_v23 = vadd.f32 %v4732_v44, %v1080_v11  ;;  %v898_v45 = vadd.f32 %v868_v48, %v4580_v35  ;;  %v2314_v35 = vld [vmem:[%s7076_s5] sm:$0xf] }
 0x13a   : > { %7245 = vst [vmem:[#allocation18_spill] sm:$0xff] %v4803_v7  ;;  %7247 = vst [vmem:[#allocation20_spill] sm:$0xff] %v4807_v10  ;;  %v4822_v42 = vmul.f32 %v4508_v20, %v7248_v55  ;;  %v4826_v58 = vmul.f32 %v4494_v22, %v7250_v1  ;;  %v7252_v7 = vld [vmem:[#allocation24_spill] sm:$0xff]  ;;  %v4834_v38 = vmul.f32 %v4494_v22, %v4539_v16  ;;  %v775_v47 = vpop.permute.xlu1 %774  ;;  %v975_v11 = vpop.permute.xlu0 %974 }
 0x13b   : > { %v4830_v10 = vmul.f32 %v4508_v20, %v7252_v7  ;;  %v1375_v48 = vsel %vm1252_vm7, %v1175_v21, 0.0  ;;  %v1147_v55 = vmax.f32 %v1117_v23, 0.0  ;;  %v870_v1 = vmul.f32 %v4508_v20, %v775_v47  ;;  %v7256_v22 = vld [vmem:[#allocation28_spill] sm:$0xff]  ;;  %vm4915_vm14 = vmand %vm1219_vm8, %vm1229_vm9 }
 0x13c   : > { %7249 = vst [vmem:[#allocation21_spill] sm:$0xff] %v4822_v42  ;;  %7251 = vst [vmem:[#allocation23_spill] sm:$0xff] %v4826_v58  ;;  %v1082_v42 = vadd.f32 %v1052_v14, %v898_v45  ;;  %v7255_v58 = vld [vmem:[#allocation26_spill] sm:$0xff]  ;;  %v4846_v7 = vmul.f32 %v4508_v20, %v4596_v33  ;;  %v4849_v16 = vadd.f32 %v863_v4, %v4693_v51  ;;  %v7259_v33 = vld [vmem:[#allocation29_spill] sm:$0xff]  ;;  %vm1222_vm8 = vcmp.gt.s32.totalorder %v4667_v63, 0 }
 0x13d   : > { %7253 = vst [vmem:[#allocation24_spill] sm:$0xff] %v4830_v10  ;;  %7254 = vst [vmem:[#allocation44_spill] sm:$0xff] %v4834_v38  ;;  %v4842_v9 = vmul.f32 %v4512_v19, %v7255_v58  ;;  %v4852_v10 = vmul.f32 %v7256_v22, %v1375_v48  ;;  %v1177_v21 = vmin.f32 %v1147_v55, 6.0  ;;  %v1054_v14 = vmul.f32 %v4512_v19, %v959_v8  ;;  %v7262_v55 = vld [vmem:[#allocation27_spill] sm:$0xff] }
 0x13e   : > { %v1119_v23 = vadd.f32 %v4732_v44, %v1082_v42  ;;  %v4861_v45 = vrot.slane %v2314_v35, %v4472_v27  ;;  %v4864_v58 = vmul.f32 %v7259_v33, %v1375_v48  ;;  %v4867_v51 = vmul.f32 %v4572_v41, %v1375_v48  ;;  %v783_v38 = vpop.permute.xlu1 %782  ;;  %v983_v12 = vpop.permute.xlu0 %982  ;;  %vm1258_vm1 = vmand %vm4915_vm14, %vm7124_vm2 }
 0x13f   : > { %7257 = vst [vmem:[#allocation26_spill] sm:$0xff] %v4852_v10  ;;  %v1056_v4 = vmul.f32 %v4512_v19, %v967_v57  ;;  %v900_v47 = vadd.f32 %v870_v1, %v4582_v43  ;;  %v4872_v2 = vmul.f32 %v7262_v55, %v1375_v48  ;;  %v4875_v8 = vmul.f32 %v4564_v31, %v1375_v48  ;;  %vm1293_vm5 = vmand %vm4915_vm14, %vm1281_vm3 }
 0x140   : > { %7258 = vst [vmem:[#allocation28_spill] sm:$0xff] %v4861_v45  ;;  %7260 = vst [vmem:[#allocation29_spill] sm:$0xff] %v4864_v58  ;;  %v1377_v27 = vsel %vm1287_vm10, %v1177_v21, 0.0  ;;  %v1149_v42 = vmax.f32 %v1119_v23, 0.0  ;;  %v7265_v45 = vld [vmem:[#allocation30_spill] sm:$0xff]  ;;  %v7269_v57 = vmov 0  ;;  %v872_v23 = vmul.f32 %v4508_v20, %v783_v38 }
 0x141   : > { %7261 = vst [vmem:[#allocation45_spill] sm:$0xff] %v4867_v51  ;;  %7263 = vst [vmem:[#allocation27_spill] sm:$0xff] %v4872_v2  ;;  %v4879_v46 = vmul.f32 %v7265_v45, %v1375_v48  ;;  %v4882_v54 = vmul.f32 %v7256_v22, %v1377_v27  ;;  %v4885_v43 = vmul.f32 %v7259_v33, %v1377_v27  ;;  %v7270_v57 = vsel %vm4891_vm11, 4294967295, %v7269_v57 }
 0x142   : > { %7264 = vst [vmem:[#allocation46_spill] sm:$0xff] %v4875_v8  ;;  %7271 = vst [vmem:[#allocation49_spill] sm:$0xff] %v7270_v57  ;;  %v4896_v1 = vmul.f32 %v4572_v41, %v1377_v27  ;;  %v1179_v21 = vmin.f32 %v1149_v42, 6.0  ;;  %v1084_v48 = vadd.f32 %v1054_v14, %v900_v47  ;;  %v4902_v2 = vmul.f32 %v7265_v45, %v1377_v27  ;;  %v791_v10 = vpop.permute.xlu1 %790  ;;  %v991_v13 = vpop.permute.xlu0 %990  ;;  %v7277_v47 = vld [vmem:[#allocation31_spill] sm:$0xff] }
 0x143   : > { %7266 = vst [vmem:[#allocation30_spill] sm:$0xff] %v4879_v46  ;;  %7267 = vst [vmem:[#allocation47_spill] sm:$0xff] %v4882_v54  ;;  %v1058_v17 = vmul.f32 %v4512_v19, %v975_v11  ;;  %v7274_v38 = vmov 0  ;;  %v902_v27 = vadd.f32 %v872_v23, %v7277_v47  ;;  %v874_v42 = vmul.f32 %v4508_v20, %v791_v10 }
 0x144   : > { %7268 = vst [vmem:[#allocation48_spill] sm:$0xff] %v4885_v43  ;;  %7272 = vst [vmem:[#allocation50_spill] sm:$0xff] %v4896_v1  ;;  %v4909_v14 = vsel %vm4891_vm11, %v1179_v21, 0.0  ;;  %v7275_v38 = vsel %vm4915_vm14, 4294967295, %v7274_v38  ;;  %v1121_v11 = vadd.f32 %v4732_v44, %v1084_v48  ;;  %v1060_v35 = vmul.f32 %v4512_v19, %v983_v12 }
 0x145   : > { %7273 = vst [vmem:[#allocation51_spill] sm:$0xff] %v4902_v2  ;;  %7276 = vst [vmem:[#allocation52_spill] sm:$0xff] %v7275_v38  ;;  %v1086_v48 = vadd.f32 %v1056_v4, %v902_v27  ;;  %v904_v23 = vadd.f32 %v874_v42, %v4640_v56  ;;  %v1062_v10 = vmul.f32 %v4512_v19, %v991_v13  ;;  %vm1232_vm9 = vcmp.lt.s32.totalorder %v4667_v63, 17 }
 0x146   : > { %v1151_v58 = vmax.f32 %v1121_v11, 0.0  ;;  %v799_v21 = vpop.permute.xlu1 %798  ;;  %v999_v8 = vpop.permute.xlu0 %998  ;;  %v4938_v12 = vmul.f32 %v4564_v31, %v4909_v14  ;;  %v4942_v4 = vmul.f32 %v7256_v22, %v4909_v14  ;;  %v4948_v47 = vmul.f32 %v7262_v55, %v4909_v14  ;;  %vm4992_vm6 = vmand %vm1221_vm12, %vm1231_vm13 }
 0x147   : > { %v1123_v11 = vadd.f32 %v4732_v44, %v1086_v48  ;;  %v1088_v27 = vadd.f32 %v1058_v17, %v904_v23  ;;  %v876_v42 = vmul.f32 %v4508_v20, %v799_v21  ;;  %v4952_v13 = vmul.f32 %v7259_v33, %v4909_v14  ;;  %vm5011_vm7 = vmand %vm1220_vm15, %vm1230_vm0 }
 0x148   : > { %7278 = vst [vmem:[#allocation31_spill] sm:$0xff] %v4938_v12  ;;  %v1181_v56 = vmin.f32 %v1151_v58, 6.0  ;;  %7279 = vst [vmem:[#allocation53_spill] sm:$0xff] %v4948_v47  ;;  %v4956_v51 = vmul.f32 %v4572_v41, %v4909_v14  ;;  %v4960_v58 = vmul.f32 %v7281_v36, %v4909_v14  ;;  %v1064_v57 = vmul.f32 %v4512_v19, %v999_v8 }
 0x149   : > { %v1153_v17 = vmax.f32 %v1123_v11, 0.0  ;;  %v1125_v21 = vadd.f32 %v4732_v44, %v1088_v27  ;;  %v906_v23 = vadd.f32 %v876_v42, %v4649_v60  ;;  %v7286_v27 = vld [vmem:[#allocation33_spill] sm:$0xff]  ;;  %v5022_v39 = vmul.f32 %v4647_v59, %v4909_v14  ;;  %vm1264_vm10 = vmand %vm4992_vm6, %vm7124_vm2 }
 0x14a   : > { %7280 = vst [vmem:[#allocation54_spill] sm:$0xff] %v4956_v51  ;;  %7282 = vst [vmem:[#allocation32_spill] sm:$0xff] %v4960_v58  ;;  %v4962_v48 = vsel %vm1258_vm1, %v1181_v56, 0.0  ;;  %v807_v56 = vpop.permute.xlu1 %806  ;;  %v1007_v47 = vpop.permute.xlu0 %1006  ;;  %v4981_v60 = vmul.f32 %v7286_v27, %v4909_v14  ;;  %vm1223_vm12 = vcmp.gt.s32.totalorder %v4676_v32, 0  ;;  %vm1233_vm13 = vcmp.lt.s32.totalorder %v4676_v32, 17 }
 0x14b   : > { %7283 = vst [vmem:[#allocation55_spill] sm:$0xff] %v4962_v48  ;;  %v4968_v2 = vmul.f32 %v7256_v22, %v4962_v48  ;;  %v4972_v46 = vmul.f32 %v7259_v33, %v4962_v48  ;;  %v1183_v42 = vmin.f32 %v1153_v17, 6.0  ;;  %v1155_v12 = vmax.f32 %v1125_v21, 0.0  ;;  %7295 = vst [vmem:[#allocation61_spill] sm:$0xff] %v5022_v39 }
 0x14c   : > { %7287 = vst [vmem:[#allocation33_spill] sm:$0xff] %v4981_v60  ;;  %v1090_v1 = vadd.f32 %v1060_v35, %v906_v23  ;;  %v878_v43 = vmul.f32 %v4508_v20, %v807_v56  ;;  %vm1299_vm15 = vmand %vm4992_vm6, %vm1281_vm3  ;;  %v5137_v32 = vmul.f32 %v7281_v36, %v4962_v48 }
 0x14d   : > { %7284 = vst [vmem:[#allocation56_spill] sm:$0xff] %v4968_v2  ;;  %7285 = vst [vmem:[#allocation57_spill] sm:$0xff] %v4972_v46  ;;  %v1383_v15 = vsel %vm1293_vm5, %v1183_v42, 0.0  ;;  %v1185_v6 = vmin.f32 %v1155_v12, 6.0  ;;  %v5039_v42 = vmul.f32 %v7265_v45, %v4909_v14  ;;  %vm1225_vm5 = vcmp.gt.s32.totalorder %v4700_v53, 0 }
 0x14e   : > { %v1127_v35 = vadd.f32 %v4732_v44, %v1090_v1  ;;  %v908_v8 = vadd.f32 %v878_v43, %v4651_v61  ;;  %v4999_v21 = vmul.f32 %v7256_v22, %v1383_v15  ;;  %v5002_v23 = vmul.f32 %v7259_v33, %v1383_v15  ;;  %v815_v1 = vpop.permute.xlu1 %814  ;;  %v1015_v56 = vpop.permute.xlu0 %1014  ;;  %vm5108_vm0 = vmand %vm1222_vm8, %vm1232_vm9  ;;  %7314 = vst [vmem:[#allocation76_spill] sm:$0xff] %v5137_v32 }
 0x14f   : > { %v5005_v12 = vmul.f32 %v4572_v41, %v1383_v15  ;;  %v5025_v38 = vmul.f32 %v7265_v45, %v1383_v15  ;;  %v5028_v54 = vmul.f32 %v7281_v36, %v1383_v15  ;;  %7298 = vst [vmem:[#allocation64_spill] sm:$0xff] %v5039_v42  ;;  %v5043_v43 = vsel %vm5011_vm7, %v1185_v6, 0.0  ;;  %vm5120_vm1 = vmand %vm1223_vm12, %vm1233_vm13 }
 0x150   : > { %7290 = vst [vmem:[#allocation58_spill] sm:$0xff] %v4999_v21  ;;  %7291 = vst [vmem:[#allocation59_spill] sm:$0xff] %v5002_v23  ;;  %v1157_v3 = vmax.f32 %v1127_v35, 0.0  ;;  %v1066_v35 = vmul.f32 %v4512_v19, %v1007_v47  ;;  %v1092_v11 = vadd.f32 %v1062_v10, %v908_v8  ;;  %v880_v46 = vmul.f32 %v4508_v20, %v815_v1 }
 0x151   : > { %7292 = vst [vmem:[#allocation60_spill] sm:$0xff] %v5005_v12  ;;  %7296 = vst [vmem:[#allocation62_spill] sm:$0xff] %v5025_v38  ;;  %v5050_v60 = vmul.f32 %v7286_v27, %v1383_v15  ;;  %v5064_v15 = vmul.f32 %v7256_v22, %v5043_v43  ;;  %v1068_v2 = vmul.f32 %v4512_v19, %v1015_v56  ;;  %vm1235_vm8 = vcmp.lt.s32.totalorder %v4700_v53, 17 }
 0x152   : > { %7297 = vst [vmem:[#allocation63_spill] sm:$0xff] %v5028_v54  ;;  %7299 = vst [vmem:[#allocation65_spill] sm:$0xff] %v5043_v43  ;;  %v1187_v61 = vmin.f32 %v1157_v3, 6.0  ;;  %v823_v58 = vpop.permute.xlu1 %822  ;;  %v1023_v14 = vpop.permute.xlu0 %1022  ;;  %v1129_v6 = vadd.f32 %v4732_v44, %v1092_v11  ;;  %v910_v3 = vadd.f32 %v880_v46, %v4658_v29  ;;  %v5133_v56 = vmul.f32 %v4647_v59, %v4962_v48 }
 0x153   : > { %7300 = vst [vmem:[#allocation66_spill] sm:$0xff] %v5050_v60  ;;  %v882_v10 = vmul.f32 %v4508_v20, %v823_v58  ;;  %v1070_v8 = vmul.f32 %v4512_v19, %v1023_v14  ;;  %v5093_v14 = vmul.f32 %v4572_v41, %v5043_v43  ;;  %vm1224_vm9 = vcmp.gt.s32.totalorder %v4686_v49, 0  ;;  %vm1270_vm12 = vmand %vm5120_vm1, %vm7124_vm2 }
 0x154   : > { %v5052_v51 = vsel %vm1264_vm10, %v1187_v61, 0.0  ;;  %v5068_v61 = vmul.f32 %v7259_v33, %v5043_v43  ;;  %v1159_v47 = vmax.f32 %v1129_v6, 0.0  ;;  %v1094_v29 = vadd.f32 %v1064_v57, %v910_v3  ;;  %7313 = vst [vmem:[#allocation75_spill] sm:$0xff] %v5133_v56  ;;  %vm1305_vm2 = vmand %vm5120_vm1, %vm1281_vm3 }
 0x155   : > { %7301 = vst [vmem:[#allocation67_spill] sm:$0xff] %v5052_v51  ;;  %v5060_v1 = vmul.f32 %v7256_v22, %v5052_v51  ;;  %v912_v46 = vadd.f32 %v882_v10, %v4660_v34  ;;  %v5074_v58 = vmul.f32 %v7259_v33, %v5052_v51  ;;  %v5084_v57 = vmul.f32 %v7262_v55, %v5043_v43 }
 0x156   : > { %7303 = vst [vmem:[#allocation69_spill] sm:$0xff] %v5068_v61  ;;  %v831_v39 = vpop.permute.xlu1 %830  ;;  %v1031_v23 = vpop.permute.xlu0 %1030  ;;  %v1189_v34 = vmin.f32 %v1159_v47, 6.0  ;;  %v1131_v6 = vadd.f32 %v4732_v44, %v1094_v29  ;;  %vm1234_vm10 = vcmp.lt.s32.totalorder %v4686_v49, 17  ;;  %vm1216_vm13 = vcmp.gt.s32.totalorder %v4514_v18, 0 }
 0x157   : > { %7302 = vst [vmem:[#allocation68_spill] sm:$0xff] %v5060_v1  ;;  %7304 = vst [vmem:[#allocation70_spill] sm:$0xff] %v5074_v58  ;;  %v1096_v3 = vadd.f32 %v1066_v35, %v912_v46  ;;  %v884_v10 = vmul.f32 %v4508_v20, %v831_v39  ;;  %v1072_v11 = vmul.f32 %v4512_v19, %v1031_v23  ;;  %v7429_v46 = vld [vmem:[#allocation51_spill] sm:$0xff] }
 0x158   : > { %v1389_v51 = vsel %vm1299_vm15, %v1189_v34, 0.0  ;;  %v1161_v38 = vmax.f32 %v1131_v6, 0.0  ;;  %vm1226_vm15 = vcmp.lt.s32.totalorder %v4514_v18, 17 }
 0x159   : > { %v1133_v12 = vadd.f32 %v4732_v44, %v1096_v3  ;;  %v914_v47 = vadd.f32 %v884_v10, %v4669_v30  ;;  %v5099_v39 = vmul.f32 %v7256_v22, %v1389_v51  ;;  %v5102_v29 = vmul.f32 %v7259_v33, %v1389_v51 }
 0x15a   : > { %v839_v34 = vpop.permute.xlu1 %838  ;;  %v1039_v6 = vpop.permute.xlu0 %1038  ;;  %v5114_v3 = vmul.f32 %v4572_v41, %v1389_v51  ;;  %v1191_v10 = vmin.f32 %v1161_v38, 6.0  ;;  %v5128_v30 = vmul.f32 %v7265_v45, %v1389_v51  ;;  %v5151_v43 = vmul.f32 %v7286_v27, %v1389_v51 }
 0x15b   : > { %7305 = vst [vmem:[#allocation71_spill] sm:$0xff] %v5099_v39  ;;  %7306 = vst [vmem:[#allocation72_spill] sm:$0xff] %v5102_v29  ;;  %v1163_v63 = vmax.f32 %v1133_v12, 0.0  ;;  %v5140_v12 = vmul.f32 %v7281_v36, %v1389_v51  ;;  %v1098_v58 = vadd.f32 %v1068_v2, %v914_v47 }
 0x15c   : > { %7309 = vst [vmem:[#allocation73_spill] sm:$0xff] %v5114_v3  ;;  %7312 = vst [vmem:[#allocation74_spill] sm:$0xff] %v5128_v30  ;;  %v5144_v23 = vsel %vm5108_vm0, %v1191_v10, 0.0  ;;  %v886_v10 = vmul.f32 %v4508_v20, %v839_v34 }
 0x15d   : > { %7315 = vst [vmem:[#allocation77_spill] sm:$0xff] %v5140_v12  ;;  %7316 = vst [vmem:[#allocation78_spill] sm:$0xff] %v5144_v23  ;;  %v1193_v21 = vmin.f32 %v1163_v63, 6.0  ;;  %v1135_v47 = vadd.f32 %v4732_v44, %v1098_v58  ;;  %v5163_v1 = vmul.f32 %v7256_v22, %v5144_v23  ;;  %v5170_v34 = vmul.f32 %v7259_v33, %v5144_v23 }
 0x15e   : > { %7317 = vst [vmem:[#allocation79_spill] sm:$0xff] %v5151_v43  ;;  %v847_v63 = vpop.permute.xlu1 %846  ;;  %v916_v29 = vadd.f32 %v886_v10, %v4671_v37  ;;  %v7319_v10 = vld [vmem:[#allocation25_spill] sm:$0xff] }
 0x15f   : > { %v888_v60 = vmul.f32 %v4508_v20, %v847_v63  ;;  %v342_v38 = vpop.permute.xlu0 %341  ;;  %v5173_v58 = vsel %vm1270_vm12, %v1193_v21, 0.0  ;;  %v1165_v63 = vmax.f32 %v1135_v47, 0.0  ;;  %v5186_v21 = vmul.f32 %v7262_v55, %v5144_v23 }
 0x160   : > { %v493_v39 = vmul.f32 %v4487_v26, %v342_v38  ;;  %7318 = vst [vmem:[#allocation80_spill] sm:$0xff] %v5173_v58  ;;  %v1100_v37 = vadd.f32 %v1070_v8, %v916_v29  ;;  %v1074_v38 = vmul.f32 %v4512_v19, %v1039_v6  ;;  %v5194_v29 = vmul.f32 %v4572_v41, %v5144_v23 }
 0x161   : > { %v918_v3 = vadd.f32 %v888_v60, %v4673_v5  ;;  %v1195_v5 = vmin.f32 %v1165_v63, 6.0 }
 0x162   : > { %v707_v51 = vadd.f32 %v7319_v10, %v493_v39  ;;  %v855_v2 = vpop.permute.xlu1 %854  ;;  %v1137_v12 = vadd.f32 %v4732_v44, %v1100_v37  ;;  %v5198_v39 = vmul.f32 %v7256_v22, %v5173_v58  ;;  %v7325_v10 = vmov 0 }
 0x163   : > { %v1102_v60 = vadd.f32 %v1072_v11, %v918_v3  ;;  %v890_v47 = vmul.f32 %v4508_v20, %v855_v2  ;;  %v347_v30 = vpop.permute.xlu0 %346  ;;  %v1395_v6 = vsel %vm1305_vm2, %v1195_v5, 0.0  ;;  %v5204_v3 = vmul.f32 %v7259_v33, %v5173_v58  ;;  %vm5219_vm2 = vmand %vm1225_vm5, %vm1235_vm8 }
 0x164   : > { %7320 = vst [vmem:[#allocation25_spill] sm:$0xff] %v5198_v39  ;;  %v891_v20 = vadd.f32 %v4846_v7, %v707_v51  ;;  %v5207_v2 = vmul.f32 %v7256_v22, %v1395_v6  ;;  %v5210_v63 = vmul.f32 %v7259_v33, %v1395_v6  ;;  %v5213_v37 = vmul.f32 %v4572_v41, %v1395_v6  ;;  %vm5239_vm5 = vmand %vm1224_vm9, %vm1234_vm10 }
 0x165   : > { %v1139_v11 = vadd.f32 %v4732_v44, %v1102_v60  ;;  %7321 = vst [vmem:[#allocation81_spill] sm:$0xff] %v5204_v3  ;;  %v7326_v10 = vsel %vm5219_vm2, 4294967295, %v7325_v10  ;;  %v5225_v7 = vmul.f32 %v7262_v55, %v5173_v58  ;;  %v1167_v51 = vmax.f32 %v1137_v12, 0.0  ;;  %vm5273_vm9 = vmand %vm1216_vm13, %vm1226_vm15 }
 0x166   : > { %7322 = vst [vmem:[#allocation82_spill] sm:$0xff] %v5207_v2  ;;  %7323 = vst [vmem:[#allocation83_spill] sm:$0xff] %v5210_v63  ;;  %v920_v60 = vadd.f32 %v890_v47, %v4678_v25  ;;  %v494_v8 = vmul.f32 %v4487_v26, %v347_v30  ;;  %v5230_v54 = vmul.f32 %v7265_v45, %v1395_v6  ;;  %v7331_v58 = vmov 0 }
 0x167   : > { %7324 = vst [vmem:[#allocation84_spill] sm:$0xff] %v5213_v37  ;;  %7327 = vst [vmem:[#allocation85_spill] sm:$0xff] %v7326_v10  ;;  %v1169_v5 = vmax.f32 %v1139_v11, 0.0  ;;  %v927_v43 = vpop.permute.xlu1 %926  ;;  %v362_v23 = vpop.permute.xlu0 %361  ;;  %v5233_v53 = vmul.f32 %v7281_v36, %v1395_v6  ;;  %v7332_v58 = vsel %vm5239_vm5, 4294967295, %v7331_v58  ;;  %v1197_v12 = vmin.f32 %v1167_v51, 6.0 }
 0x168   : > { %7328 = vst [vmem:[#allocation86_spill] sm:$0xff] %v5225_v7  ;;  %7329 = vst [vmem:[#allocation87_spill] sm:$0xff] %v5230_v54  ;;  %vm7334_vm8 = vcmp.gt.s32.totalorder %v4463_v24, 0  ;;  %v1075_v49 = vadd.f32 %v4842_v9, %v891_v20  ;;  %v5259_v51 = vmul.f32 %v7286_v27, %v1395_v6  ;;  %v1104_v39 = vadd.f32 %v1074_v38, %v920_v60 }
 0x169   : > { %7330 = vst [vmem:[#allocation88_spill] sm:$0xff] %v5233_v53  ;;  %7333 = vst [vmem:[#allocation89_spill] sm:$0xff] %v7332_v58  ;;  %v1199_v11 = vmin.f32 %v1169_v5, 6.0  ;;  %v1397_v48 = vsel %vm5239_vm5, %v1197_v12, 0.0  ;;  %v708_v5 = vadd.f32 %v4682_v40, %v494_v8  ;;  %v497_v38 = vmul.f32 %v4487_v26, %v362_v23 }
 0x16a   : > { %vm5249_vm12 = vmand %vm5219_vm2, %vm7334_vm8  ;;  %7337 = vst [vmem:[#allocation90_spill] sm:$0xff] %v5259_v51  ;;  %v1112_v7 = vadd.f32 %v4732_v44, %v1075_v49  ;;  %v5279_v40 = vmul.f32 %v4564_v31, %v1397_v48  ;;  %v5282_v8 = vmul.f32 %v4572_v41, %v1397_v48  ;;  %v1046_v60 = vmul.f32 %v4512_v19, %v927_v43 }
 0x16b   : > { %v931_v9 = vpop.permute.xlu1 %930  ;;  %v372_v20 = vpop.permute.xlu0 %371  ;;  %v1399_v30 = vsel %vm5249_vm12, %v1199_v11, 0.0  ;;  %v5287_v47 = vmul.f32 %v7265_v45, %v1397_v48  ;;  %v5290_v18 = vmul.f32 %v4647_v59, %v1397_v48  ;;  %v5293_v11 = vmul.f32 %v7281_v36, %v1397_v48  ;;  %vm7347_vm10 = vmmov %vm7334_vm8 }
 0x16c   : > { %7340 = vst [vmem:[#allocation91_spill] sm:$0xff] %v5279_v40  ;;  %7341 = vst [vmem:[#allocation92_spill] sm:$0xff] %v5282_v8  ;;  %v1142_v23 = vmax.f32 %v1112_v7, 0.0  ;;  %v5296_v49 = vmul.f32 %v7286_v27, %v1397_v48  ;;  %v5299_v56 = vmul.f32 %v4647_v59, %v1399_v30  ;;  %v1141_v43 = vadd.f32 %v4732_v44, %v1104_v39 }
 0x16d   : > { %7342 = vst [vmem:[#allocation93_spill] sm:$0xff] %v5287_v47  ;;  %7343 = vst [vmem:[#allocation94_spill] sm:$0xff] %v5290_v18  ;;  %v892_v42 = vadd.f32 %v4690_v50, %v708_v5  ;;  %v5308_v18 = vmul.f32 %v7281_v36, %v1399_v30  ;;  %v711_v48 = vadd.f32 %v4704_v0, %v497_v38  ;;  %vm1494_vm8 = vcmask 1046528  }
 0x16e   : > { %7344 = vst [vmem:[#allocation95_spill] sm:$0xff] %v5293_v11  ;;  %7345 = vst [vmem:[#allocation96_spill] sm:$0xff] %v5296_v49  ;;  %v1172_v7 = vmin.f32 %v1142_v23, 6.0  ;;  %v1047_v49 = vmul.f32 %v4512_v19, %v931_v9  ;;  %v499_v39 = vmul.f32 %v4487_v26, %v372_v20  ;;  %vm1619_vm12 = vcmask 1045504  }
 0x16f   : > { %7346 = vst [vmem:[#allocation97_spill] sm:$0xff] %v5299_v56  ;;  %vm1249_vm13 = vmand %vm5273_vm9, %vm7347_vm10  ;;  %v939_v25 = vpop.permute.xlu1 %938  ;;  %v382_v12 = vpop.permute.xlu0 %381  ;;  %v1171_v56 = vmax.f32 %v1141_v43, 0.0  ;;  %v1076_v54 = vadd.f32 %v1046_v60, %v892_v42  ;;  %v895_v9 = vadd.f32 %v4697_v52, %v711_v48 }
 0x170   : > { %7348 = vst [vmem:[#allocation98_spill] sm:$0xff] %v5308_v18  ;;  %v1049_v37 = vmul.f32 %v4512_v19, %v939_v25  ;;  %vm5319_vm15 = vmand %vm5219_vm2, %vm1281_vm3  ;;  %v1372_v5 = vsel %vm1249_vm13, %v1172_v7, 0.0  ;;  %v1077_v0 = vadd.f32 %v1047_v49, %v4849_v16  ;;  %v501_v38 = vmul.f32 %v4487_v26, %v382_v12  ;;  %v7351_v7 = vld [vmem:[#allocation35_spill] sm:$0xff] }
 0x171   : > { %v1201_v20 = vmin.f32 %v1171_v56, 6.0  ;;  %v1113_v25 = vadd.f32 %v4732_v44, %v1076_v54  ;;  %v1446_v43 = vmul.f32 %v7256_v22, %v1372_v5  ;;  %v713_v53 = vadd.f32 %v7351_v7, %v499_v39  ;;  %vm5344_vm10 = vmand %vm5273_vm9, %vm1281_vm3  ;;  %v7355_v39 = vld [vmem:[#allocation34_spill] sm:$0xff] }
 0x172   : > { %v1114_v51 = vadd.f32 %v4732_v44, %v1077_v0  ;;  %v1079_v16 = vadd.f32 %v1049_v37, %v895_v9  ;;  %v5333_v49 = vmul.f32 %v7286_v27, %v1399_v30  ;;  %v1410_v48 = vmul.f32 %v7262_v55, %v1372_v5  ;;  %vm1290_vm13 = vmand %vm4891_vm11, %vm1281_vm3 }
 0x173   : > { %v947_v60 = vpop.permute.xlu1 %946  ;;  %v392_v23 = vpop.permute.xlu0 %391  ;;  %v1401_v54 = vsel %vm5319_vm15, %v1201_v20, 0.0  ;;  %v1143_v56 = vmax.f32 %v1113_v25, 0.0  ;;  %v1571_v42 = vmul.f32 %v7259_v33, %v1372_v5  ;;  %v897_v50 = vadd.f32 %v7355_v39, %v713_v53 }
 0x174   : > { %7352 = vst [vmem:[#allocation35_spill] sm:$0xff] %v5333_v49  ;;  %v1144_v47 = vmax.f32 %v1114_v51, 0.0  ;;  %v1116_v30 = vadd.f32 %v4732_v44, %v1079_v16  ;;  %v1051_v9 = vmul.f32 %v4512_v19, %v947_v60  ;;  %v5354_v51 = vmul.f32 %v7281_v36, %v1401_v54 }
 0x175   : > { %v1173_v0 = vmin.f32 %v1143_v56, 6.0  ;;  %v1495_v5 = vrot.slane %v1446_v43, 1  ;;  %v7357_v56 = vld [vmem:[#allocation37_spill] sm:$0xff]  ;;  %v5358_v12 = vmul.f32 %v7286_v27, %v1401_v54  ;;  %v1620_v11 = vrot.slane %v1571_v42, 2 }
 0x176   : > { %7356 = vst [vmem:[#allocation34_spill] sm:$0xff] %v5354_v51  ;;  %v1174_v7 = vmin.f32 %v1144_v47, 6.0  ;;  %v715_v52 = vadd.f32 %v7357_v56, %v501_v38  ;;  %v1146_v49 = vmax.f32 %v1116_v30, 0.0  ;;  %v1081_v53 = vadd.f32 %v1051_v9, %v897_v50 }
 0x177   : > { %v955_v20 = vpop.permute.xlu1 %954  ;;  %v5351_v25 = vpop.permute.xlu0 %401  ;;  %7358 = vst [vmem:[#allocation37_spill] sm:$0xff] %v5358_v12  ;;  %v1373_v16 = vsel %vm5273_vm9, %v1173_v0, 0.0  ;;  %v503_v9 = vmul.f32 %v4487_v26, %v392_v23 }
 0x178   : > { %v1447_v60 = vmul.f32 %v7256_v22, %v1373_v16  ;;  %v1572_v39 = vmul.f32 %v7259_v33, %v1373_v16  ;;  %v1374_v18 = vsel %vm5344_vm10, %v1174_v7, 0.0  ;;  %v1176_v43 = vmin.f32 %v1146_v49, 6.0 }
 0x179   : > { %v1448_v47 = vmul.f32 %v7256_v22, %v1374_v18  ;;  %v1573_v38 = vmul.f32 %v7259_v33, %v1374_v18  ;;  %v1118_v54 = vadd.f32 %v4732_v44, %v1081_v53  ;;  %v1411_v8 = vmul.f32 %v7262_v55, %v1373_v16 }
 0x17a   : > { %v1496_v30 = vrot.slane %v1447_v60, 1  ;;  %v1621_v50 = vrot.slane %v1572_v39, 2  ;;  %v1376_v37 = vsel %vm4768_vm4, %v1176_v43, 0.0  ;;  %v1053_v53 = vmul.f32 %v4512_v19, %v955_v20 }
 0x17b   : > { %v963_v56 = vpop.permute.xlu1 %962  ;;  %v412_v6 = vpop.permute.xlu0 %411  ;;  %v1498_v10 = vrot.slane %v1448_v47, 1  ;;  %v1623_v42 = vrot.slane %v1573_v38, 2  ;;  %v1148_v7 = vmax.f32 %v1118_v54, 0.0  ;;  %v1450_v49 = vmul.f32 %v7256_v22, %v1376_v37 }
 0x17c   : > { %v1497_v18 = vsel %vm1494_vm8, %v1495_v5, %v1496_v30  ;;  %v1622_v60 = vsel %vm1619_vm12, %v1620_v11, %v1621_v50  ;;  %v1575_v23 = vmul.f32 %v7259_v33, %v1376_v37  ;;  %v1413_v43 = vmul.f32 %v7262_v55, %v1376_v37 }
 0x17d   : > { %v1551_v63 = vadd.f32 %v1497_v18, %v1410_v48  ;;  %v1499_v39 = vsel %vm1494_vm8, %v1496_v30, %v1498_v10  ;;  %v1501_v54 = vrot.slane %v1450_v49, 1  ;;  %v1733_v16 = vmul.f32 %v4572_v41, %v1376_v37  ;;  %v7360_v18 = vld [vmem:[#allocation26_spill] sm:$0xff]  ;;  %v7362_v30 = vld [vmem:[#allocation47_spill] sm:$0xff] }
 0x17e   : > { %v1552_v40 = vadd.f32 %v1499_v39, %v1411_v8  ;;  %v1624_v0 = vsel %vm1619_vm12, %v1621_v50, %v1623_v42  ;;  %v1626_v51 = vrot.slane %v1575_v23, 2  ;;  %v1178_v20 = vmin.f32 %v1148_v7, 6.0  ;;  %v7367_v23 = vld [vmem:[#allocation46_spill] sm:$0xff] }
 0x17f   : > { %v971_v47 = vpop.permute.xlu1 %970  ;;  %v422_v38 = vpop.permute.xlu0 %421  ;;  %v1676_v5 = vadd.f32 %v1622_v60, %v1551_v63  ;;  %v7361_v11 = vrot.slane %v7360_v18, 1  ;;  %v7363_v2 = vrot.slane %v7362_v30, 1  ;;  %v1781_v8 = vrot.slane %v1733_v16, 1  ;;  %v7366_v63 = vld [vmem:[#allocation27_spill] sm:$0xff]  ;;  %v7369_v16 = vld [vmem:[#allocation36_spill] sm:$0xff] }
 0x180   : > { %v1677_v48 = vadd.f32 %v1624_v0, %v1552_v40  ;;  %vm7364_vm4 = vcmp.gt.s32.totalorder %v4463_v24, 0  ;;  %v1697_v42 = vmul.f32 %v4564_v31, %v1376_v37  ;;  %v5396_v0 = vmul.f32 %v7265_v45, %v1376_v37 }
 0x181   : > { %v1502_v10 = vsel %vm1494_vm8, %v7361_v11, %v1501_v54  ;;  %v1504_v32 = vsel %vm1494_vm8, %v1501_v54, %v7363_v2  ;;  %vm1255_vm9 = vmand %vm4891_vm11, %vm7364_vm4  ;;  %v5400_v40 = vadd.f32 %v7367_v23, %v1676_v5  ;;  %v7368_v2 = vld [vmem:[#allocation39_spill] sm:$0xff]  ;;  %v899_v18 = vadd.f32 %v7369_v16, %v715_v52  ;;  %v7370_v11 = vld [vmem:[#allocation29_spill] sm:$0xff] }
 0x182   : > { %v1553_v60 = vadd.f32 %v1502_v10, %v7366_v63  ;;  %v1554_v50 = vadd.f32 %v1504_v32, %v1413_v43  ;;  %v717_v54 = vadd.f32 %v7368_v2, %v503_v9  ;;  %v7371_v30 = vrot.slane %v7370_v11, 2  ;;  %v7372_v32 = vld [vmem:[#allocation48_spill] sm:$0xff]  ;;  %v7374_v23 = vld [vmem:[#allocation45_spill] sm:$0xff]  ;;  %v7376_v52 = vld [vmem:[#allocation50_spill] sm:$0xff] }
 0x183   : > { %v979_v7 = vpop.permute.xlu1 %978  ;;  %v7373_v43 = vrot.slane %v7372_v32, 2  ;;  %v1713_v37 = vadd.f32 %v1697_v42, %v1677_v48  ;;  %v5410_v3 = vsel %vm1255_vm9, %v1178_v20, 0.0  ;;  %v432_v58 = vpop.permute.xlu0 %431  ;;  %v7375_v12 = vrot.slane %v7374_v23, 1  ;;  %v7381_v32 = vld [vmem:[#allocation41_spill] sm:$0xff]  ;;  %v7382_v23 = vld [vmem:[#allocation8_spill] sm:$0xff]  ;;  %vm7391_vm11 = vmmov %vm7364_vm4 }
 0x184   : > { %v1627_v10 = vsel %vm1619_vm12, %v7371_v30, %v1626_v51  ;;  %v7377_v2 = vrot.slane %v7376_v52, 1  ;;  %v1083_v20 = vadd.f32 %v1053_v53, %v899_v18  ;;  %v505_v48 = vmul.f32 %v4487_v26, %v5351_v25  ;;  %vm1261_vm15 = vmand %vm5011_vm7, %vm7391_vm11 }
 0x185   : > { %v1629_v63 = vsel %vm1619_vm12, %v1626_v51, %v7373_v43  ;;  %v5412_v39 = vadd.f32 %v1627_v10, %v1553_v60  ;;  %v5417_v9 = vsel %vm1494_vm8, %v7375_v12, %v1781_v8  ;;  %v5425_v51 = vmul.f32 %v7256_v22, %v5410_v3  ;;  %v7380_v12 = vld [vmem:[#allocation38_spill] sm:$0xff]  ;;  %vm1308_vm9 = vmand %vm5239_vm5, %vm1281_vm3 }
 0x186   : > { %v1679_v5 = vadd.f32 %v1629_v63, %v1554_v50  ;;  %v1784_v16 = vsel %vm1494_vm8, %v1781_v8, %v7377_v2  ;;  %v5431_v50 = vmul.f32 %v7259_v33, %v5410_v3  ;;  %v901_v42 = vadd.f32 %v7380_v12, %v717_v54  ;;  %v7384_v54 = vld [vmem:[#allocation40_spill] sm:$0xff]  ;;  %v7385_v12 = vld [vmem:[#allocation10_spill] sm:$0xff] }
 0x187   : > { %7378 = vst [vmem:[#allocation43_spill] sm:$0xff] %v5425_v51  ;;  %v987_v60 = vpop.permute.xlu1 %986  ;;  %v1055_v30 = vmul.f32 %v4512_v19, %v963_v56  ;;  %v507_v8 = vmul.f32 %v4487_v26, %v412_v6  ;;  %v1120_v10 = vadd.f32 %v4732_v44, %v1083_v20  ;;  %v719_v43 = vadd.f32 %v7381_v32, %v505_v48  ;;  %v442_v32 = vpop.permute.xlu0 %441  ;;  %v7396_v51 = vld [vmem:[#allocation53_spill] sm:$0xff] }
 0x188   : > { %7379 = vst [vmem:[#allocation26_spill] sm:$0xff] %v5431_v50  ;;  %v1057_v53 = vmul.f32 %v4512_v19, %v971_v47  ;;  %v509_v18 = vmul.f32 %v4487_v26, %v422_v38  ;;  %v5440_v25 = vadd.f32 %v1784_v16, %v1713_v37  ;;  %v511_v2 = vmul.f32 %v4487_v26, %v432_v58  ;;  %v7386_v47 = vld [vmem:[#allocation31_spill] sm:$0xff]  ;;  %v7390_v37 = vld [vmem:[#allocation9_spill] sm:$0xff] }
 0x189   : > { %v1085_v63 = vadd.f32 %v1055_v30, %v901_v42  ;;  %v721_v52 = vadd.f32 %v7382_v23, %v507_v8  ;;  %v5446_v56 = vmul.f32 %v7262_v55, %v5410_v3  ;;  %v1150_v6 = vmax.f32 %v1120_v10, 0.0  ;;  %v7389_v23 = vld [vmem:[#allocation12_spill] sm:$0xff] }
 0x18a   : > { %v903_v20 = vadd.f32 %v7384_v54, %v719_v43  ;;  %v723_v48 = vadd.f32 %v7385_v12, %v509_v18  ;;  %v5451_v11 = vadd.f32 %v7386_v47, %v1679_v5  ;;  %v1059_v8 = vmul.f32 %v4512_v19, %v979_v7  ;;  %v7388_v43 = vld [vmem:[#allocation42_spill] sm:$0xff] }
 0x18b   : > { %7383 = vst [vmem:[#allocation47_spill] sm:$0xff] %v5446_v56  ;;  %v1122_v58 = vadd.f32 %v4732_v44, %v1085_v63  ;;  %v995_v16 = vpop.permute.xlu1 %994  ;;  %v1180_v42 = vmin.f32 %v1150_v6, 6.0  ;;  %v1061_v10 = vmul.f32 %v4512_v19, %v987_v60  ;;  %v905_v18 = vadd.f32 %v7388_v43, %v721_v52 }
 0x18c   : > { %7387 = vst [vmem:[#allocation49_spill] sm:$0xff] %v5451_v11  ;;  %v1087_v30 = vadd.f32 %v1057_v53, %v903_v20  ;;  %v725_v54 = vadd.f32 %v7389_v23, %v511_v2  ;;  %v513_v12 = vmul.f32 %v4487_v26, %v442_v32  ;;  %v907_v38 = vadd.f32 %v7390_v37, %v723_v48 }
 0x18d   : > { %v1152_v5 = vmax.f32 %v1122_v58, 0.0  ;;  %v1380_v47 = vsel %vm1290_vm13, %v1180_v42, 0.0  ;;  %v1063_v63 = vmul.f32 %v4512_v19, %v995_v16  ;;  %v1089_v32 = vadd.f32 %v1059_v8, %v905_v18  ;;  %v452_v58 = vpop.permute.xlu0 %451  ;;  %v7392_v16 = vld [vmem:[#allocation14_spill] sm:$0xff] }
 0x18e   : > { %v1124_v49 = vadd.f32 %v4732_v44, %v1087_v30  ;;  %v1454_v53 = vmul.f32 %v7256_v22, %v1380_v47  ;;  %v1579_v7 = vmul.f32 %v7259_v33, %v1380_v47  ;;  %v1737_v60 = vmul.f32 %v4572_v41, %v1380_v47 }
 0x18f   : > { %v5472_v6 = vmul.f32 %v7265_v45, %v1380_v47  ;;  %v5475_v52 = vmul.f32 %v7281_v36, %v1380_v47  ;;  %v1182_v2 = vmin.f32 %v1152_v5, 6.0  ;;  %v5478_v37 = vmul.f32 %v7286_v27, %v1380_v47 }
 0x190   : > { %v1154_v20 = vmax.f32 %v1124_v49, 0.0  ;;  %v1508_v42 = vrot.slane %v1454_v53, 1  ;;  %v1633_v48 = vrot.slane %v1579_v7, 2  ;;  %v727_v30 = vadd.f32 %v7392_v16, %v513_v12  ;;  %v7395_v53 = vld [vmem:[#allocation11_spill] sm:$0xff] }
 0x191   : > { %v1788_v43 = vrot.slane %v1737_v60, 1  ;;  %v5487_v50 = vsel %vm4915_vm14, %v1182_v2, 0.0  ;;  %v1091_v8 = vadd.f32 %v1061_v10, %v907_v38  ;;  %v7394_v18 = vrot.slane %v4942_v4, 1  ;;  %vm1296_vm14 = vmand %vm5011_vm7, %vm1281_vm3 }
 0x192   : > { %v1184_v5 = vmin.f32 %v1154_v20, 6.0  ;;  %v909_v7 = vadd.f32 %v7395_v53, %v725_v54  ;;  %v515_v56 = vmul.f32 %v4487_v26, %v452_v58  ;;  %v5499_v60 = vmul.f32 %v7256_v22, %v5487_v50  ;;  %v1003_v58 = vpop.permute.xlu1 %1002  ;;  %v462_v20 = vpop.permute.xlu0 %461  ;;  %vm7409_vm7 = vmmov %vm7364_vm4 }
 0x193   : > { %v1509_v49 = vsel %vm1494_vm8, %v7394_v18, %v1508_v42  ;;  %v7399_v38 = vrot.slane %v4952_v13, 2  ;;  %v5509_v54 = vmul.f32 %v7259_v33, %v5487_v50  ;;  %v7400_v42 = vld [vmem:[#allocation54_spill] sm:$0xff]  ;;  %v1128_v18 = vadd.f32 %v4732_v44, %v1091_v8  ;;  %vm1267_vm10 = vmand %vm5108_vm0, %vm7409_vm7 }
 0x194   : > { %v1556_v11 = vadd.f32 %v1509_v49, %v7396_v51  ;;  %7397 = vst [vmem:[#allocation27_spill] sm:$0xff] %v5499_v60  ;;  %v5501_v2 = vsel %vm1261_vm15, %v1184_v5, 0.0  ;;  %v1126_v51 = vadd.f32 %v4732_v44, %v1089_v32  ;;  %v7401_v16 = vrot.slane %v7400_v42, 1 }
 0x195   : > { %7398 = vst [vmem:[#allocation46_spill] sm:$0xff] %v5501_v2  ;;  %v1634_v10 = vsel %vm1619_vm12, %v7399_v38, %v1633_v48  ;;  %v5519_v5 = vmul.f32 %v7256_v22, %v5501_v2  ;;  %v5523_v48 = vmul.f32 %v7259_v33, %v5501_v2  ;;  %v5528_v49 = vmul.f32 %v7262_v55, %v5487_v50 }
 0x196   : > { %v5515_v23 = vsel %vm1494_vm8, %v7401_v16, %v1788_v43  ;;  %v5532_v32 = vmul.f32 %v7262_v55, %v5501_v2  ;;  %v1156_v43 = vmax.f32 %v1126_v51, 0.0  ;;  %v1093_v53 = vadd.f32 %v1063_v63, %v909_v7  ;;  %v7407_v51 = vld [vmem:[#allocation13_spill] sm:$0xff]  ;;  %v1011_v2 = vpop.permute.xlu1 %1010  ;;  %v7411_v7 = vld [vmem:[#allocation20_spill] sm:$0xff] }
 0x197   : > { %7402 = vst [vmem:[#allocation39_spill] sm:$0xff] %v5519_v5  ;;  %7403 = vst [vmem:[#allocation36_spill] sm:$0xff] %v5523_v48  ;;  %v5534_v38 = vadd.f32 %v1634_v10, %v1556_v11  ;;  %v1158_v8 = vmax.f32 %v1128_v18, 0.0  ;;  %v1065_v47 = vmul.f32 %v4512_v19, %v1003_v58  ;;  %v911_v63 = vadd.f32 %v7407_v51, %v727_v30  ;;  %v7408_v16 = vld [vmem:[#allocation17_spill] sm:$0xff] }
 0x198   : > { %7404 = vst [vmem:[#allocation29_spill] sm:$0xff] %v5528_v49  ;;  %7405 = vst [vmem:[#allocation48_spill] sm:$0xff] %v5532_v32  ;;  %v1186_v49 = vmin.f32 %v1156_v43, 6.0  ;;  %v1130_v32 = vadd.f32 %v4732_v44, %v1093_v53  ;;  %v729_v60 = vadd.f32 %v7408_v16, %v515_v56  ;;  %v517_v58 = vmul.f32 %v4487_v26, %v462_v20  ;;  %v7410_v16 = vld [vmem:[#allocation15_spill] sm:$0xff] }
 0x199   : > { %7406 = vst [vmem:[#allocation45_spill] sm:$0xff] %v5534_v38  ;;  %v1188_v10 = vmin.f32 %v1158_v8, 6.0  ;;  %v1095_v18 = vadd.f32 %v1065_v47, %v911_v63  ;;  %v1067_v51 = vmul.f32 %v4512_v19, %v1011_v2  ;;  %v1836_v17 = vadd.f32 %v5417_v9, %v5400_v40 }
 0x19a   : > { %v1386_v62 = vsel %vm1296_vm14, %v1186_v49, 0.0  ;;  %v1160_v38 = vmax.f32 %v1130_v32, 0.0  ;;  %v913_v8 = vadd.f32 %v7410_v16, %v729_v60  ;;  %v7415_v11 = vrot.slane %v5064_v15, 1 }
 0x19b   : > { %v1460_v12 = vmul.f32 %v7256_v22, %v1386_v62  ;;  %v1585_v43 = vmul.f32 %v7259_v33, %v1386_v62  ;;  %v1743_v44 = vmul.f32 %v4572_v41, %v1386_v62  ;;  %v5553_v30 = vmul.f32 %v7265_v45, %v1386_v62 }
 0x19c   : > { %v5556_v53 = vmul.f32 %v7281_v36, %v1386_v62  ;;  %v5559_v56 = vmul.f32 %v7286_v27, %v1386_v62  ;;  %v5563_v47 = vsel %vm4992_vm6, %v1188_v10, 0.0  ;;  %v1190_v20 = vmin.f32 %v1160_v38, 6.0  ;;  %vm1302_vm6 = vmand %vm5108_vm0, %vm1281_vm3 }
 0x19d   : > { %v1518_v49 = vrot.slane %v1460_v12, 1  ;;  %v1643_v32 = vrot.slane %v1585_v43, 2  ;;  %v1798_v63 = vrot.slane %v1743_v44, 1  ;;  %v5572_v62 = vadd.f32 %v7411_v7, %v517_v58  ;;  %v7413_v12 = vld [vmem:[#allocation30_spill] sm:$0xff] }
 0x19e   : > { %v7412_v38 = vrot.slane %v5396_v0, 2  ;;  %v7414_v10 = vrot.slane %v7413_v12, 2  ;;  %v5587_v2 = vmul.f32 %v7256_v22, %v5563_v47  ;;  %v5591_v7 = vmul.f32 %v7259_v33, %v5563_v47 }
 0x19f   : > { %v1519_v48 = vsel %vm1494_vm8, %v7415_v11, %v1518_v49  ;;  %v5595_v58 = vsel %vm1267_vm10, %v1190_v20, 0.0  ;;  %v5600_v11 = vld [vmem:[%s7073_s2] ss:$0 sm:$0xff]  ;;  %v7419_v16 = vrot.slane %v5068_v61, 2  ;;  %v5609_v12 = vmul.f32 %v7262_v55, %v5563_v47 }
 0x1a0   : > { %v1906_v43 = vsel %vm1619_vm12, %v7414_v10, %v7412_v38  ;;  %7416 = vst [vmem:[#allocation50_spill] sm:$0xff] %v5587_v2  ;;  %7417 = vst [vmem:[#allocation38_spill] sm:$0xff] %v5591_v7  ;;  %v1132_v44 = vadd.f32 %v5600_v11, %v1095_v18  ;;  %v1560_v49 = vadd.f32 %v1519_v48, %v5084_v57  ;;  %v7422_v10 = vrot.slane %v5093_v14, 1 }
 0x1a1   : > { %7418 = vst [vmem:[#allocation41_spill] sm:$0xff] %v5595_v58  ;;  %v1644_v38 = vsel %vm1619_vm12, %v7419_v16, %v1643_v32  ;;  %7420 = vst [vmem:[#allocation8_spill] sm:$0xff] %v5609_v12  ;;  %v5613_v20 = vmul.f32 %v7256_v22, %v5595_v58  ;;  %v1097_v9 = vadd.f32 %v1067_v51, %v913_v8  ;;  %v7432_v61 = vrot.slane %v5475_v52, 1 }
 0x1a2   : > { %v5618_v60 = vsel %vm1494_vm8, %v7422_v10, %v1798_v63  ;;  %v1162_v18 = vmax.f32 %v1132_v44, 0.0  ;;  %v1960_v57 = vadd.f32 %v1906_v43, %v1836_v17  ;;  %v5624_v16 = vmul.f32 %v7259_v33, %v5595_v58  ;;  %v472_v10 = vpop.permute.xlu0 %471 }
 0x1a3   : > { %7421 = vst [vmem:[#allocation40_spill] sm:$0xff] %v5613_v20  ;;  %7423 = vst [vmem:[#allocation10_spill] sm:$0xff] %v5618_v60  ;;  %v2016_v63 = vmul.f32 %v7281_v36, %v5410_v3  ;;  %v1134_v8 = vadd.f32 %v5600_v11, %v1097_v9  ;;  %v1980_v51 = vmul.f32 %v4647_v59, %v5410_v3  ;;  %v7430_v20 = vrot.slane %v7429_v46, 2 }
 0x1a4   : > { %7424 = vst [vmem:[#allocation31_spill] sm:$0xff] %v5624_v16  ;;  %v1192_v44 = vmin.f32 %v1162_v18, 6.0  ;;  %v2140_v17 = vmul.f32 %v7286_v27, %v5410_v3  ;;  %v5637_v43 = vadd.f32 %v1644_v38, %v1560_v49  ;;  %v5641_v32 = vmul.f32 %v7262_v55, %v5595_v58 }
 0x1a5   : > { %v2064_v48 = vrot.slane %v2016_v63, 1  ;;  %v1164_v12 = vmax.f32 %v1134_v8, 0.0  ;;  %v1996_v18 = vadd.f32 %v1980_v51, %v1960_v57  ;;  %v519_v9 = vmul.f32 %v4487_v26, %v472_v10  ;;  %v7427_v57 = vld [vmem:[#allocation32_spill] sm:$0xff] }
 0x1a6   : > { %7425 = vst [vmem:[#allocation42_spill] sm:$0xff] %v5637_v43  ;;  %7426 = vst [vmem:[#allocation12_spill] sm:$0xff] %v5641_v32  ;;  %v1392_v40 = vsel %vm1302_vm6, %v1192_v44, 0.0  ;;  %v2188_v44 = vrot.slane %v2140_v17, 2  ;;  %v7428_v51 = vrot.slane %v7427_v57, 1  ;;  %v7431_v43 = vrot.slane %v5396_v0, 2  ;;  %v1019_v17 = vpop.permute.xlu1 %1018 }
 0x1a7   : > { %v1466_v7 = vmul.f32 %v7256_v22, %v1392_v40  ;;  %v1591_v2 = vmul.f32 %v7259_v33, %v1392_v40  ;;  %v1749_v60 = vmul.f32 %v4572_v41, %v1392_v40  ;;  %v5649_v49 = vmul.f32 %v7265_v45, %v1392_v40  ;;  %v7440_v0 = vld [vmem:[#allocation61_spill] sm:$0xff] }
 0x1a8   : > { %v5653_v32 = vmul.f32 %v7281_v36, %v1392_v40  ;;  %v1194_v63 = vmin.f32 %v1164_v12, 6.0  ;;  %v2066_v10 = vsel %vm1494_vm8, %v2064_v48, %v7428_v51  ;;  %v1908_v58 = vsel %vm1619_vm12, %v7431_v43, %v7430_v20  ;;  %v7434_v20 = vld [vmem:[#allocation23_spill] sm:$0xff] }
 0x1a9   : > { %v1528_v8 = vrot.slane %v1466_v7, 1  ;;  %v7433_v38 = vmov %v7428_v51  ;;  %v1653_v5 = vrot.slane %v1591_v2, 2  ;;  %v5669_v12 = vmul.f32 %v7286_v27, %v1392_v40  ;;  %v5690_v40 = vld [vmem:[%s7075_s4] ss:$0 sm:$0xff] }
 0x1aa   : > { %v2068_v16 = vsel %vm1494_vm8, %v7433_v38, %v7432_v61  ;;  %v5673_v7 = vsel %vm5120_vm1, %v1194_v63, 0.0  ;;  %v2120_v48 = vadd.f32 %v2066_v10, %v1996_v18  ;;  %v1808_v46 = vrot.slane %v1749_v60, 1  ;;  %v7436_v60 = vld [vmem:[#allocation33_spill] sm:$0xff]  ;;  %v7438_v63 = vld [vmem:[#allocation18_spill] sm:$0xff]  ;;  %vm7448_vm1 = vmmov %vm7364_vm4 }
 0x1ab   : > { %v5678_v52 = vmul.f32 %v7256_v22, %v5673_v7  ;;  %v5681_v43 = vadd.f32 %v7434_v20, %v519_v9  ;;  %v7435_v61 = vrot.slane %v5163_v1, 1  ;;  %v7437_v18 = vrot.slane %v7436_v60, 2  ;;  %vm1273_vm4 = vmand %vm5239_vm5, %vm7448_vm1 }
 0x1ac   : > { %vm2335_vm0 = vcmask 195584   ;;  %v1961_v22 = vadd.f32 %v1908_v58, %v5440_v25  ;;  %v915_v57 = vadd.f32 %v7438_v63, %v5572_v62  ;;  %v7439_v10 = vrot.slane %v5170_v34, 2 }
 0x1ad   : > { %v1529_v2 = vsel %vm1494_vm8, %v7435_v61, %v1528_v8  ;;  %v2190_v38 = vsel %vm1619_vm12, %v2188_v44, %v7437_v18  ;;  %v1069_v8 = vmul.f32 %v4512_v19, %v1019_v17  ;;  %v7173_v51 = vrot.slane %v5678_v52, 1 }
 0x1ae   : > { %v2244_v9 = vadd.f32 %v2190_v38, %v2120_v48  ;;  %v1654_v20 = vsel %vm1619_vm12, %v7439_v10, %v1653_v5  ;;  %v1997_v35 = vadd.f32 %v7440_v0, %v1961_v22  ;;  %v5707_v44 = vmul.f32 %v7259_v33, %v5673_v7  ;;  %v7442_v5 = vld [vmem:[#allocation25_spill] sm:$0xff] }
 0x1af   : > { %v1564_v25 = vadd.f32 %v1529_v2, %v5186_v21  ;;  %v7441_v62 = vrot.slane %v5194_v29, 1  ;;  %v1099_v17 = vadd.f32 %v1069_v8, %v915_v57  ;;  %v7443_v38 = vrot.slane %v7442_v5, 1 }
 0x1b0   : > { %v2266_v48 = vadd.f32 %v5690_v40, %v2244_v9  ;;  %v2121_v18 = vadd.f32 %v2068_v16, %v1997_v35  ;;  %v7176_v33 = vrot.slane %v5707_v44, 2  ;;  %v1698_v21 = vmul.f32 %v4564_v31, %v5410_v3  ;;  %v482_v35 = vpop.permute.xlu0 %481 }
 0x1b1   : > { %v5713_v58 = vsel %vm1494_vm8, %v7441_v62, %v1808_v46  ;;  %v1532_v0 = vsel %vm1494_vm8, %v7443_v38, %v7173_v51  ;;  %v7444_v22 = vrot.slane %v5478_v37, 2  ;;  %v7445_v46 = vrot.slane %v7436_v60, 2  ;;  %v7454_v51 = vld [vmem:[#allocation55_spill] sm:$0xff] }
 0x1b2   : > { %v2282_v2 = vmax.f32 %v2266_v48, 0.0  ;;  %v1136_v16 = vadd.f32 %v5600_v11, %v1099_v17  ;;  %v1735_v63 = vmul.f32 %v4572_v41, %v5410_v3  ;;  %v1714_v8 = vadd.f32 %v1698_v21, %v5412_v39  ;;  %v7447_v48 = vld [vmem:[#allocation86_spill] sm:$0xff]  ;;  %v7450_v39 = vld [vmem:[#allocation81_spill] sm:$0xff] }
 0x1b3   : > { %v2192_v9 = vsel %vm1619_vm12, %v7445_v46, %v7444_v22  ;;  %v1859_v10 = vmul.f32 %v7265_v45, %v5410_v3  ;;  %v2020_v62 = vmul.f32 %v7281_v36, %v5487_v50  ;;  %v1565_v5 = vadd.f32 %v1532_v0, %v7447_v48  ;;  %v7452_v46 = vld [vmem:[#allocation28_spill] sm:$0xff] }
 0x1b4   : > { %v2245_v57 = vadd.f32 %v2192_v9, %v2121_v18  ;;  %v5737_v37 = vmin.f32 %v2282_v2, 6.0  ;;  %v1166_v60 = vmax.f32 %v1136_v16, 0.0  ;;  %v1785_v38 = vrot.slane %v1735_v63, 1 }
 0x1b5   : > { %v7451_v3 = vrot.slane %v7450_v39, 2  ;;  %v521_v21 = vmul.f32 %v4487_v26, %v482_v35  ;;  %v1909_v2 = vrot.slane %v1859_v10, 2  ;;  %v7453_v16 = vrot.slane %v7400_v42, 1 }
 0x1b6   : > { %7446 = vst [vmem:[#allocation9_spill] sm:$0xff] %v5737_v37  ;;  %v2267_v17 = vadd.f32 %v5690_v40, %v2245_v57  ;;  %v2319_v0 = vmul.f32 %v7452_v46, %v5737_v37  ;;  %v1196_v9 = vmin.f32 %v1166_v60, 6.0  ;;  %v2070_v57 = vrot.slane %v2020_v62, 1  ;;  %v7463_v37 = vld [vmem:[#allocation75_spill] sm:$0xff] }
 0x1b7   : > { %v1657_v18 = vsel %vm1619_vm12, %v7451_v3, %v7176_v33  ;;  %v1787_v63 = vsel %vm1494_vm8, %v1785_v38, %v7453_v16  ;;  %v2143_v24 = vmul.f32 %v7286_v27, %v7454_v51  ;;  %v2144_v39 = vmul.f32 %v7286_v27, %v5487_v50  ;;  %v1027_v3 = vpop.permute.xlu1 %1026  ;;  %v7457_v38 = vld [vmem:[#allocation44_spill] sm:$0xff] }
 0x1b8   : > { %v2283_v48 = vmax.f32 %v2267_v17, 0.0  ;;  %v1838_v61 = vadd.f32 %v1787_v63, %v1714_v8  ;;  %v5760_v26 = vadd.f32 %v1654_v20, %v1564_v25  ;;  %v2336_v35 = vsel %vm2335_vm0, %v2319_v0, 0.0  ;;  %v7458_v17 = vld [vmem:[#allocation64_spill] sm:$0xff] }
 0x1b9   : > { %v1396_v10 = vsel %vm1273_vm4, %v1196_v9, 0.0  ;;  %v1690_v60 = vadd.f32 %v1657_v18, %v1565_v5  ;;  %2337 = vadd.xlane.f32.xlu1 %v2336_v35  ;;  %v735_v8 = vadd.f32 %v7457_v38, %v521_v21  ;;  %v7459_v16 = vrot.slane %v7458_v17, 2  ;;  %v7460_v0 = vld [vmem:[#allocation76_spill] sm:$0xff] }
 0x1ba   : > { %7455 = vst [vmem:[#allocation14_spill] sm:$0xff] %v5760_v26  ;;  %v5763_v42 = vmin.f32 %v2283_v48, 6.0  ;;  %v1753_v62 = vmul.f32 %v4572_v41, %v1396_v10  ;;  %v1710_v33 = vmul.f32 %v4564_v31, %v1396_v10  ;;  %v5772_v20 = vmul.f32 %v7265_v45, %v1396_v10 }
 0x1bb   : > { %v1911_v63 = vsel %vm1619_vm12, %v1909_v2, %v7459_v16  ;;  %v5775_v25 = vmul.f32 %v7281_v36, %v1396_v10  ;;  %v7461_v9 = vrot.slane %v7460_v0, 1  ;;  %v2193_v48 = vrot.slane %v2143_v24, 2  ;;  %v1035_v24 = vpop.permute.xlu1 %1034 }
 0x1bc   : > { %7456 = vst [vmem:[#allocation52_spill] sm:$0xff] %v5763_v42  ;;  %v1962_v5 = vadd.f32 %v1911_v63, %v1838_v61  ;;  %v2320_v18 = vmul.f32 %v7452_v46, %v5763_v42  ;;  %v2194_v35 = vrot.slane %v2144_v39, 2  ;;  %v5782_v38 = vadd.f32 %v1710_v33, %v1690_v60  ;;  %v7464_v42 = vld [vmem:[#allocation21_spill] sm:$0xff]  ;;  %v7468_v33 = vld [vmem:[#allocation24_spill] sm:$0xff] }
 0x1bd   : > { %v2071_v21 = vsel %vm1494_vm8, %v7461_v9, %v2070_v57  ;;  %v5785_v2 = vmul.f32 %v4647_v59, %v1396_v10  ;;  %v5788_v16 = vmul.f32 %v7286_v27, %v1396_v10  ;;  %v1815_v63 = vrot.slane %v1753_v62, 1 }
 0x1be   : > { %v1998_v26 = vadd.f32 %v7463_v37, %v1962_v5  ;;  %v2339_v61 = vsel %vm2335_vm0, %v2320_v18, 0.0  ;;  %v917_v0 = vadd.f32 %v7464_v42, %v5681_v43  ;;  %v1071_v9 = vmul.f32 %v4512_v19, %v1027_v3 }
 0x1bf   : > { %7462 = vst [vmem:[#allocation11_spill] sm:$0xff] %v5785_v2  ;;  %2340 = vadd.xlane.f32.xlu0 %v2339_v61  ;;  %v7465_v2 = vld [vmem:[#allocation49_spill] sm:$0xff]  ;;  %v2195_v37 = vsel %vm1619_vm12, %v2193_v48, %v2194_v35  ;;  %v7466_v62 = vrot.slane %v5472_v6, 2  ;;  %v7467_v18 = vrot.slane %v7458_v17, 2  ;;  %v1983_v3 = vmul.f32 %v4647_v59, %v5487_v50  ;;  %v7471_v17 = vld [vmem:[#allocation82_spill] sm:$0xff] }
 0x1c0   : > { %v2122_v60 = vadd.f32 %v2071_v21, %v1998_v26  ;;  %v1839_v10 = vadd.f32 %v5515_v23, %v7465_v2  ;;  %v1101_v5 = vadd.f32 %v1071_v9, %v917_v0  ;;  %v919_v39 = vadd.f32 %v7468_v33, %v735_v8  ;;  %v7469_v21 = vld [vmem:[#allocation63_spill] sm:$0xff]  ;;  %v7474_v33 = vld [vmem:[#allocation66_spill] sm:$0xff] }
 0x1c1   : > { %v1913_v43 = vsel %vm1619_vm12, %v7467_v18, %v7466_v62  ;;  %v1073_v26 = vmul.f32 %v4512_v19, %v1035_v24  ;;  %v7470_v48 = vrot.slane %v7469_v21, 1  ;;  %v1425_v6 = vmul.f32 %v7262_v55, %v5673_v7  ;;  %v7475_v62 = vld [vmem:[#allocation83_spill] sm:$0xff] }
 0x1c2   : > { %v2246_v42 = vadd.f32 %v2195_v37, %v2122_v60  ;;  %v1963_v61 = vadd.f32 %v1913_v43, %v1839_v10  ;;  %v1138_v23 = vadd.f32 %v5600_v11, %v1101_v5  ;;  %v7472_v0 = vrot.slane %v7471_v17, 1 }
 0x1c3   : > { %v2073_v2 = vsel %vm1494_vm8, %v2070_v57, %v7470_v48  ;;  %v7473_v9 = vrot.slane %v5678_v52, 1  ;;  %v2196_v19 = vrot.slane %v7474_v33, 2  ;;  %v1103_v24 = vadd.f32 %v1073_v26, %v919_v39  ;;  %v7479_v48 = vld [vmem:[#allocation43_spill] sm:$0xff] }
 0x1c4   : > { %v2268_v10 = vadd.f32 %v5690_v40, %v2246_v42  ;;  %v1999_v8 = vadd.f32 %v1983_v3, %v1963_v61  ;;  %v1168_v37 = vmax.f32 %v1138_v23, 0.0  ;;  %v7476_v18 = vrot.slane %v7475_v62, 2  ;;  %v7481_v42 = vld [vmem:[#allocation47_spill] sm:$0xff] }
 0x1c5   : > { %v1534_v60 = vsel %vm1494_vm8, %v7473_v9, %v7472_v0  ;;  %v7477_v57 = vrot.slane %v5707_v44, 2  ;;  %v7478_v21 = vrot.slane %v4942_v4, 1  ;;  %v7480_v52 = vrot.slane %v7479_v48, 1 }
 0x1c6   : > { %v1566_v5 = vadd.f32 %v1534_v60, %v1425_v6  ;;  %v2284_v0 = vmax.f32 %v2268_v10, 0.0  ;;  %v2123_v39 = vadd.f32 %v2073_v2, %v1999_v8  ;;  %v1140_v3 = vadd.f32 %v5600_v11, %v1103_v24  ;;  %v7482_v6 = vld [vmem:[#allocation92_spill] sm:$0xff]  ;;  %v7485_v8 = vld [vmem:[#allocation26_spill] sm:$0xff] }
 0x1c7   : > { %v1659_v43 = vsel %vm1619_vm12, %v7477_v57, %v7476_v18  ;;  %v1507_v17 = vsel %vm1494_vm8, %v7480_v52, %v7478_v21  ;;  %v1198_v44 = vmin.f32 %v1168_v37, 6.0  ;;  %v2197_v26 = vsel %vm1619_vm12, %v2194_v35, %v2196_v19  ;;  %v7487_v57 = vld [vmem:[#allocation91_spill] sm:$0xff] }
 0x1c8   : > { %v1555_v61 = vadd.f32 %v1507_v17, %v7481_v42  ;;  %v1691_v23 = vadd.f32 %v1659_v43, %v1566_v5  ;;  %v1738_v4 = vmul.f32 %v4572_v41, %v7454_v51  ;;  %v7483_v9 = vrot.slane %v7482_v6, 1 }
 0x1c9   : > { %v5844_v28 = vmin.f32 %v2284_v0, 6.0  ;;  %v2247_v22 = vadd.f32 %v2197_v26, %v2123_v39  ;;  %v1170_v10 = vmax.f32 %v1140_v3, 0.0  ;;  %v1398_v2 = vsel %vm1308_vm9, %v1198_v44, 0.0 }
 0x1ca   : > { %v1817_v60 = vsel %vm1494_vm8, %v1815_v63, %v7483_v9  ;;  %v7484_v11 = vrot.slane %v4952_v13, 2  ;;  %v7486_v33 = vrot.slane %v7485_v8, 2  ;;  %v1700_v35 = vmul.f32 %v4564_v31, %v7454_v51 }
 0x1cb   : > { %v1739_v19 = vmul.f32 %v4572_v41, %v5487_v50  ;;  %v2321_v63 = vmul.f32 %v7452_v46, %v5844_v28  ;;  %v1755_v37 = vmul.f32 %v4572_v41, %v1398_v2  ;;  %v1879_v5 = vmul.f32 %v7265_v45, %v1398_v2 }
 0x1cc   : > { %v1632_v24 = vsel %vm1619_vm12, %v7486_v33, %v7484_v11  ;;  %v2269_v13 = vadd.f32 %v5690_v40, %v2247_v22  ;;  %v1200_v18 = vmin.f32 %v1170_v10, 6.0  ;;  %v1727_v43 = vadd.f32 %v7487_v57, %v1691_v23 }
 0x1cd   : > { %v1680_v62 = vadd.f32 %v1632_v24, %v1555_v61  ;;  %v1790_v21 = vrot.slane %v1738_v4, 1  ;;  %v2342_v48 = vsel %vm2335_vm0, %v2321_v63, 0.0  ;;  %v1818_v52 = vrot.slane %v1755_v37, 1 }
 0x1ce   : > { %v5863_v17 = vmul.f32 %v7281_v36, %v1398_v2  ;;  %v5866_v0 = vmul.f32 %v7286_v27, %v1398_v2  ;;  %2343 = vadd.xlane.f32.xlu0 %v2342_v48  ;;  %v1942_v39 = vrot.slane %v1879_v5, 2  ;;  %v2285_v3 = vmax.f32 %v2269_v13, 0.0  ;;  %v7493_v48 = vld [vmem:[#allocation46_spill] sm:$0xff] }
 0x1cf   : > { %v1400_v61 = vsel %vm5219_vm2, %v1200_v18, 0.0  ;;  %v1791_v44 = vrot.slane %v1739_v19, 1  ;;  %v5871_v26 = vadd.f32 %v1817_v60, %v5782_v38  ;;  %v7489_v4 = vmov %v7483_v9  ;;  %v7491_v19 = vld [vmem:[#allocation93_spill] sm:$0xff] }
 0x1d0   : > { %v1819_v9 = vsel %vm1494_vm8, %v7489_v4, %v1818_v52  ;;  %v5878_v22 = vmul.f32 %v7281_v36, %v1400_v61  ;;  %v5880_v10 = vmin.f32 %v2285_v3, 6.0  ;;  %v1716_v11 = vadd.f32 %v1700_v35, %v1680_v62  ;;  %v7494_v3 = vld [vmem:[#allocation65_spill] sm:$0xff]  ;;  %v7498_v62 = vld [vmem:[#allocation62_spill] sm:$0xff] }
 0x1d1   : > { %v1851_v2 = vadd.f32 %v1819_v9, %v1727_v43  ;;  %v1792_v8 = vsel %vm1494_vm8, %v1790_v21, %v1791_v44  ;;  %v1862_v60 = vmul.f32 %v7265_v45, %v7454_v51  ;;  %v1863_v6 = vmul.f32 %v7265_v45, %v5487_v50 }
 0x1d2   : > { %7490 = vst [vmem:[#allocation53_spill] sm:$0xff] %v5880_v10  ;;  %v2322_v24 = vmul.f32 %v7452_v46, %v5880_v10  ;;  %v7492_v63 = vrot.slane %v7491_v19, 2  ;;  %v5895_v35 = vmul.f32 %v4647_v59, %v1400_v61  ;;  %v1840_v5 = vadd.f32 %v1792_v8, %v1716_v11 }
 0x1d3   : > { %v5899_v13 = vmul.f32 %v7286_v27, %v1400_v61  ;;  %v1914_v18 = vrot.slane %v1862_v60, 2  ;;  %v1915_v57 = vrot.slane %v1863_v6, 2  ;;  %v2022_v52 = vmul.f32 %v7281_v36, %v7493_v48 }
 0x1d4   : > { %v1943_v37 = vsel %vm1619_vm12, %v7492_v63, %v1942_v39  ;;  %v2345_v43 = vsel %vm2335_vm0, %v2322_v24, 0.0  ;;  %v2023_v39 = vmul.f32 %v7281_v36, %v7494_v3  ;;  %v2146_v4 = vmul.f32 %v7286_v27, %v7493_v48  ;;  %v7495_v63 = vld [vmem:[#allocation45_spill] sm:$0xff] }
 0x1d5   : > { %v5902_v21 = vadd.f32 %v1943_v37, %v1851_v2  ;;  %2346 = vadd.xlane.f32.xlu1 %v2345_v43  ;;  %v1916_v42 = vsel %vm1619_vm12, %v1914_v18, %v1915_v57  ;;  %v2147_v61 = vmul.f32 %v7286_v27, %v7494_v3  ;;  %v1701_v9 = vmul.f32 %v4564_v31, %v5487_v50  ;;  %v7496_v18 = vld [vmem:[#allocation60_spill] sm:$0xff] }
 0x1d6   : > { %v1964_v2 = vadd.f32 %v1916_v42, %v1840_v5  ;;  %v1984_v11 = vmul.f32 %v4647_v59, %v7493_v48  ;;  %v2074_v8 = vrot.slane %v2022_v52, 1  ;;  %v2075_v60 = vrot.slane %v2023_v39, 1 }
 0x1d7   : > { %v2198_v6 = vrot.slane %v2146_v4, 2  ;;  %v2199_v24 = vrot.slane %v2147_v61, 2  ;;  %v1717_v37 = vadd.f32 %v1701_v9, %v7495_v63  ;;  %v7497_v43 = vrot.slane %v7496_v18, 1  ;;  %v7509_v18 = vld [vmem:[#allocation67_spill] sm:$0xff] }
 0x1d8   : > { %v2000_v23 = vadd.f32 %v1984_v11, %v1964_v2  ;;  %v2076_v33 = vsel %vm1494_vm8, %v2074_v8, %v2075_v60  ;;  %v7499_v10 = vrot.slane %v7498_v62, 2  ;;  %v1985_v5 = vmul.f32 %v4647_v59, %v7494_v3  ;;  %v7502_v2 = vld [vmem:[#allocation27_spill] sm:$0xff] }
 0x1d9   : > { %v1794_v38 = vsel %vm1494_vm8, %v1791_v44, %v7497_v43  ;;  %v2200_v52 = vsel %vm1619_vm12, %v2198_v6, %v2199_v24  ;;  %v7500_v42 = vrot.slane %v5556_v53, 1  ;;  %v7501_v61 = vrot.slane %v5559_v56, 2  ;;  %v7507_v6 = vld [vmem:[#allocation57_spill] sm:$0xff] }
 0x1da   : > { %v1918_v50 = vsel %vm1619_vm12, %v1915_v57, %v7499_v10  ;;  %v1841_v39 = vadd.f32 %v1794_v38, %v1717_v37  ;;  %v2124_v9 = vadd.f32 %v2076_v33, %v2000_v23  ;;  %v1416_v62 = vmul.f32 %v7262_v55, %v7454_v51  ;;  %v7504_v57 = vld [vmem:[#allocation56_spill] sm:$0xff] }
 0x1db   : > { %v2078_v4 = vsel %vm1494_vm8, %v2075_v60, %v7500_v42  ;;  %v2202_v44 = vsel %vm1619_vm12, %v2199_v24, %v7501_v61  ;;  %v7503_v10 = vrot.slane %v7502_v2, 1  ;;  %v7505_v11 = vrot.slane %v7504_v57, 1 }
 0x1dc   : > { %v7506_v38 = vrot.slane %v5509_v54, 2  ;;  %v7508_v53 = vrot.slane %v7507_v6, 2  ;;  %v1965_v63 = vadd.f32 %v1918_v50, %v1841_v39  ;;  %v1702_v56 = vmul.f32 %v4564_v31, %v7493_v48 }
 0x1dd   : > { %v1512_v8 = vsel %vm1494_vm8, %v7505_v11, %v7503_v10  ;;  %v1741_v23 = vmul.f32 %v4572_v41, %v7493_v48  ;;  %v1865_v51 = vmul.f32 %v7265_v45, %v7493_v48  ;;  %v2248_v33 = vadd.f32 %v2200_v52, %v2124_v9 }
 0x1de   : > { %v1637_v60 = vsel %vm1619_vm12, %v7508_v53, %v7506_v38  ;;  %v1557_v24 = vadd.f32 %v1512_v8, %v1416_v62  ;;  %v1866_v37 = vmul.f32 %v7265_v45, %v7494_v3  ;;  %v1986_v43 = vmul.f32 %v4647_v59, %v7509_v18 }
 0x1df   : > { %v2001_v42 = vadd.f32 %v1985_v5, %v1965_v63  ;;  %v1795_v61 = vrot.slane %v1741_v23, 1  ;;  %v1919_v50 = vrot.slane %v1865_v51, 2  ;;  %v2025_v39 = vmul.f32 %v7281_v36, %v7509_v18 }
 0x1e0   : > { %v2270_v10 = vadd.f32 %v5690_v40, %v2248_v33  ;;  %v1682_v57 = vadd.f32 %v1637_v60, %v1557_v24  ;;  %v1920_v11 = vrot.slane %v1866_v37, 2  ;;  %v2026_v48 = vmul.f32 %v7281_v36, %v5563_v47  ;;  %v7511_v33 = vld [vmem:[#allocation58_spill] sm:$0xff] }
 0x1e1   : > { %v2125_v52 = vadd.f32 %v2078_v4, %v2001_v42  ;;  %v7510_v9 = vrot.slane %v5093_v14, 1  ;;  %v2079_v8 = vrot.slane %v2025_v39, 1  ;;  %v2149_v5 = vmul.f32 %v7286_v27, %v7509_v18 }
 0x1e2   : > { %v2286_v38 = vmax.f32 %v2270_v10, 0.0  ;;  %v1718_v6 = vadd.f32 %v1702_v56, %v1682_v57  ;;  %v1921_v53 = vsel %vm1619_vm12, %v1919_v50, %v1920_v11  ;;  %v2080_v63 = vrot.slane %v2026_v48, 1  ;;  %v7514_v56 = vld [vmem:[#allocation29_spill] sm:$0xff]  ;;  %v7515_v10 = vld [vmem:[#allocation59_spill] sm:$0xff] }
 0x1e3   : > { %v1797_v62 = vsel %vm1494_vm8, %v1795_v61, %v7510_v9  ;;  %v2249_v23 = vadd.f32 %v2202_v44, %v2125_v52  ;;  %v2150_v60 = vmul.f32 %v7286_v27, %v5563_v47  ;;  %v2203_v51 = vrot.slane %v2149_v5, 2 }
 0x1e4   : > { %v7512_v4 = vrot.slane %v7511_v33, 1  ;;  %v7513_v14 = vrot.slane %v7502_v2, 1  ;;  %v5974_v37 = vmin.f32 %v2286_v38, 6.0  ;;  %v1842_v42 = vadd.f32 %v1797_v62, %v1718_v6 }
 0x1e5   : > { %v2081_v61 = vsel %vm1494_vm8, %v2079_v8, %v2080_v63  ;;  %v2271_v50 = vadd.f32 %v5690_v40, %v2249_v23  ;;  %v2204_v44 = vrot.slane %v2150_v60, 2  ;;  %v7516_v57 = vrot.slane %v7515_v10, 2  ;;  %v7519_v60 = vld [vmem:[#allocation77_spill] sm:$0xff] }
 0x1e6   : > { %v1514_v24 = vsel %vm1494_vm8, %v7513_v14, %v7512_v4  ;;  %v7517_v48 = vrot.slane %v5509_v54, 2  ;;  %v1703_v2 = vmul.f32 %v4564_v31, %v7494_v3  ;;  %v2323_v9 = vmul.f32 %v7452_v46, %v5974_v37 }
 0x1e7   : > { %v1558_v39 = vadd.f32 %v1514_v24, %v7514_v56  ;;  %v1966_v62 = vadd.f32 %v1921_v53, %v1842_v42  ;;  %v7518_v8 = vrot.slane %v5553_v30, 2  ;;  %v2287_v6 = vmax.f32 %v2271_v50, 0.0  ;;  %v7521_v53 = vld [vmem:[#allocation79_spill] sm:$0xff]  ;;  %v7525_v50 = vld [vmem:[#allocation69_spill] sm:$0xff] }
 0x1e8   : > { %v1639_v52 = vsel %vm1619_vm12, %v7517_v48, %v7516_v57  ;;  %v2205_v23 = vsel %vm1619_vm12, %v2203_v51, %v2204_v44  ;;  %v1987_v54 = vmul.f32 %v4647_v59, %v5563_v47  ;;  %v7520_v33 = vrot.slane %v7519_v60, 1  ;;  %v7523_v56 = vld [vmem:[#allocation39_spill] sm:$0xff]  ;;  %v7527_v57 = vld [vmem:[#allocation36_spill] sm:$0xff] }
 0x1e9   : > { %v1683_v5 = vadd.f32 %v1639_v52, %v1558_v39  ;;  %v1923_v38 = vsel %vm1619_vm12, %v1920_v11, %v7518_v8  ;;  %v2348_v3 = vsel %vm2335_vm0, %v2323_v9, 0.0  ;;  %v2002_v14 = vadd.f32 %v1986_v43, %v1966_v62 }
 0x1ea   : > { %v2083_v4 = vsel %vm1494_vm8, %v2080_v63, %v7520_v33  ;;  %v2206_v42 = vrot.slane %v7521_v53, 2  ;;  %2349 = vadd.xlane.f32.xlu0 %v2348_v3  ;;  %v5999_v30 = vmin.f32 %v2287_v6, 6.0  ;;  %v7522_v11 = vrot.slane %v5064_v15, 1 }
 0x1eb   : > { %v1719_v24 = vadd.f32 %v1703_v2, %v1683_v5  ;;  %v7524_v51 = vrot.slane %v7523_v56, 1  ;;  %v7526_v10 = vrot.slane %v7525_v50, 2  ;;  %v7528_v48 = vrot.slane %v7527_v57, 2  ;;  %v7529_v2 = vld [vmem:[#allocation10_spill] sm:$0xff]  ;;  %v7530_v5 = vld [vmem:[#allocation48_spill] sm:$0xff]  ;;  %v7531_v57 = vld [vmem:[#allocation41_spill] sm:$0xff] }
 0x1ec   : > { %v1704_v43 = vmul.f32 %v4564_v31, %v7509_v18  ;;  %v2126_v52 = vadd.f32 %v2081_v61, %v2002_v14  ;;  %v2207_v62 = vsel %vm1619_vm12, %v2204_v44, %v2206_v42  ;;  %v2324_v8 = vmul.f32 %v7452_v46, %v5999_v30 }
 0x1ed   : > { %v1517_v39 = vsel %vm1494_vm8, %v7524_v51, %v7522_v11  ;;  %v1642_v63 = vsel %vm1619_vm12, %v7528_v48, %v7526_v10  ;;  %v1843_v9 = vadd.f32 %v7529_v2, %v1719_v24  ;;  %v1744_v6 = vmul.f32 %v4572_v41, %v7509_v18  ;;  %v7532_v48 = vld [vmem:[#allocation78_spill] sm:$0xff] }
 0x1ee   : > { %v1559_v15 = vadd.f32 %v1517_v39, %v7530_v5  ;;  %v1745_v60 = vmul.f32 %v4572_v41, %v5563_v47  ;;  %v1868_v33 = vmul.f32 %v7265_v45, %v7509_v18  ;;  %v2250_v3 = vadd.f32 %v2205_v23, %v2126_v52 }
 0x1ef   : > { %v1967_v61 = vadd.f32 %v1923_v38, %v1843_v9  ;;  %v1869_v44 = vmul.f32 %v7265_v45, %v5563_v47  ;;  %v2351_v24 = vsel %vm2335_vm0, %v2324_v8, 0.0  ;;  %v1800_v53 = vrot.slane %v1744_v6, 1 }
 0x1f0   : > { %v1684_v14 = vadd.f32 %v1642_v63, %v1559_v15  ;;  %v1801_v42 = vrot.slane %v1745_v60, 1  ;;  %v1924_v11 = vrot.slane %v1868_v33, 2  ;;  %2352 = vadd.xlane.f32.xlu1 %v2351_v24  ;;  %v2272_v56 = vadd.f32 %v5690_v40, %v2250_v3 }
 0x1f1   : > { %v2003_v51 = vadd.f32 %v1987_v54, %v1967_v61  ;;  %v1925_v50 = vrot.slane %v1869_v44, 2  ;;  %v1988_v38 = vmul.f32 %v4647_v59, %v7531_v57  ;;  %v2028_v23 = vmul.f32 %v7281_v36, %v7531_v57  ;;  %v7533_v44 = vld [vmem:[#allocation73_spill] sm:$0xff] }
 0x1f2   : > { %v1720_v39 = vadd.f32 %v1704_v43, %v1684_v14  ;;  %v1802_v10 = vsel %vm1494_vm8, %v1800_v53, %v1801_v42  ;;  %v2029_v63 = vmul.f32 %v7281_v36, %v7532_v48  ;;  %v2288_v52 = vmax.f32 %v2272_v56, 0.0 }
 0x1f3   : > { %v2127_v2 = vadd.f32 %v2083_v4, %v2003_v51  ;;  %v1926_v5 = vsel %vm1619_vm12, %v1924_v11, %v1925_v50  ;;  %v2084_v15 = vrot.slane %v2028_v23, 1  ;;  %v2152_v43 = vmul.f32 %v7286_v27, %v7531_v57  ;;  %v7536_v23 = vld [vmem:[#allocation74_spill] sm:$0xff] }
 0x1f4   : > { %v1844_v9 = vadd.f32 %v1802_v10, %v1720_v39  ;;  %v2085_v54 = vrot.slane %v2029_v63, 1  ;;  %v2153_v8 = vmul.f32 %v7286_v27, %v7532_v48  ;;  %v6040_v6 = vmin.f32 %v2288_v52, 6.0  ;;  %v7535_v39 = vld [vmem:[#allocation42_spill] sm:$0xff] }
 0x1f5   : > { %v2251_v60 = vadd.f32 %v2207_v62, %v2127_v2  ;;  %v1705_v3 = vmul.f32 %v4564_v31, %v5563_v47  ;;  %v2208_v61 = vrot.slane %v2152_v43, 2  ;;  %v7534_v24 = vrot.slane %v7533_v44, 1 }
 0x1f6   : > { %v1968_v33 = vadd.f32 %v1926_v5, %v1844_v9  ;;  %v2086_v4 = vsel %vm1494_vm8, %v2084_v15, %v2085_v54  ;;  %v2209_v14 = vrot.slane %v2153_v8, 2  ;;  %v2325_v11 = vmul.f32 %v7452_v46, %v6040_v6 }
 0x1f7   : > { %v1804_v53 = vsel %vm1494_vm8, %v1801_v42, %v7534_v24  ;;  %v2273_v56 = vadd.f32 %v5690_v40, %v2251_v60  ;;  %v1721_v62 = vadd.f32 %v1705_v3, %v7535_v39  ;;  %v7537_v47 = vrot.slane %v7536_v23, 2  ;;  %v7540_v60 = vld [vmem:[#allocation50_spill] sm:$0xff]  ;;  %v7542_v3 = vld [vmem:[#allocation68_spill] sm:$0xff] }
 0x1f8   : > { %v2004_v51 = vadd.f32 %v1988_v38, %v1968_v33  ;;  %v2210_v10 = vsel %vm1619_vm12, %v2208_v61, %v2209_v14  ;;  %v1989_v52 = vmul.f32 %v4647_v59, %v7532_v48  ;;  %v7538_v2 = vrot.slane %v5653_v32, 1  ;;  %v7546_v24 = vld [vmem:[#allocation70_spill] sm:$0xff] }
 0x1f9   : > { %v1928_v63 = vsel %vm1619_vm12, %v1925_v50, %v7537_v47  ;;  %v2354_v9 = vsel %vm2335_vm0, %v2325_v11, 0.0  ;;  %v2289_v5 = vmax.f32 %v2273_v56, 0.0  ;;  %v1845_v38 = vadd.f32 %v1804_v53, %v1721_v62  ;;  %v7548_v47 = vld [vmem:[#allocation80_spill] sm:$0xff] }
 0x1fa   : > { %v2088_v42 = vsel %vm1494_vm8, %v2085_v54, %v7538_v2  ;;  %v2128_v15 = vadd.f32 %v2086_v4, %v2004_v51  ;;  %2355 = vadd.xlane.f32.xlu0 %v2354_v9  ;;  %v7539_v43 = vrot.slane %v5669_v12, 2  ;;  %v1420_v50 = vmul.f32 %v7262_v55, %v7509_v18  ;;  %v7544_v54 = vld [vmem:[#allocation38_spill] sm:$0xff] }
 0x1fb   : > { %v7541_v33 = vrot.slane %v7540_v60, 1  ;;  %v7543_v61 = vrot.slane %v7542_v3, 1  ;;  %v7545_v44 = vrot.slane %v7544_v54, 2  ;;  %v7547_v11 = vrot.slane %v7546_v24, 2 }
 0x1fc   : > { %v2212_v8 = vsel %vm1619_vm12, %v2209_v14, %v7539_v43  ;;  %v6077_v53 = vmin.f32 %v2289_v5, 6.0  ;;  %v2252_v12 = vadd.f32 %v2210_v10, %v2128_v15  ;;  %v1969_v56 = vadd.f32 %v1928_v63, %v1845_v38 }
 0x1fd   : > { %v1522_v32 = vsel %vm1494_vm8, %v7543_v61, %v7541_v33  ;;  %v1647_v4 = vsel %vm1619_vm12, %v7547_v11, %v7545_v44  ;;  %v1706_v14 = vmul.f32 %v4564_v31, %v7531_v57  ;;  %v1747_v18 = vmul.f32 %v4572_v41, %v7531_v57 }
 0x1fe   : > { %v1561_v55 = vadd.f32 %v1522_v32, %v1420_v50  ;;  %v1871_v51 = vmul.f32 %v7265_v45, %v7531_v57  ;;  %v1872_v39 = vmul.f32 %v7265_v45, %v7532_v48  ;;  %v2326_v62 = vmul.f32 %v7452_v46, %v6077_v53 }
 0x1ff   : > { %v2274_v23 = vadd.f32 %v5690_v40, %v2252_v12  ;;  %v2005_v10 = vadd.f32 %v1989_v52, %v1969_v56  ;;  %v1990_v63 = vmul.f32 %v4647_v59, %v7548_v47  ;;  %v1805_v9 = vrot.slane %v1747_v18, 1 }
 0x200   : > { %v1686_v2 = vadd.f32 %v1647_v4, %v1561_v55  ;;  %v1929_v5 = vrot.slane %v1871_v51, 2  ;;  %v1930_v15 = vrot.slane %v1872_v39, 2  ;;  %v2357_v38 = vsel %vm2335_vm0, %v2326_v62, 0.0  ;;  %v7553_v39 = vld [vmem:[#allocation8_spill] sm:$0xff] }
 0x201   : > { %v2290_v43 = vmax.f32 %v2274_v23, 0.0  ;;  %v2129_v57 = vadd.f32 %v2088_v42, %v2005_v10  ;;  %v2031_v50 = vmul.f32 %v7281_v36, %v7548_v47  ;;  %2358 = vadd.xlane.f32.xlu1 %v2357_v38  ;;  %v7549_v3 = vrot.slane %v5194_v29, 1  ;;  %v7550_v29 = vld [vmem:[#allocation71_spill] sm:$0xff] }
 0x202   : > { %v1722_v33 = vadd.f32 %v1706_v14, %v1686_v2  ;;  %v1931_v61 = vsel %vm1619_vm12, %v1929_v5, %v1930_v15  ;;  %v2032_v32 = vmul.f32 %v7281_v36, %v5673_v7  ;;  %v2155_v42 = vmul.f32 %v7286_v27, %v7548_v47 }
 0x203   : > { %v1807_v52 = vsel %vm1494_vm8, %v1805_v9, %v7549_v3  ;;  %v6101_v44 = vmin.f32 %v2290_v43, 6.0  ;;  %v2253_v24 = vadd.f32 %v2212_v8, %v2129_v57  ;;  %v2089_v11 = vrot.slane %v2031_v50, 1  ;;  %v7554_v9 = vld [vmem:[#allocation72_spill] sm:$0xff]  ;;  %v7557_v3 = vld [vmem:[#allocation34_spill] sm:$0xff] }
 0x204   : > { %v1846_v4 = vadd.f32 %v1807_v52, %v1722_v33  ;;  %v2090_v12 = vrot.slane %v2032_v32, 1  ;;  %v2156_v56 = vmul.f32 %v7286_v27, %v5673_v7  ;;  %v7551_v14 = vrot.slane %v7550_v29, 1 }
 0x205   : > { %v7552_v55 = vrot.slane %v7540_v60, 1  ;;  %v2327_v36 = vmul.f32 %v7452_v46, %v6101_v44  ;;  %v2275_v8 = vadd.f32 %v5690_v40, %v2253_v24  ;;  %v2213_v51 = vrot.slane %v2155_v42, 2 }
 0x206   : > { %v1970_v23 = vadd.f32 %v1931_v61, %v1846_v4  ;;  %v2091_v10 = vsel %vm1494_vm8, %v2089_v11, %v2090_v12  ;;  %v2214_v2 = vrot.slane %v2156_v56, 2  ;;  %v7555_v27 = vrot.slane %v7554_v9, 2 }
 0x207   : > { %v1524_v18 = vsel %vm1494_vm8, %v7552_v55, %v7551_v14  ;;  %v7556_v5 = vrot.slane %v7544_v54, 2  ;;  %v2360_v38 = vsel %vm2335_vm0, %v2327_v36, 0.0  ;;  %v2291_v43 = vmax.f32 %v2275_v8, 0.0  ;;  %v7562_v14 = vld [vmem:[#allocation40_spill] sm:$0xff]  ;;  %v7565_v36 = vld [vmem:[#allocation31_spill] sm:$0xff] }
 0x208   : > { %v1562_v62 = vadd.f32 %v1524_v18, %v7553_v39  ;;  %v1707_v50 = vmul.f32 %v4564_v31, %v7532_v48  ;;  %v2011_v33 = vadd.f32 %v5895_v35, %v5902_v21  ;;  %v7558_v52 = vrot.slane %v7557_v3, 1  ;;  %2361 = vadd.xlane.f32.xlu0 %v2360_v38  ;;  %v7567_v39 = vld [vmem:[#allocation12_spill] sm:$0xff] }
 0x209   : > { %v1649_v60 = vsel %vm1619_vm12, %v7556_v5, %v7555_v27  ;;  %v7559_v61 = vrot.slane %v5878_v22, 1  ;;  %v2224_v54 = vrot.slane %v5899_v13, 2  ;;  %v2006_v24 = vadd.f32 %v1990_v63, %v1970_v23  ;;  %v7568_v38 = vld [vmem:[#allocation88_spill] sm:$0xff] }
 0x20a   : > { %v1687_v57 = vadd.f32 %v1649_v60, %v1562_v62  ;;  %v6133_v11 = vmin.f32 %v2291_v43, 6.0  ;;  %v2215_v42 = vsel %vm1619_vm12, %v2213_v51, %v2214_v2  ;;  %v7560_v48 = vrot.slane %v5649_v49, 2 }
 0x20b   : > { %v2103_v32 = vsel %vm1494_vm8, %v7559_v61, %v7558_v52  ;;  %v2130_v35 = vadd.f32 %v2091_v10, %v2006_v24  ;;  %v1991_v21 = vmul.f32 %v4647_v59, %v5673_v7  ;;  %v7561_v29 = vrot.slane %v5163_v1, 1  ;;  %v7570_v52 = vld [vmem:[#allocation90_spill] sm:$0xff] }
 0x20c   : > { %v1723_v4 = vadd.f32 %v1707_v50, %v1687_v57  ;;  %v1933_v56 = vsel %vm1619_vm12, %v1930_v15, %v7560_v48  ;;  %v7563_v55 = vrot.slane %v7562_v14, 1  ;;  %v7564_v63 = vrot.slane %v5170_v34, 2 }
 0x20d   : > { %v7566_v8 = vrot.slane %v7565_v36, 2  ;;  %v2328_v49 = vmul.f32 %v7452_v46, %v6133_v11  ;;  %v1708_v59 = vmul.f32 %v4564_v31, %v7548_v47  ;;  %v2254_v1 = vadd.f32 %v2215_v42, %v2130_v35  ;;  %v7572_v35 = vld [vmem:[#allocation98_spill] sm:$0xff] }
 0x20e   : > { %v1527_v18 = vsel %vm1494_vm8, %v7563_v55, %v7561_v29  ;;  %v1847_v15 = vadd.f32 %v5713_v58, %v1723_v4  ;;  %v1750_v23 = vmul.f32 %v4572_v41, %v7548_v47  ;;  %v1751_v34 = vmul.f32 %v4572_v41, %v5673_v7 }
 0x20f   : > { %v1652_v51 = vsel %vm1619_vm12, %v7566_v8, %v7564_v63  ;;  %v1563_v62 = vadd.f32 %v1527_v18, %v7567_v39  ;;  %v1874_v10 = vmul.f32 %v7265_v45, %v7548_v47  ;;  %v2363_v9 = vsel %vm2335_vm0, %v2328_v49, 0.0  ;;  %v7574_v8 = vld [vmem:[#allocation14_spill] sm:$0xff] }
 0x210   : > { %v1971_v27 = vadd.f32 %v1933_v56, %v1847_v15  ;;  %v1875_v58 = vmul.f32 %v7265_v45, %v5673_v7  ;;  %2364 = vadd.xlane.f32.xlu1 %v2363_v9  ;;  %v2276_v60 = vadd.f32 %v5690_v40, %v2254_v1  ;;  %v7569_v43 = vrot.slane %v7568_v38, 1  ;;  %v7580_v1 = vld [vmem:[#allocation87_spill] sm:$0xff]  ;;  %v7585_v38 = vld [vmem:[#allocation37_spill] sm:$0xff] }
 0x211   : > { %v1688_v5 = vadd.f32 %v1652_v51, %v1563_v62  ;;  %v1810_v50 = vrot.slane %v1750_v23, 1  ;;  %v1811_v3 = vrot.slane %v1751_v34, 1  ;;  %v2216_v61 = vrot.slane %v7570_v52, 2  ;;  %v7578_v62 = vld [vmem:[#allocation84_spill] sm:$0xff] }
 0x212   : > { %v2093_v57 = vsel %vm1494_vm8, %v2090_v12, %v7569_v43  ;;  %v2007_v41 = vadd.f32 %v1991_v21, %v1971_v27  ;;  %v1935_v24 = vrot.slane %v1875_v58, 2  ;;  %v2292_v42 = vmax.f32 %v2276_v60, 0.0 }
 0x213   : > { %v1724_v47 = vadd.f32 %v1708_v59, %v1688_v5  ;;  %v1812_v4 = vsel %vm1494_vm8, %v1810_v50, %v1811_v3  ;;  %v1934_v48 = vrot.slane %v1874_v10, 2  ;;  %v1709_v45 = vmul.f32 %v4564_v31, %v5673_v7  ;;  %v7575_v31 = vld [vmem:[#allocation95_spill] sm:$0xff] }
 0x214   : > { %v7571_v56 = vrot.slane %v5878_v22, 1  ;;  %v7573_v29 = vrot.slane %v7572_v35, 1  ;;  %v2135_v14 = vadd.f32 %v2103_v32, %v2011_v33  ;;  %v2131_v55 = vadd.f32 %v2093_v57, %v2007_v41  ;;  %v7584_v5 = vld [vmem:[#allocation11_spill] sm:$0xff] }
 0x215   : > { %v1848_v21 = vadd.f32 %v1812_v4, %v1724_v47  ;;  %v6179_v18 = vmin.f32 %v2292_v42, 6.0  ;;  %v2217_v63 = vsel %vm1619_vm12, %v2214_v2, %v2216_v61  ;;  %v1936_v36 = vsel %vm1619_vm12, %v1934_v48, %v1935_v24  ;;  %v7590_v42 = vld [vmem:[#allocation97_spill] sm:$0xff]  ;;  %v7591_v48 = vld [vmem:[#allocation35_spill] sm:$0xff] }
 0x216   : > { %v2101_v12 = vsel %vm1494_vm8, %v7573_v29, %v7571_v56  ;;  %v1725_v51 = vadd.f32 %v1709_v45, %v7574_v8  ;;  %v2255_v49 = vadd.f32 %v2217_v63, %v2131_v55  ;;  %v7576_v7 = vrot.slane %v7575_v31, 1  ;;  %v7593_v29 = vld [vmem:[#allocation94_spill] sm:$0xff] }
 0x217   : > { %v1972_v15 = vadd.f32 %v1936_v36, %v1848_v21  ;;  %v7577_v22 = vrot.slane %v5775_v25, 1  ;;  %v7579_v33 = vrot.slane %v7578_v62, 1  ;;  %v2329_v59 = vmul.f32 %v7452_v46, %v6179_v18 }
 0x218   : > { %v7581_v23 = vrot.slane %v7580_v1, 2  ;;  %v7582_v10 = vrot.slane %v7491_v19, 2  ;;  %v7583_v9 = vrot.slane %v5772_v20, 2  ;;  %v2277_v27 = vadd.f32 %v5690_v40, %v2255_v49 }
 0x219   : > { %v2096_v39 = vsel %vm1494_vm8, %v7577_v22, %v7576_v7  ;;  %v1814_v32 = vsel %vm1494_vm8, %v1811_v3, %v7579_v33  ;;  %v2008_v58 = vadd.f32 %v7584_v5, %v1972_v15  ;;  %v7586_v43 = vrot.slane %v7585_v38, 2  ;;  %v7587_v3 = vld [vmem:[#allocation96_spill] sm:$0xff] }
 0x21a   : > { %v1849_v2 = vadd.f32 %v1814_v32, %v1725_v51  ;;  %v1938_v34 = vsel %vm1619_vm12, %v1935_v24, %v7581_v23  ;;  %v1941_v25 = vsel %vm1619_vm12, %v7583_v9, %v7582_v10  ;;  %v2366_v50 = vsel %vm2335_vm0, %v2329_v59, 0.0  ;;  %v7595_v10 = vld [vmem:[#allocation19_spill] sm:$0xff] }
 0x21b   : > { %v1974_v60 = vadd.f32 %v1941_v25, %v5871_v26  ;;  %v2227_v57 = vsel %vm1619_vm12, %v2224_v54, %v7586_v43  ;;  %v2219_v19 = vrot.slane %v7587_v3, 2  ;;  %2367 = vadd.xlane.f32.xlu0 %v2366_v50  ;;  %v2293_v52 = vmax.f32 %v2277_v27, 0.0 }
 0x21c   : > { %v1973_v41 = vadd.f32 %v1938_v34, %v1849_v2  ;;  %v2259_v20 = vadd.f32 %v2227_v57, %v2135_v14  ;;  %v2132_v61 = vadd.f32 %v2096_v39, %v2008_v58  ;;  %v7588_v47 = vrot.slane %v5863_v17, 1  ;;  %v7597_v57 = vld [vmem:[#allocation52_spill] sm:$0xff] }
 0x21d   : > { %v7589_v24 = vmov %v7576_v7  ;;  %v2010_v4 = vadd.f32 %v7590_v42, %v1974_v60  ;;  %v2223_v45 = vrot.slane %v7591_v48, 2  ;;  %v7592_v56 = vrot.slane %v5788_v16, 2  ;;  %v7596_v60 = vld [vmem:[#allocation9_spill] sm:$0xff] }
 0x21e   : > { %v2098_v26 = vsel %vm1494_vm8, %v7589_v24, %v7588_v47  ;;  %v2009_v55 = vadd.f32 %v7593_v29, %v1973_v41  ;;  %v2281_v14 = vadd.f32 %v5690_v40, %v2259_v20  ;;  %v6224_v21 = vmin.f32 %v2293_v52, 6.0  ;;  %v7598_v41 = vld [vmem:[#allocation53_spill] sm:$0xff] }
 0x21f   : > { %v2220_v35 = vsel %vm1619_vm12, %v7592_v56, %v2219_v19  ;;  %v2134_v17 = vadd.f32 %v2101_v12, %v2010_v4  ;;  %v2225_v8 = vsel %vm1619_vm12, %v2223_v45, %v2224_v54  ;;  %v7594_v49 = vrot.slane %v5866_v0, 2 }
 0x220   : > { %v2256_v63 = vadd.f32 %v2220_v35, %v2132_v61  ;;  %v2133_v36 = vadd.f32 %v2098_v26, %v2009_v55  ;;  %v2330_v51 = vmul.f32 %v7452_v46, %v6224_v21  ;;  %v2297_v22 = vmax.f32 %v2281_v14, 0.0 }
 0x221   : > { %v2222_v15 = vsel %vm1619_vm12, %v2219_v19, %v7594_v49  ;;  %v2258_v31 = vadd.f32 %v2225_v8, %v2134_v17  ;;  %vm3191_vm3 = vcmask 130112   ;;  %vm3472_vm2 = vcmask 1041409  }
 0x222   : > { %v2278_v16 = vadd.f32 %v5690_v40, %v2256_v63  ;;  %v2257_v7 = vadd.f32 %v2222_v15, %v2133_v36  ;;  %v2369_v39 = vsel %vm2335_vm0, %v2330_v51, 0.0  ;;  %v6240_v59 = vmin.f32 %v2297_v22, 6.0 }
 0x223   : > { %v2280_v62 = vadd.f32 %v5690_v40, %v2258_v31  ;;  %2370 = vadd.xlane.f32.xlu1 %v2369_v39  ;;  %vm3474_vm5 = vcmask 1042434   ;;  %vm3478_vm12 = vcmask 1044484   ;;  %vm3480_vm13 = vcmask 1045509  }
 0x224   : > { %v2294_v12 = vmax.f32 %v2278_v16, 0.0  ;;  %v2279_v13 = vadd.f32 %v5690_v40, %v2257_v7  ;;  %v6254_v40 = vld [vmem:[%s7076_s5] sm:$0xf]  ;;  %v2334_v27 = vmul.f32 %v7452_v46, %v6240_v59  ;;  %vm3482_vm11 = vcmask 1046534  }
 0x225   : > { %v2296_v33 = vmax.f32 %v2280_v62, 0.0  ;;  %v2477_v9 = vrot.slane %v6254_v40, %v7595_v10  ;;  %vm3484_vm15 = vcmask 1047559   ;;  %vm3607_vm14 = vcmask 130048  }
 0x226   : > { %v6238_v54 = vmin.f32 %v2294_v12, 6.0  ;;  %v2295_v32 = vmax.f32 %v2279_v13, 0.0  ;;  %v2381_v43 = vsel %vm2335_vm0, %v2334_v27, 0.0  ;;  %v3856_v12 = vld [vmem:[%s4151_s23 + $0x20] sm:$0xff]  ;;  %v3857_v13 = vld [vmem:[%s4151_s23 + $0x28] sm:$0x3] }
 0x227   : > { %v6244_v2 = vmin.f32 %v2296_v33, 6.0  ;;  %v2478_v38 = vmul.f32 %v2477_v9, %v7596_v60  ;;  %v2479_v50 = vmul.f32 %v2477_v9, %v7597_v57  ;;  %v2480_v19 = vmul.f32 %v2477_v9, %v5844_v28 }
 0x228   : > { %v2331_v0 = vmul.f32 %v7452_v46, %v6238_v54  ;;  %v6246_v1 = vmin.f32 %v2295_v32, 6.0  ;;  %v2481_v20 = vmul.f32 %v2477_v9, %v7598_v41  ;;  %v2482_v61 = vmul.f32 %v2477_v9, %v5974_v37  ;;  %v3858_v32 = vld [vmem:[%s4151_s23 + $0x18] sm:$0xff] }
 0x229   : > { %v2333_v34 = vmul.f32 %v7452_v46, %v6244_v2  ;;  %v2494_v3 = vsel %vm2335_vm0, %v2478_v38, 0.0  ;;  %v2500_v52 = vsel %vm2335_vm0, %v2480_v19, 0.0  ;;  %v2483_v24 = vmul.f32 %v2477_v9, %v5999_v30 }
 0x22a   : > { %v2372_v23 = vsel %vm2335_vm0, %v2331_v0, 0.0  ;;  %v2332_v25 = vmul.f32 %v7452_v46, %v6246_v1  ;;  %v2497_v46 = vsel %vm2335_vm0, %v2479_v50, 0.0  ;;  %v2503_v47 = vsel %vm2335_vm0, %v2481_v20, 0.0  ;;  %v3864_v20 = vld [vmem:[%s4151_s23 + $0x58] sm:$0x3] }
 0x22b   : > { %2373 = vadd.xlane.f32.xlu0 %v2372_v23  ;;  %v2378_v5 = vsel %vm2335_vm0, %v2333_v34, 0.0  ;;  %v2506_v26 = vsel %vm2335_vm0, %v2482_v61, 0.0  ;;  %v2484_v42 = vmul.f32 %v2477_v9, %v6040_v6  ;;  %v2509_v4 = vsel %vm2335_vm0, %v2483_v24, 0.0  ;;  %v3859_v34 = vld [vmem:[%s4151_s23 + $0x30] sm:$0xff] }
 0x22c   : > { %v2375_v58 = vsel %vm2335_vm0, %v2332_v25, 0.0  ;;  %v2485_v48 = vmul.f32 %v2477_v9, %v6077_v53  ;;  %v2486_v56 = vmul.f32 %v2477_v9, %v6101_v44  ;;  %v2487_v29 = vmul.f32 %v2477_v9, %v6133_v11 }
 0x22d   : > { %2376 = vadd.xlane.f32.xlu1 %v2375_v58  ;;  %v2512_v45 = vsel %vm2335_vm0, %v2484_v42, 0.0  ;;  %v2488_v14 = vmul.f32 %v2477_v9, %v6179_v18  ;;  %v2489_v17 = vmul.f32 %v2477_v9, %v6224_v21  ;;  %v2490_v8 = vmul.f32 %v2477_v9, %v6238_v54 }
 0x22e   : > { %v2515_v35 = vsel %vm2335_vm0, %v2485_v48, 0.0  ;;  %v2518_v55 = vsel %vm2335_vm0, %v2486_v56, 0.0  ;;  %v2521_v63 = vsel %vm2335_vm0, %v2487_v29, 0.0  ;;  %v2491_v16 = vmul.f32 %v2477_v9, %v6246_v1  ;;  %v3867_v48 = vld [vmem:[%s4151_s23 + $0x70] sm:$0x3] }
 0x22f   : > { %2379 = vadd.xlane.f32.xlu0 %v2378_v5  ;;  %v2524_v36 = vsel %vm2335_vm0, %v2488_v14, 0.0  ;;  %v2527_v51 = vsel %vm2335_vm0, %v2489_v17, 0.0  ;;  %v2530_v49 = vsel %vm2335_vm0, %v2490_v8, 0.0  ;;  %v2492_v15 = vmul.f32 %v2477_v9, %v6244_v2  ;;  %v3861_v5 = vld [vmem:[%s4151_s23 + $0x40] sm:$0x3] }
 0x230   : > { %v2533_v31 = vsel %vm2335_vm0, %v2491_v16, 0.0  ;;  %v2493_v7 = vmul.f32 %v2477_v9, %v6240_v59  ;;  %v2403_v62 = vrot.slane %v3856_v12, 1  ;;  %v2405_v33 = vrot.slane %v3857_v13, 1  ;;  %v3860_v9 = vld [vmem:[%s4151_s23 + $0x38] sm:$0xff]  ;;  %v3870_v17 = vld [vmem:[%s4151_s23 + $0x88] sm:$0x3] }
 0x231   : > { %2382 = vadd.xlane.f32.xlu1 %v2381_v43  ;;  %v2536_v22 = vsel %vm2335_vm0, %v2492_v15, 0.0  ;;  %v2402_v0 = vrot.slane %v3858_v32, 1  ;;  %v2407_v10 = vrot.slane %v3859_v34, 1  ;;  %v2408_v25 = vrot.slane %v3860_v9, 1  ;;  %v3862_v43 = vld [vmem:[%s4151_s23 + $0x48] sm:$0xff]  ;;  %v3875_v13 = vld [vmem:[%s4151_s23 + $0xb0] sm:$0xff] }
 0x232   : > { %v2539_v39 = vsel %vm2335_vm0, %v2493_v7, 0.0  ;;  %v6301_v23 = vsel %vm1494_vm8, %v2403_v62, %v2405_v33  ;;  %v2410_v58 = vrot.slane %v3861_v5, 1  ;;  %v2412_v50 = vrot.slane %v3862_v43, 1  ;;  %v3873_v7 = vld [vmem:[%s4151_s23 + $0xa0] sm:$0x3]  ;;  %v3874_v12 = vld [vmem:[%s4151_s23 + $0xa8] sm:$0xff] }
 0x233   : > { %2495 = vadd.xlane.f32.xlu0 %v2494_v3  ;;  %v6306_v27 = vsel %vm1494_vm8, %v2402_v0, %v2403_v62  ;;  %v6312_v38 = vsel %vm1494_vm8, %v2407_v10, %v2408_v25  ;;  %v3863_v3 = vld [vmem:[%s4151_s23 + $0x50] sm:$0xff]  ;;  %v2432_v62 = vrot.slane %v3874_v12, 1  ;;  %v2433_v33 = vrot.slane %v3875_v13, 1  ;;  %v3876_v0 = vld [vmem:[%s4151_s23 + $0xb8] sm:$0x3]  ;;  %v3877_v9 = vld [vmem:[%s4151_s23 + $0xc0] sm:$0xff] }
 0x234   : > { %v2413_v19 = vrot.slane %v3863_v3, 1  ;;  %v2435_v34 = vrot.slane %v3876_v0, 1  ;;  %v3878_v5 = vld [vmem:[%s4151_s23 + $0xc8] sm:$0xff]  ;;  %vm3609_vm7 = vcmask 261120   ;;  %vm3611_vm10 = vcmask 392192  }
 0x235   : > { %2498 = vadd.xlane.f32.xlu1 %v2497_v46  ;;  %v6319_v46 = vsel %vm1494_vm8, %v2408_v25, %v2410_v58  ;;  %v6377_v10 = vsel %vm1494_vm8, %v2432_v62, %v2433_v33  ;;  %v2437_v25 = vrot.slane %v3877_v9, 1  ;;  %v2438_v58 = vrot.slane %v3878_v5, 1 }
 0x236   : > { %v6325_v61 = vsel %vm1494_vm8, %v2412_v50, %v2413_v19  ;;  %v6384_v43 = vsel %vm1494_vm8, %v2433_v33, %v2435_v34  ;;  %v3879_v50 = vld [vmem:[%s4151_s23 + $0xd0] sm:$0x3]  ;;  %vm3613_vm6 = vcmask 523264   ;;  %vm3617_vm1 = vcmask 785408  }
 0x237   : > { %2501 = vadd.xlane.f32.xlu0 %v2500_v52  ;;  %v2415_v52 = vrot.slane %v3864_v20, 1  ;;  %v2440_v3 = vrot.slane %v3879_v50, 1  ;;  %vm3619_vm4 = vcmask 916480  }
 0x239   : > { %2504 = vadd.xlane.f32.xlu1 %v2503_v47  ;;  %v3865_v47 = vld [vmem:[%s4151_s23 + $0x60] sm:$0xff]  ;;  %v6395_v20 = vsel %vm1494_vm8, %v2438_v58, %v2440_v3 }
 0x23a   : > { %v2417_v24 = vrot.slane %v3865_v47, 1 }
 0x23b   : > { %2507 = vadd.xlane.f32.xlu0 %v2506_v26  ;;  %v3866_v26 = vld [vmem:[%s4151_s23 + $0x68] sm:$0xff] }
 0x23c   : > { %v2418_v42 = vrot.slane %v3866_v26, 1 }
 0x23d   : > { %2510 = vadd.xlane.f32.xlu1 %v2509_v4  ;;  %v6332_v4 = vsel %vm1494_vm8, %v2413_v19, %v2415_v52  ;;  %v6390_v19 = vsel %vm1494_vm8, %v2437_v25, %v2438_v58  ;;  %v7599_v52 = vld [vmem:[#allocation22_spill] sm:$0xff] }
 0x23e   : > { %v6338_v56 = vsel %vm1494_vm8, %v2417_v24, %v2418_v42  ;;  %v2627_v47 = vrot.slane %v6254_v40, %v7599_v52 }
 0x23f   : > { %2513 = vadd.xlane.f32.xlu0 %v2512_v45  ;;  %v2420_v45 = vrot.slane %v3867_v48, 1 }
 0x240   : > { %v2629_v24 = vmul.f32 %v2627_v47, %v7597_v57  ;;  %v2628_v26 = vmul.f32 %v2627_v47, %v7596_v60  ;;  %v2630_v48 = vmul.f32 %v2627_v47, %v5844_v28  ;;  %v2637_v12 = vmul.f32 %v2627_v47, %v6133_v11 }
 0x241   : > { %2516 = vadd.xlane.f32.xlu1 %v2515_v35  ;;  %v3868_v35 = vld [vmem:[%s4151_s23 + $0x78] sm:$0xff]  ;;  %v2638_v13 = vmul.f32 %v2627_v47, %v6179_v18  ;;  %v2639_v0 = vmul.f32 %v2627_v47, %v6224_v21  ;;  %v2640_v9 = vmul.f32 %v2627_v47, %v6238_v54  ;;  %v2641_v58 = vmul.f32 %v2627_v47, %v6246_v1 }
 0x242   : > { %v2422_v29 = vrot.slane %v3868_v35, 1  ;;  %v2631_v35 = vmul.f32 %v2627_v47, %v7598_v41  ;;  %v2671_v33 = vsel %vm2335_vm0, %v2637_v12, 0.0  ;;  %v2642_v3 = vmul.f32 %v2627_v47, %v6244_v2 }
 0x243   : > { %2519 = vadd.xlane.f32.xlu0 %v2518_v55  ;;  %v3869_v55 = vld [vmem:[%s4151_s23 + $0x80] sm:$0xff]  ;;  %v2674_v34 = vsel %vm2335_vm0, %v2638_v13, 0.0  ;;  %v2677_v5 = vsel %vm2335_vm0, %v2639_v0, 0.0  ;;  %v2680_v50 = vsel %vm2335_vm0, %v2640_v9, 0.0  ;;  %v2683_v52 = vsel %vm2335_vm0, %v2641_v58, 0.0 }
 0x244   : > { %v2423_v14 = vrot.slane %v3869_v55, 1  ;;  %v2632_v55 = vmul.f32 %v2627_v47, %v5974_v37 }
 0x245   : > { %2522 = vadd.xlane.f32.xlu1 %v2521_v63  ;;  %v6345_v63 = vsel %vm1494_vm8, %v2418_v42, %v2420_v45  ;;  %v2647_v42 = vsel %vm2335_vm0, %v2629_v24, 0.0  ;;  %v2644_v45 = vsel %vm2335_vm0, %v2628_v26, 0.0  ;;  %v2643_v24 = vmul.f32 %v2627_v47, %v6240_v59  ;;  %v6435_v26 = vpop.xlane.xlu1 %2337 }
 0x246   : > { %v6351_v8 = vsel %vm1494_vm8, %v2422_v29, %v2423_v14  ;;  %v2650_v29 = vsel %vm2335_vm0, %v2630_v48, 0.0 }
 0x247   : > { %2525 = vadd.xlane.f32.xlu0 %v2524_v36  ;;  %v2425_v36 = vrot.slane %v3870_v17, 1  ;;  %v2633_v17 = vmul.f32 %v2627_v47, %v5999_v30 }
 0x248   : > { %v6427_v25 = vpop.xlane.xlu0 %2340 }
 0x249   : > { %2528 = vadd.xlane.f32.xlu1 %v2527_v51  ;;  %v3871_v51 = vld [vmem:[%s4151_s23 + $0x90] sm:$0xff] }
 0x24a   : > { %v2427_v16 = vrot.slane %v3871_v51, 1  ;;  %v2634_v51 = vmul.f32 %v2627_v47, %v6040_v6 }
 0x24b   : > { %2531 = vadd.xlane.f32.xlu0 %v2530_v49  ;;  %v3872_v49 = vld [vmem:[%s4151_s23 + $0x98] sm:$0xff]  ;;  %s3999_s23 = smov 126  }
 0x24c   : > { %v2428_v15 = vrot.slane %v3872_v49, 1  ;;  %v2635_v49 = vmul.f32 %v2627_v47, %v6077_v53 }
 0x24d   : > { %2534 = vadd.xlane.f32.xlu1 %v2533_v31  ;;  %v6358_v31 = vsel %vm1494_vm8, %v2423_v14, %v2425_v36  ;;  %v2653_v14 = vsel %vm2335_vm0, %v2631_v35, 0.0  ;;  %v2656_v36 = vsel %vm2335_vm0, %v2632_v55, 0.0 }
 0x24f   : > { %2537 = vadd.xlane.f32.xlu0 %v2536_v22  ;;  %v2430_v22 = vrot.slane %v3873_v7, 1  ;;  %v2636_v7 = vmul.f32 %v2627_v47, %v6101_v44 }
 0x251   : > { %2540 = vadd.xlane.f32.xlu1 %v2539_v39  ;;  %v6364_v39 = vsel %vm1494_vm8, %v2427_v16, %v2428_v15  ;;  %v6371_v32 = vsel %vm1494_vm8, %v2428_v15, %v2430_v22  ;;  %v2659_v16 = vsel %vm2335_vm0, %v2633_v17, 0.0  ;;  %v2662_v15 = vsel %vm2335_vm0, %v2634_v51, 0.0 }
 0x252   : > { %v2665_v22 = vsel %vm2335_vm0, %v2635_v49, 0.0  ;;  %v2668_v62 = vsel %vm2335_vm0, %v2636_v7, 0.0  ;;  %vm3476_vm8 = vcmask 1043459  }
 0x257   : > { %v6438_v48 = vpop.xlane.xlu0 %2343 }
 0x25e   : > { %v6441_v35 = vpop.xlane.xlu1 %2346 }
 0x262   : > { %2562 = vrot.lane.b32.xlu1 %v6301_v23, %s3998_s14 }
 0x265   : > { %2560 = vrot.lane.b32.xlu0 %v6306_v27, %s3998_s14 }
 0x266   : > { %2564 = vrot.lane.b32.xlu1 %v6312_v38, %s3998_s14 }
 0x269   : > { %2566 = vrot.lane.b32.xlu0 %v6319_v46, %s3998_s14 }
 0x26a   : > { %2568 = vrot.lane.b32.xlu1 %v6325_v61, %s3998_s14 }
 0x26d   : > { %2570 = vrot.lane.b32.xlu0 %v6332_v4, %s3998_s14 }
 0x26e   : > { %2572 = vrot.lane.b32.xlu1 %v6338_v56, %s3998_s14 }
 0x271   : > { %2574 = vrot.lane.b32.xlu0 %v6345_v63, %s3998_s14 }
 0x272   : > { %2576 = vrot.lane.b32.xlu1 %v6351_v8, %s3998_s14 }
 0x275   : > { %2578 = vrot.lane.b32.xlu0 %v6358_v31, %s3998_s14 }
 0x276   : > { %2580 = vrot.lane.b32.xlu1 %v6364_v39, %s3998_s14 }
 0x279   : > { %2582 = vrot.lane.b32.xlu0 %v6371_v32, %s3998_s14  ;;  %v6445_v55 = vpop.xlane.xlu1 %2352 }
 0x27a   : > { %2584 = vrot.lane.b32.xlu1 %v6377_v10, %s3998_s14 }
 0x27d   : > { %2586 = vrot.lane.b32.xlu0 %v6384_v43, %s3998_s14 }
 0x27e   : > { %2588 = vrot.lane.b32.xlu1 %v6390_v19, %s3998_s14 }
 0x281   : > { %2590 = vrot.lane.b32.xlu0 %v6395_v20, %s3998_s14  ;;  %s4007_s14 = smov 48  }
 0x28a   : > { %v6449_v47 = vpop.xlane.xlu1 %2358 }
 0x2a0   : > { %2648 = vadd.xlane.f32.xlu0 %v2647_v42  ;;  %v2686_v42 = vsel %vm2335_vm0, %v2642_v3, 0.0 }
 0x2a2   : > { %2645 = vadd.xlane.f32.xlu1 %v2644_v45  ;;  %v2689_v45 = vsel %vm2335_vm0, %v2643_v24, 0.0 }
 0x2a4   : > { %2651 = vadd.xlane.f32.xlu0 %v2650_v29  ;;  %v6443_v29 = vpop.xlane.xlu0 %2349 }
 0x2a6   : > { %2654 = vadd.xlane.f32.xlu1 %v2653_v14 }
 0x2a8   : > { %2657 = vadd.xlane.f32.xlu0 %v2656_v36  ;;  %v6447_v14 = vpop.xlane.xlu0 %2355  ;;  %v6453_v36 = vpop.xlane.xlu1 %2364 }
 0x2aa   : > { %2660 = vadd.xlane.f32.xlu1 %v2659_v16 }
 0x2ac   : > { %2663 = vadd.xlane.f32.xlu0 %v2662_v15  ;;  %v6451_v17 = vpop.xlane.xlu0 %2361  ;;  %v6457_v16 = vpop.xlane.xlu1 %2370 }
 0x2ae   : > { %2666 = vadd.xlane.f32.xlu1 %v2665_v22 }
 0x2b0   : > { %2669 = vadd.xlane.f32.xlu0 %v2668_v62  ;;  %v6455_v51 = vpop.xlane.xlu0 %2367 }
 0x2b2   : > { %2672 = vadd.xlane.f32.xlu1 %v2671_v33 }
 0x2b4   : > { %2675 = vadd.xlane.f32.xlu0 %v2674_v34  ;;  %v6459_v49 = vpop.xlane.xlu0 %2373 }
 0x2b6   : > { %2678 = vadd.xlane.f32.xlu1 %v2677_v5  ;;  %v6463_v15 = vpop.xlane.xlu1 %2376 }
 0x2b8   : > { %2681 = vadd.xlane.f32.xlu0 %v2680_v50  ;;  %v6465_v7 = vpop.xlane.xlu0 %2379 }
 0x2ba   : > { %2684 = vadd.xlane.f32.xlu1 %v2683_v52  ;;  %v6469_v22 = vpop.xlane.xlu1 %2382 }
 0x2bc   : > { %2687 = vadd.xlane.f32.xlu0 %v2686_v42  ;;  %v6472_v12 = vpop.xlane.xlu0 %2495 }
 0x2be   : > { %2690 = vadd.xlane.f32.xlu1 %v2689_v45  ;;  %v6476_v62 = vpop.xlane.xlu1 %2498 }
 0x2c0   : > { %v6479_v13 = vpop.xlane.xlu0 %2501 }
 0x2c2   : > { %v6483_v33 = vpop.xlane.xlu1 %2504 }
 0x2c3   : > { %7600 = vst [vmem:[#allocation54_spill] sm:$0xff] %v6483_v33 }
 0x2c4   : > { %v6486_v0 = vpop.xlane.xlu0 %2507 }
 0x2c5   : > { %7601 = vst [vmem:[#allocation13_spill] sm:$0xff] %v6486_v0 }
 0x2c6   : > { %v6490_v34 = vpop.xlane.xlu1 %2510 }
 0x2c7   : > { %7602 = vst [vmem:[#allocation17_spill] sm:$0xff] %v6490_v34  ;;  %v7611_v34 = vld [vmem:[#allocation16_spill] sm:$0xff] }
 0x2c8   : > { %v6493_v9 = vpop.xlane.xlu0 %2513 }
 0x2c9   : > { %7603 = vst [vmem:[#allocation15_spill] sm:$0xff] %v6493_v9  ;;  %v7612_v9 = vsub.s32 3, %v7611_v34 }
 0x2ca   : > { %v6497_v5 = vpop.xlane.xlu1 %2516 }
 0x2cb   : > { %7604 = vst [vmem:[#allocation20_spill] sm:$0xff] %v6497_v5  ;;  %v2777_v33 = vrot.slane %v6254_v40, %v7612_v9 }
 0x2cc   : > { %v6499_v58 = vpop.xlane.xlu0 %2519 }
 0x2cd   : > { %7605 = vst [vmem:[#allocation30_spill] sm:$0xff] %v6499_v58  ;;  %v2779_v5 = vmul.f32 %v2777_v33, %v7597_v57  ;;  %v2781_v34 = vmul.f32 %v2777_v33, %v7598_v41  ;;  %v2782_v9 = vmul.f32 %v2777_v33, %v5974_v37 }
 0x2ce   : > { %v6501_v50 = vpop.xlane.xlu1 %2522 }
 0x2cf   : > { %2712 = vrot.lane.b32.xlu1 %v6301_v23, %s3999_s23  ;;  %7606 = vst [vmem:[#allocation32_spill] sm:$0xff] %v6501_v50  ;;  %v2778_v50 = vmul.f32 %v2777_v33, %v7596_v60 }
 0x2d0   : > { %v6503_v3 = vpop.xlane.xlu0 %2525 }
 0x2d1   : > { %7607 = vst [vmem:[#allocation51_spill] sm:$0xff] %v6503_v3 }
 0x2d2   : > { %2710 = vrot.lane.b32.xlu0 %v6306_v27, %s3999_s23  ;;  %v6505_v52 = vpop.xlane.xlu1 %2528 }
 0x2d3   : > { %2714 = vrot.lane.b32.xlu1 %v6312_v38, %s3999_s23  ;;  %7608 = vst [vmem:[#allocation23_spill] sm:$0xff] %v6505_v52  ;;  %v2797_v52 = vsel %vm2335_vm0, %v2779_v5, 0.0  ;;  %v2803_v5 = vsel %vm2335_vm0, %v2781_v34, 0.0 }
 0x2d4   : > { %v6507_v24 = vpop.xlane.xlu0 %2531 }
 0x2d5   : > { %7609 = vst [vmem:[#allocation33_spill] sm:$0xff] %v6507_v24  ;;  %v2780_v24 = vmul.f32 %v2777_v33, %v5844_v28  ;;  %v2783_v28 = vmul.f32 %v2777_v33, %v5999_v30 }
 0x2d6   : > { %2716 = vrot.lane.b32.xlu0 %v6319_v46, %s3999_s23  ;;  %v6509_v42 = vpop.xlane.xlu1 %2534 }
 0x2d7   : > { %2718 = vrot.lane.b32.xlu1 %v6325_v61, %s3999_s23  ;;  %7610 = vst [vmem:[#allocation18_spill] sm:$0xff] %v6509_v42  ;;  %v2794_v42 = vsel %vm2335_vm0, %v2778_v50, 0.0  ;;  %v2800_v57 = vsel %vm2335_vm0, %v2780_v24, 0.0  ;;  %v2784_v50 = vmul.f32 %v2777_v33, %v6040_v6  ;;  %v2785_v24 = vmul.f32 %v2777_v33, %v6077_v53 }
 0x2d8   : > { %v6511_v45 = vpop.xlane.xlu0 %2537 }
 0x2d9   : > { %v2812_v37 = vsel %vm2335_vm0, %v2784_v50, 0.0  ;;  %v2815_v30 = vsel %vm2335_vm0, %v2785_v24, 0.0 }
 0x2da   : > { %2720 = vrot.lane.b32.xlu0 %v6332_v4, %s3999_s23  ;;  %v6516_v0 = vpop.xlane.xlu1 %2540 }
 0x2db   : > { %2722 = vrot.lane.b32.xlu1 %v6338_v56, %s3999_s23  ;;  %7613 = vst [vmem:[#allocation61_spill] sm:$0xff] %v6516_v0 }
 0x2dc   : > { %v6519_v58 = vpop.permute.xlu0 %2560 }
 0x2de   : > { %2724 = vrot.lane.b32.xlu0 %v6345_v63, %s3999_s23  ;;  %v6524_v3 = vpop.permute.xlu1 %2562 }
 0x2df   : > { %2726 = vrot.lane.b32.xlu1 %v6351_v8, %s3999_s23 }
 0x2e0   : > { %v6528_v40 = vpop.permute.xlu0 %2566 }
 0x2e2   : > { %2728 = vrot.lane.b32.xlu0 %v6358_v31, %s3999_s23  ;;  %v6532_v60 = vpop.permute.xlu1 %2564 }
 0x2e3   : > { %2730 = vrot.lane.b32.xlu1 %v6364_v39, %s3999_s23 }
 0x2e4   : > { %v6538_v41 = vpop.permute.xlu0 %2570 }
 0x2e6   : > { %2732 = vrot.lane.b32.xlu0 %v6371_v32, %s3999_s23  ;;  %v6544_v34 = vpop.permute.xlu1 %2568 }
 0x2e7   : > { %2734 = vrot.lane.b32.xlu1 %v6377_v10, %s3999_s23 }
 0x2e8   : > { %v6548_v6 = vpop.permute.xlu0 %2574 }
 0x2ea   : > { %2736 = vrot.lane.b32.xlu0 %v6384_v43, %s3999_s23  ;;  %v6552_v53 = vpop.permute.xlu1 %2572 }
 0x2eb   : > { %2738 = vrot.lane.b32.xlu1 %v6390_v19, %s3999_s23 }
 0x2ee   : > { %2740 = vrot.lane.b32.xlu0 %v6395_v20, %s3999_s23  ;;  %s4008_s23 = smov 96  }
 0x30d   : > { %2798 = vadd.xlane.f32.xlu0 %v2797_v52  ;;  %v2806_v52 = vsel %vm2335_vm0, %v2782_v9, 0.0  ;;  %v2787_v9 = vmul.f32 %v2777_v33, %v6133_v11  ;;  %v6558_v11 = vpop.permute.xlu0 %2578 }
 0x30f   : > { %2795 = vadd.xlane.f32.xlu1 %v2794_v42  ;;  %v2809_v42 = vsel %vm2335_vm0, %v2783_v28, 0.0  ;;  %v2788_v28 = vmul.f32 %v2777_v33, %v6179_v18 }
 0x311   : > { %2801 = vadd.xlane.f32.xlu0 %v2800_v57  ;;  %v2786_v57 = vmul.f32 %v2777_v33, %v6101_v44  ;;  %v2789_v44 = vmul.f32 %v2777_v33, %v6224_v21  ;;  %v2824_v50 = vsel %vm2335_vm0, %v2788_v28, 0.0 }
 0x313   : > { %2804 = vadd.xlane.f32.xlu1 %v2803_v5  ;;  %v2818_v5 = vsel %vm2335_vm0, %v2786_v57, 0.0  ;;  %v2827_v24 = vsel %vm2335_vm0, %v2789_v44, 0.0  ;;  %v2792_v57 = vmul.f32 %v2777_v33, %v6244_v2 }
 0x315   : > { %2807 = vadd.xlane.f32.xlu0 %v2806_v52  ;;  %v2821_v52 = vsel %vm2335_vm0, %v2787_v9, 0.0  ;;  %v2793_v9 = vmul.f32 %v2777_v33, %v6240_v59 }
 0x317   : > { %2810 = vadd.xlane.f32.xlu1 %v2809_v42  ;;  %v2790_v42 = vmul.f32 %v2777_v33, %v6238_v54  ;;  %v6568_v54 = vpop.permute.xlu0 %2582 }
 0x319   : > { %2813 = vadd.xlane.f32.xlu0 %v2812_v37  ;;  %v2791_v37 = vmul.f32 %v2777_v33, %v6246_v1  ;;  %v2830_v18 = vsel %vm2335_vm0, %v2790_v42, 0.0  ;;  %v2839_v1 = vsel %vm2335_vm0, %v2793_v9, 0.0 }
 0x31b   : > { %2816 = vadd.xlane.f32.xlu1 %v2815_v30  ;;  %v6564_v30 = vpop.permute.xlu1 %2576  ;;  %v2833_v21 = vsel %vm2335_vm0, %v2791_v37, 0.0 }
 0x31d   : > { %2819 = vadd.xlane.f32.xlu0 %v2818_v5  ;;  %v2836_v5 = vsel %vm2335_vm0, %v2792_v57, 0.0  ;;  %vm3615_vm0 = vcmask 654336  }
 0x31f   : > { %2822 = vadd.xlane.f32.xlu1 %v2821_v52  ;;  %v6571_v28 = vpop.permute.xlu1 %2580  ;;  %v6574_v52 = vpop.permute.xlu0 %2586 }
 0x321   : > { %2825 = vadd.xlane.f32.xlu0 %v2824_v50 }
 0x323   : > { %2828 = vadd.xlane.f32.xlu1 %v2827_v24  ;;  %v6576_v2 = vpop.permute.xlu1 %2584  ;;  %v6578_v44 = vpop.permute.xlu0 %2590 }
 0x324   : > { %7614 = vst [vmem:[#allocation25_spill] sm:$0xff] %v6578_v44 }
 0x325   : > { %2831 = vadd.xlane.f32.xlu0 %v2830_v18 }
 0x327   : > { %2834 = vadd.xlane.f32.xlu1 %v2833_v21  ;;  %v6580_v50 = vpop.permute.xlu1 %2588 }
 0x329   : > { %2837 = vadd.xlane.f32.xlu0 %v2836_v5  ;;  %v6582_v59 = vpop.xlane.xlu0 %2648 }
 0x32b   : > { %2840 = vadd.xlane.f32.xlu1 %v2839_v1  ;;  %v6584_v33 = vpop.xlane.xlu1 %2645  ;;  %v2385_v1 = vstv %s2384_s13  ;;  %s4010_s13 = smov 112  }
 0x32c   : > { %v2386_v0 = vadd.f32 %v2385_v1, %v6435_v26 }
 0x32d   : > { %v6588_v42 = vpop.xlane.xlu0 %2651 }
 0x32f   : > { %v6592_v24 = vpop.xlane.xlu1 %2654 }
 0x331   : > { %v6598_v37 = vpop.xlane.xlu0 %2657 }
 0x332   : > { %7615 = vst [vmem:[#allocation86_spill] sm:$0xff] %v6598_v37 }
 0x333   : > { %v6602_v18 = vpop.xlane.xlu1 %2660 }
 0x334   : > { %7616 = vst [vmem:[#allocation89_spill] sm:$0xff] %v6602_v18  ;;  %v2390_v18 = vadd.f32 %v2385_v1, %v6443_v29 }
 0x335   : > { %v6608_v57 = vpop.xlane.xlu0 %2663 }
 0x336   : > { %7617 = vst [vmem:[#allocation81_spill] sm:$0xff] %v6608_v57  ;;  %v2388_v57 = vadd.f32 %v2385_v1, %v6438_v48  ;;  %v2392_v48 = vadd.f32 %v2385_v1, %v6447_v14 }
 0x337   : > { %v6612_v21 = vpop.xlane.xlu1 %2666 }
 0x338   : > { %7618 = vst [vmem:[#allocation28_spill] sm:$0xff] %v6612_v21  ;;  %v2464_v29 = vadd.f32 %v6338_v56, %v2392_v48 }
 0x339   : > { %v6618_v9 = vpop.xlane.xlu0 %2669 }
 0x33a   : > { %7619 = vst [vmem:[#allocation55_spill] sm:$0xff] %v6618_v9  ;;  %v2387_v9 = vadd.f32 %v2385_v1, %v6427_v25  ;;  %v2460_v25 = vadd.f32 %v6312_v38, %v2388_v57 }
 0x33b   : > { %v6622_v5 = vpop.xlane.xlu1 %2672 }
 0x33c   : > { %2862 = vrot.lane.b32.xlu1 %v6301_v23, %s4000_s9  ;;  %7620 = vst [vmem:[#allocation44_spill] sm:$0xff] %v6622_v5  ;;  %v2458_v5 = vadd.f32 %v6306_v27, %v2386_v0  ;;  %v2459_v26 = vadd.f32 %v6301_v23, %v2387_v9  ;;  %v2391_v23 = vadd.f32 %v2385_v1, %v6445_v55 }
 0x33d   : > { %v6628_v44 = vpop.xlane.xlu0 %2675 }
 0x33e   : > { %7621 = vst [vmem:[#allocation64_spill] sm:$0xff] %v6628_v44  ;;  %v2463_v57 = vadd.f32 %v6332_v4, %v2391_v23 }
 0x33f   : > { %2860 = vrot.lane.b32.xlu0 %v6306_v27, %s4000_s9  ;;  %v6634_v21 = vpop.xlane.xlu1 %2678  ;;  %v2462_v27 = vadd.f32 %v6325_v61, %v2390_v18 }
 0x340   : > { %2864 = vrot.lane.b32.xlu1 %v6312_v38, %s4000_s9  ;;  %7622 = vst [vmem:[#allocation76_spill] sm:$0xff] %v6634_v21  ;;  %v2389_v21 = vadd.f32 %v2385_v1, %v6441_v35  ;;  %v2394_v38 = vadd.f32 %v2385_v1, %v6451_v17 }
 0x341   : > { %v6642_v44 = vpop.xlane.xlu0 %2681 }
 0x342   : > { %7623 = vst [vmem:[#allocation75_spill] sm:$0xff] %v6642_v44  ;;  %v2461_v44 = vadd.f32 %v6319_v46, %v2389_v21  ;;  %v2466_v18 = vadd.f32 %v6351_v8, %v2394_v38 }
 0x343   : > { %2866 = vrot.lane.b32.xlu0 %v6319_v46, %s4000_s9  ;;  %v6648_v37 = vpop.xlane.xlu1 %2684  ;;  %v2396_v46 = vadd.f32 %v2385_v1, %v6455_v51  ;;  %v2397_v51 = vadd.f32 %v2385_v1, %v6457_v16 }
 0x344   : > { %2868 = vrot.lane.b32.xlu1 %v6325_v61, %s4000_s9  ;;  %v2393_v61 = vadd.f32 %v2385_v1, %v6449_v47  ;;  %v2398_v47 = vadd.f32 %v2385_v1, %v6459_v49  ;;  %v6682_v49 = vstv %s3737_s17  ;;  %s297_s17 = sand.u32 1, %s3967_s25  }
 0x345   : > { %v6652_v0 = vpop.xlane.xlu0 %2687  ;;  %v2469_v9 = vadd.f32 %v6371_v32, %v2397_v51 }
 0x346   : > { %v2465_v55 = vadd.f32 %v6345_v63, %v2393_v61 }
 0x347   : > { %2870 = vrot.lane.b32.xlu0 %v6332_v4, %s4000_s9  ;;  %v6658_v35 = vpop.xlane.xlu1 %2690  ;;  %v2468_v4 = vadd.f32 %v6364_v39, %v2396_v46  ;;  %v7628_v46 = vld [vmem:[#allocation30_spill] sm:$0xff] }
 0x348   : > { %2872 = vrot.lane.b32.xlu1 %v6338_v56, %s4000_s9  ;;  %v2395_v56 = vadd.f32 %v2385_v1, %v6453_v36  ;;  %v2400_v36 = vadd.f32 %v2385_v1, %v6465_v7  ;;  %v2544_v7 = vadd.f32 %v6682_v49, %v6472_v12 }
 0x349   : > { %v6662_v14 = vpop.permute.xlu0 %2710 }
 0x34b   : > { %2874 = vrot.lane.b32.xlu0 %v6345_v63, %s4000_s9  ;;  %v6668_v17 = vpop.permute.xlu1 %2712  ;;  %v2470_v63 = vadd.f32 %v6377_v10, %v2398_v47 }
 0x34c   : > { %2876 = vrot.lane.b32.xlu1 %v6351_v8, %s4000_s9  ;;  %v2467_v8 = vadd.f32 %v6358_v31, %v2395_v56  ;;  %v7629_v56 = vld [vmem:[#allocation20_spill] sm:$0xff] }
 0x34f   : > { %2878 = vrot.lane.b32.xlu0 %v6358_v31, %s4000_s9  ;;  %v6678_v21 = vpop.permute.xlu1 %2714  ;;  %v2472_v31 = vadd.f32 %v6390_v19, %v2400_v36  ;;  %v7631_v36 = vld [vmem:[#allocation32_spill] sm:$0xff] }
 0x350   : > { %2880 = vrot.lane.b32.xlu1 %v6364_v39, %s4000_s9  ;;  %v2399_v39 = vadd.f32 %v2385_v1, %v6463_v15 }
 0x352   : > { %v2471_v16 = vadd.f32 %v6384_v43, %v2399_v39  ;;  %v7632_v39 = vld [vmem:[#allocation33_spill] sm:$0xff] }
 0x353   : > { %2882 = vrot.lane.b32.xlu0 %v6371_v32, %s4000_s9  ;;  %v2608_v32 = vadd.f32 %v6519_v58, %v2544_v7 }
 0x354   : > { %2884 = vrot.lane.b32.xlu1 %v6377_v10, %s4000_s9  ;;  %v2401_v10 = vadd.f32 %v2385_v1, %v6469_v22  ;;  %v7624_v1 = vld [vmem:[#allocation13_spill] sm:$0xff] }
 0x355   : > { %v2548_v58 = vadd.f32 %v6682_v49, %v7624_v1 }
 0x357   : > { %2886 = vrot.lane.b32.xlu0 %v6384_v43, %s4000_s9  ;;  %v2545_v43 = vadd.f32 %v6682_v49, %v6476_v62  ;;  %v2612_v23 = vadd.f32 %v6544_v34, %v2548_v58  ;;  %v7626_v62 = vld [vmem:[#allocation15_spill] sm:$0xff]  ;;  %v2552_v34 = vadd.f32 %v6682_v49, %v7628_v46 }
 0x358   : > { %2888 = vrot.lane.b32.xlu1 %v6390_v19, %s4000_s9  ;;  %v2546_v19 = vadd.f32 %v6682_v49, %v6479_v13 }
 0x35a   : > { %v2610_v22 = vadd.f32 %v6532_v60, %v2546_v19  ;;  %v2550_v60 = vadd.f32 %v6682_v49, %v7626_v62  ;;  %v6751_v19 = vstv %s3738_s18  ;;  %s3731_s18 = sshll.u32 %s297_s17, 2 }
 0x35b   : > { %2890 = vrot.lane.b32.xlu0 %v6395_v20, %s4000_s9  ;;  %s4009_s9 = smov 80  }
 0x35c   : > { %2989 = vperm.xlu1 %3853, %v2458_v5   ;;  %v2614_v61 = vadd.f32 %v6552_v53, %v2550_v60 }
 0x35f   : > { %2992 = vperm.xlu0 %3852, %v2459_v26   ;;  %v6691_v26 = vpop.permute.xlu1 %2718 }
 0x360   : > { %2995 = vperm.xlu1 %3853, %v2460_v25   ;;  %v2473_v25 = vadd.f32 %v6395_v20, %v2401_v10  ;;  %v7625_v20 = vld [vmem:[#allocation54_spill] sm:$0xff]  ;;  %v7633_v10 = vld [vmem:[#allocation23_spill] sm:$0xff] }
 0x361   : > { %v2547_v13 = vadd.f32 %v6682_v49, %v7625_v20 }
 0x363   : > { %3001 = vperm.xlu0 %3852, %v2462_v27   ;;  %v6702_v12 = vpop.permute.xlu1 %2722  ;;  %v2609_v27 = vadd.f32 %v6524_v3, %v2545_v43 }
 0x364   : > { %2998 = vperm.xlu1 %3853, %v2461_v44   ;;  %v6672_v44 = vpop.permute.xlu0 %2716 }
 0x367   : > { %3007 = vperm.xlu0 %3852, %v2464_v29   ;;  %v2611_v29 = vadd.f32 %v6528_v40, %v2547_v13  ;;  %v6715_v38 = vpop.permute.xlu1 %2726  ;;  %v2551_v40 = vadd.f32 %v6682_v49, %v7629_v56 }
 0x368   : > { %3004 = vperm.xlu1 %3853, %v2463_v57   ;;  %v6684_v5 = vpop.permute.xlu0 %2720  ;;  %v7627_v57 = vld [vmem:[#allocation17_spill] sm:$0xff] }
 0x369   : > { %v2549_v3 = vadd.f32 %v6682_v49, %v7627_v57  ;;  %v2615_v51 = vadd.f32 %v6548_v6, %v2551_v40  ;;  %v2555_v6 = vadd.f32 %v6682_v49, %v7633_v10  ;;  %v7635_v10 = vld [vmem:[#allocation86_spill] sm:$0xff] }
 0x36b   : > { %3013 = vperm.xlu0 %3852, %v2466_v18   ;;  %v6728_v47 = vpop.permute.xlu1 %2730 }
 0x36c   : > { %3010 = vperm.xlu1 %3853, %v2465_v55   ;;  %v6694_v15 = vpop.permute.xlu0 %2724  ;;  %v2613_v55 = vadd.f32 %v6538_v41, %v2549_v3  ;;  %v2553_v41 = vadd.f32 %v6682_v49, %v7631_v36 }
 0x36f   : > { %3019 = vperm.xlu0 %3852, %v2468_v4   ;;  %v2616_v4 = vadd.f32 %v6564_v30, %v2552_v34  ;;  %v2556_v30 = vadd.f32 %v6682_v49, %v7632_v39 }
 0x370   : > { %3016 = vperm.xlu1 %3853, %v2467_v8   ;;  %v6707_v48 = vpop.permute.xlu0 %2728  ;;  %v7630_v8 = vld [vmem:[#allocation51_spill] sm:$0xff] }
 0x371   : > { %v2554_v53 = vadd.f32 %v6682_v49, %v7630_v8  ;;  %v2620_v7 = vadd.f32 %v6576_v2, %v2556_v30 }
 0x373   : > { %3025 = vperm.xlu0 %3852, %v2470_v63  }
 0x374   : > { %3022 = vperm.xlu1 %3853, %v2469_v9   ;;  %v6720_v18 = vpop.permute.xlu0 %2732  ;;  %v2618_v9 = vadd.f32 %v6571_v28, %v2554_v53  ;;  %v2558_v28 = vadd.f32 %v6682_v49, %v6511_v45  ;;  %v2694_v45 = vadd.f32 %v6751_v19, %v6584_v33 }
 0x377   : > { %3031 = vperm.xlu0 %3852, %v2472_v31   ;;  %v2617_v31 = vadd.f32 %v6558_v11, %v2553_v41  ;;  %v7634_v11 = vld [vmem:[#allocation18_spill] sm:$0xff] }
 0x378   : > { %3028 = vperm.xlu1 %3853, %v2471_v16   ;;  %v6733_v63 = vpop.permute.xlu0 %2736  ;;  %v6741_v16 = vpop.permute.xlu1 %2734  ;;  %v2557_v43 = vadd.f32 %v6682_v49, %v7634_v11 }
 0x37a   : > { %v2621_v58 = vadd.f32 %v6574_v52, %v2557_v43  ;;  %v2696_v52 = vadd.f32 %v6751_v19, %v6588_v42 }
 0x37b   : > { %3037 = vperm.xlu0 %3852, %v2608_v32  }
 0x37c   : > { %3034 = vperm.xlu1 %3853, %v2473_v25   ;;  %v6746_v32 = vpop.permute.xlu0 %2740  ;;  %v2619_v25 = vadd.f32 %v6568_v54, %v2555_v6  ;;  %v6756_v1 = vpop.permute.xlu1 %2738  ;;  %v2760_v33 = vadd.f32 %v6678_v21, %v2696_v52  ;;  %v6785_v21 = vstv %s3739_s19  ;;  %v2698_v6 = vadd.f32 %v6751_v19, %v7635_v10  ;;  %s3741_s19 = sshll.u32 %s3979_s28, 1 }
 0x37e   : > { %v2762_v43 = vadd.f32 %v6691_v26, %v2698_v6 }
 0x37f   : > { %3043 = vperm.xlu0 %3852, %v2610_v22   ;;  %v2622_v22 = vadd.f32 %v6580_v50, %v2558_v28  ;;  %v2697_v50 = vadd.f32 %v6751_v19, %v6592_v24 }
 0x380   : > { %3040 = vperm.xlu1 %3853, %v2609_v27   ;;  %v2695_v27 = vadd.f32 %v6751_v19, %v6582_v59 }
 0x381   : > { %v2761_v59 = vadd.f32 %v6672_v44, %v2697_v50 }
 0x382   : > { %v2759_v54 = vadd.f32 %v6668_v17, %v2695_v27 }
 0x383   : > { %3049 = vperm.xlu0 %3852, %v2612_v23   ;;  %v2758_v23 = vadd.f32 %v6662_v14, %v2694_v45 }
 0x384   : > { %3046 = vperm.xlu1 %3853, %v2611_v29  }
 0x387   : > { %3055 = vperm.xlu0 %3852, %v2614_v61  }
 0x388   : > { %3052 = vperm.xlu1 %3853, %v2613_v55  }
 0x38b   : > { %3061 = vperm.xlu0 %3852, %v2616_v4  }
 0x38c   : > { %3058 = vperm.xlu1 %3853, %v2615_v51  }
 0x38f   : > { %3067 = vperm.xlu0 %3852, %v2618_v9  }
 0x390   : > { %3064 = vperm.xlu1 %3853, %v2617_v31  }
 0x393   : > { %3073 = vperm.xlu0 %3852, %v2620_v7   ;;  %v7636_v7 = vld [vmem:[#allocation89_spill] sm:$0xff] }
 0x394   : > { %3070 = vperm.xlu1 %3853, %v2619_v25   ;;  %v2699_v28 = vadd.f32 %v6751_v19, %v7636_v7  ;;  %v7642_v7 = vld [vmem:[#allocation16_spill] sm:$0xff] }
 0x396   : > { %v2799_v2 = vpop.xlane.xlu0 %2798  ;;  %v2763_v11 = vadd.f32 %v6684_v5, %v2699_v28 }
 0x397   : > { %3079 = vperm.xlu0 %3852, %v2622_v22   ;;  %v2845_v4 = vadd.f32 %v6785_v21, %v2799_v2 }
 0x398   : > { %v2796_v20 = vpop.xlane.xlu1 %2795  ;;  %3076 = vperm.xlu1 %3853, %v2621_v58  }
 0x399   : > { %v2844_v34 = vadd.f32 %v6785_v21, %v2796_v20 }
 0x39a   : > { %v2802_v13 = vpop.xlane.xlu0 %2801 }
 0x39b   : > { %3088 = vperm.xlu0 %3852, %v2759_v54   ;;  %v2846_v36 = vadd.f32 %v6785_v21, %v2802_v13  ;;  %v7637_v13 = vld [vmem:[#allocation81_spill] sm:$0xff] }
 0x39c   : > { %v2805_v62 = vpop.xlane.xlu1 %2804  ;;  %3085 = vperm.xlu1 %3853, %v2758_v23   ;;  %v2700_v50 = vadd.f32 %v6751_v19, %v7637_v13  ;;  %v7638_v23 = vld [vmem:[#allocation28_spill] sm:$0xff] }
 0x39d   : > { %v2847_v41 = vadd.f32 %v6785_v21, %v2805_v62  ;;  %v2701_v52 = vadd.f32 %v6751_v19, %v7638_v23 }
 0x39e   : > { %v2808_v60 = vpop.xlane.xlu0 %2807 }
 0x39f   : > { %3094 = vperm.xlu0 %3852, %v2761_v59   ;;  %v2848_v2 = vadd.f32 %v6785_v21, %v2808_v60  ;;  %v2765_v26 = vadd.f32 %v6694_v15, %v2701_v52  ;;  %v2764_v59 = vadd.f32 %v6702_v12, %v2700_v50 }
 0x3a0   : > { %v2811_v17 = vpop.xlane.xlu1 %2810  ;;  %3091 = vperm.xlu1 %3853, %v2760_v33  }
 0x3a1   : > { %v2849_v58 = vadd.f32 %v6785_v21, %v2811_v17 }
 0x3a2   : > { %v2814_v29 = vpop.xlane.xlu0 %2813 }
 0x3a3   : > { %v2850_v60 = vadd.f32 %v6785_v21, %v2814_v29 }
 0x3a4   : > { %v2817_v57 = vpop.xlane.xlu1 %2816 }
 0x3a5   : > { %v2851_v33 = vadd.f32 %v6785_v21, %v2817_v57 }
 0x3a6   : > { %v6771_v3 = vpop.xlane.xlu0 %2819 }
 0x3a8   : > { %v6773_v24 = vpop.xlane.xlu1 %2822 }
 0x3aa   : > { %v6775_v14 = vpop.xlane.xlu0 %2825 }
 0x3ac   : > { %v6777_v42 = vpop.xlane.xlu1 %2828 }
 0x3ae   : > { %v6779_v44 = vpop.xlane.xlu0 %2831 }
 0x3b0   : > { %v6781_v61 = vpop.xlane.xlu1 %2834 }
 0x3b2   : > { %v6783_v46 = vpop.xlane.xlu0 %2837 }
 0x3b4   : > { %v6788_v55 = vpop.xlane.xlu1 %2840 }
 0x3b6   : > { %v2861_v56 = vpop.permute.xlu0 %2860 }
 0x3b7   : > { %v2908_v40 = vadd.f32 %v2861_v56, %v2844_v34 }
 0x3b8   : > { %v2863_v8 = vpop.permute.xlu1 %2862 }
 0x3b9   : > { %3133 = vperm.xlu1 %3853, %v2908_v40   ;;  %v2909_v53 = vadd.f32 %v2863_v8, %v2845_v4  ;;  %v7639_v40 = vlaneseq  ;;  %v7640_v8 = vld [vmem:[#allocation55_spill] sm:$0xff] }
 0x3ba   : > { %v2867_v51 = vpop.permute.xlu0 %2866 }
 0x3bb   : > { %3136 = vperm.xlu0 %3852, %v2909_v53   ;;  %v2911_v39 = vadd.f32 %v2867_v51, %v2847_v41  ;;  %v3181_v4 = vand.u32 127, %v7639_v40  ;;  %v2702_v53 = vadd.f32 %v6751_v19, %v7640_v8  ;;  %v7641_v51 = vld [vmem:[#allocation44_spill] sm:$0xff] }
 0x3bc   : > { %v2865_v9 = vpop.permute.xlu1 %2864  ;;  %v2703_v15 = vadd.f32 %v6751_v19, %v7641_v51 }
 0x3bd   : > { %v2910_v30 = vadd.f32 %v2865_v9, %v2846_v36  ;;  %v2766_v57 = vadd.f32 %v6715_v38, %v2702_v53  ;;  %v3186_v41 = vadd.s32 4294967288, %v3181_v4  ;;  %v2852_v9 = vadd.f32 %v6785_v21, %v6771_v3  ;;  %v7643_v38 = vld [vmem:[#allocation64_spill] sm:$0xff] }
 0x3be   : > { %v2871_v31 = vpop.permute.xlu0 %2870  ;;  %v2767_v29 = vadd.f32 %v6707_v48, %v2703_v15  ;;  %v6825_v28 = vsub.s32 %v3181_v4, %v7642_v7  ;;  %v2704_v3 = vadd.f32 %v6751_v19, %v7643_v38  ;;  %v7646_v15 = vld [vmem:[#allocation61_spill] sm:$0xff] }
 0x3bf   : > { %3139 = vperm.xlu1 %3853, %v2910_v30   ;;  %3142 = vperm.xlu0 %3852, %v2911_v39   ;;  %v2913_v45 = vadd.f32 %v2871_v31, %v2849_v58  ;;  %v2853_v39 = vadd.f32 %v6785_v21, %v6773_v24  ;;  %v6828_v48 = vsub.s32 %v3186_v41, %v7642_v7 }
 0x3c0   : > { %v2869_v25 = vpop.permute.xlu1 %2868 }
 0x3c1   : > { %v2912_v54 = vadd.f32 %v2869_v25, %v2848_v2  ;;  %v7644_v25 = vld [vmem:[#allocation76_spill] sm:$0xff] }
 0x3c2   : > { %v2875_v22 = vpop.permute.xlu0 %2874  ;;  %v2705_v24 = vadd.f32 %v6751_v19, %v7644_v25 }
 0x3c3   : > { %3097 = vperm.xlu1 %3853, %v2762_v43   ;;  %3100 = vperm.xlu0 %3852, %v2763_v11   ;;  %v2915_v34 = vadd.f32 %v2875_v22, %v2851_v33  ;;  %v2768_v22 = vadd.f32 %v6728_v47, %v2704_v3 }
 0x3c4   : > { %v2873_v27 = vpop.permute.xlu1 %2872  ;;  %v2769_v43 = vadd.f32 %v6720_v18, %v2705_v24 }
 0x3c5   : > { %v2914_v56 = vadd.f32 %v2873_v27, %v2850_v60 }
 0x3c6   : > { %v2879_v20 = vpop.permute.xlu0 %2878 }
 0x3c7   : > { %3145 = vperm.xlu1 %3853, %v2912_v54   ;;  %3148 = vperm.xlu0 %3852, %v2913_v45   ;;  %v2917_v31 = vadd.f32 %v2879_v20, %v2853_v39  ;;  %v2854_v45 = vadd.f32 %v6785_v21, %v6775_v14  ;;  %v2855_v54 = vadd.f32 %v6785_v21, %v6777_v42 }
 0x3c8   : > { %v2877_v5 = vpop.permute.xlu1 %2876  ;;  %v2707_v14 = vadd.f32 %v6751_v19, %v6648_v37 }
 0x3c9   : > { %v2916_v10 = vadd.f32 %v2877_v5, %v2852_v9  ;;  %v7645_v5 = vld [vmem:[#allocation75_spill] sm:$0xff] }
 0x3ca   : > { %v2883_v62 = vpop.permute.xlu0 %2882 }
 0x3cb   : > { %3103 = vperm.xlu1 %3853, %v2764_v59   ;;  %3106 = vperm.xlu0 %3852, %v2765_v26   ;;  %v2919_v18 = vadd.f32 %v2883_v62, %v2855_v54  ;;  %v2706_v26 = vadd.f32 %v6751_v19, %v7645_v5  ;;  %v2771_v59 = vadd.f32 %v6733_v63, %v2707_v14 }
 0x3cc   : > { %v2881_v17 = vpop.permute.xlu1 %2880 }
 0x3cd   : > { %v2918_v50 = vadd.f32 %v2881_v17, %v2854_v45  ;;  %v2770_v60 = vadd.f32 %v6741_v16, %v2706_v26 }
 0x3ce   : > { %v2887_v36 = vpop.permute.xlu0 %2886 }
 0x3cf   : > { %3151 = vperm.xlu1 %3853, %v2914_v56   ;;  %3154 = vperm.xlu0 %3852, %v2915_v34   ;;  %v2856_v34 = vadd.f32 %v6785_v21, %v6779_v44  ;;  %v2857_v56 = vadd.f32 %v6785_v21, %v6781_v61  ;;  %v2559_v44 = vadd.f32 %v6682_v49, %v7646_v15 }
 0x3d0   : > { %v2885_v12 = vpop.permute.xlu1 %2884  ;;  %v2708_v61 = vadd.f32 %v6751_v19, %v6652_v0  ;;  %v2709_v0 = vadd.f32 %v6751_v19, %v6658_v35  ;;  %v2859_v19 = vadd.f32 %v6785_v21, %v6788_v55 }
 0x3d1   : > { %v2921_v16 = vadd.f32 %v2887_v36, %v2857_v56  ;;  %v2920_v4 = vadd.f32 %v2885_v12, %v2856_v34  ;;  %v7647_v12 = vld [vmem:[#allocation25_spill] sm:$0xff] }
 0x3d2   : > { %v6822_v6 = vpop.permute.xlu0 %2890  ;;  %v2623_v41 = vadd.f32 %v7647_v12, %v2559_v44  ;;  %v2772_v9 = vadd.f32 %v6756_v1, %v2708_v61  ;;  %v2773_v1 = vadd.f32 %v6746_v32, %v2709_v0 }
 0x3d3   : > { %3109 = vperm.xlu1 %3853, %v2766_v57   ;;  %3112 = vperm.xlu0 %3852, %v2767_v29   ;;  %v2923_v32 = vadd.f32 %v6822_v6, %v2859_v19 }
 0x3d4   : > { %v6820_v30 = vpop.permute.xlu1 %2888 }
 0x3d7   : > { %3157 = vperm.xlu1 %3853, %v2916_v10   ;;  %3160 = vperm.xlu0 %3852, %v2917_v31   ;;  %v2858_v10 = vadd.f32 %v6785_v21, %v6783_v46 }
 0x3d8   : > { %v2990_v11 = vpop.permute.xlu1 %2989 }
 0x3d9   : > { %v3185_v2 = vrot.slane %v2990_v11, %v6825_v28  ;;  %v2922_v24 = vadd.f32 %v6820_v30, %v2858_v10 }
 0x3da   : > { %v2993_v58 = vpop.permute.xlu0 %2992 }
 0x3db   : > { %v3190_v27 = vrot.slane %v2993_v58, %v6828_v48  ;;  %3115 = vperm.xlu1 %3853, %v2768_v22   ;;  %3118 = vperm.xlu0 %3852, %v2769_v43  }
 0x3dc   : > { %v2996_v13 = vpop.permute.xlu1 %2995 }
 0x3dd   : > { %v3192_v20 = vsel %vm3191_vm3, %v3190_v27, %v3185_v2  ;;  %v3196_v47 = vrot.slane %v2996_v13, %v6825_v28 }
 0x3de   : > { %v3002_v23 = vpop.permute.xlu0 %3001 }
 0x3df   : > { %v3205_v52 = vrot.slane %v3002_v23, %v6825_v28  ;;  %3163 = vperm.xlu1 %3853, %v2918_v50   ;;  %3166 = vperm.xlu0 %3852, %v2919_v18  }
 0x3e0   : > { %v2999_v42 = vpop.permute.xlu1 %2998 }
 0x3e1   : > { %v3200_v62 = vrot.slane %v2999_v42, %v6828_v48 }
 0x3e2   : > { %v3008_v33 = vpop.permute.xlu0 %3007 }
 0x3e3   : > { %v3214_v17 = vrot.slane %v3008_v33, %v6825_v28  ;;  %v3201_v37 = vsel %vm3191_vm3, %v3200_v62, %v3196_v47  ;;  %3121 = vperm.xlu1 %3853, %v2770_v60   ;;  %3124 = vperm.xlu0 %3852, %v2771_v59  }
 0x3e4   : > { %v3473_v63 = vsel %vm3472_vm2, %v3201_v37, %v3192_v20  ;;  %v3005_v40 = vpop.permute.xlu1 %3004 }
 0x3e5   : > { %v3209_v8 = vrot.slane %v3005_v40, %v6828_v48 }
 0x3e6   : > { %v3014_v53 = vpop.permute.xlu0 %3013 }
 0x3e7   : > { %v3223_v51 = vrot.slane %v3014_v53, %v6825_v28  ;;  %v3210_v29 = vsel %vm3191_vm3, %v3209_v8, %v3205_v52  ;;  %3169 = vperm.xlu1 %3853, %v2920_v4   ;;  %3172 = vperm.xlu0 %3852, %v2921_v16  }
 0x3e8   : > { %v3475_v57 = vsel %vm3474_vm5, %v3210_v29, %v3473_v63  ;;  %v3011_v36 = vpop.permute.xlu1 %3010 }
 0x3e9   : > { %v3218_v39 = vrot.slane %v3011_v36, %v6828_v48 }
 0x3ea   : > { %v3020_v31 = vpop.permute.xlu0 %3019 }
 0x3eb   : > { %v3232_v49 = vrot.slane %v3020_v31, %v6825_v28  ;;  %v3219_v38 = vsel %vm3191_vm3, %v3218_v39, %v3214_v17  ;;  %3082 = vperm.xlu1 %3853, %v2623_v41   ;;  %3127 = vperm.xlu0 %3852, %v2772_v9  }
 0x3ec   : > { %v3477_v3 = vsel %vm3476_vm8, %v3219_v38, %v3475_v57  ;;  %v3017_v25 = vpop.permute.xlu1 %3016 }
 0x3ed   : > { %v3227_v11 = vrot.slane %v3017_v25, %v6828_v48 }
 0x3ee   : > { %v3026_v43 = vpop.permute.xlu0 %3025 }
 0x3ef   : > { %v3241_v35 = vrot.slane %v3026_v43, %v6825_v28  ;;  %v3228_v46 = vsel %vm3191_vm3, %v3227_v11, %v3223_v51  ;;  %3130 = vperm.xlu1 %3853, %v2773_v1   ;;  %3175 = vperm.xlu0 %3852, %v2922_v24  }
 0x3f0   : > { %v3479_v22 = vsel %vm3478_vm12, %v3228_v46, %v3477_v3  ;;  %v3023_v2 = vpop.permute.xlu1 %3022 }
 0x3f1   : > { %v3236_v30 = vrot.slane %v3023_v2, %v6828_v48 }
 0x3f2   : > { %v3032_v58 = vpop.permute.xlu0 %3031 }
 0x3f3   : > { %v3250_v27 = vrot.slane %v3032_v58, %v6825_v28  ;;  %v3237_v45 = vsel %vm3191_vm3, %v3236_v30, %v3232_v49  ;;  %3178 = vperm.xlu1 %3853, %v2923_v32  }
 0x3f4   : > { %v3481_v21 = vsel %vm3480_vm13, %v3237_v45, %v3479_v22  ;;  %v3029_v55 = vpop.permute.xlu1 %3028 }
 0x3f5   : > { %v3245_v54 = vrot.slane %v3029_v55, %v6828_v48 }
 0x3f6   : > { %v3038_v20 = vpop.permute.xlu0 %3037 }
 0x3f7   : > { %v3259_v13 = vrot.slane %v3038_v20, %v6825_v28  ;;  %v3246_v6 = vsel %vm3191_vm3, %v3245_v54, %v3241_v35 }
 0x3f8   : > { %v3483_v18 = vsel %vm3482_vm11, %v3246_v6, %v3481_v21  ;;  %v3035_v50 = vpop.permute.xlu1 %3034 }
 0x3f9   : > { %v3254_v47 = vrot.slane %v3035_v50, %v6828_v48 }
 0x3fa   : > { %v3044_v23 = vpop.permute.xlu0 %3043 }
 0x3fb   : > { %v3268_v52 = vrot.slane %v3044_v23, %v6825_v28  ;;  %v3255_v5 = vsel %vm3191_vm3, %v3254_v47, %v3250_v27 }
 0x3fc   : > { %v6898_v26 = vsel %vm3484_vm15, %v3255_v5, %v3483_v18  ;;  %v3041_v14 = vpop.permute.xlu1 %3040 }
 0x3fd   : > { %v3263_v42 = vrot.slane %v3041_v14, %v6828_v48 }
 0x3fe   : > { %v3050_v59 = vpop.permute.xlu0 %3049 }
 0x3ff   : > { %v3277_v60 = vrot.slane %v3050_v59, %v6825_v28  ;;  %v3264_v62 = vsel %vm3191_vm3, %v3263_v42, %v3259_v13 }
 0x400   : > { %v3047_v33 = vpop.permute.xlu1 %3046 }
 0x401   : > { %v3272_v17 = vrot.slane %v3047_v33, %v6828_v48 }
 0x402   : > { %v3056_v34 = vpop.permute.xlu0 %3055 }
 0x403   : > { %v3286_v56 = vrot.slane %v3056_v34, %v6825_v28  ;;  %v3273_v37 = vsel %vm3191_vm3, %v3272_v17, %v3268_v52 }
 0x404   : > { %v3486_v63 = vsel %vm3472_vm2, %v3273_v37, %v3264_v62  ;;  %v3053_v40 = vpop.permute.xlu1 %3052 }
 0x405   : > { %v3281_v16 = vrot.slane %v3053_v40, %v6828_v48 }
 0x406   : > { %v3062_v4 = vpop.permute.xlu0 %3061 }
 0x407   : > { %v3295_v8 = vrot.slane %v3062_v4, %v6825_v28  ;;  %v3282_v53 = vsel %vm3191_vm3, %v3281_v16, %v3277_v60 }
 0x408   : > { %v3487_v51 = vsel %vm3474_vm5, %v3282_v53, %v3486_v63  ;;  %v3059_v15 = vpop.permute.xlu1 %3058 }
 0x409   : > { %v3290_v44 = vrot.slane %v3059_v15, %v6828_v48 }
 0x40a   : > { %v3068_v61 = vpop.permute.xlu0 %3067 }
 0x40b   : > { %v3304_v29 = vrot.slane %v3068_v61, %v6825_v28  ;;  %v3291_v57 = vsel %vm3191_vm3, %v3290_v44, %v3286_v56 }
 0x40c   : > { %v3488_v36 = vsel %vm3476_vm8, %v3291_v57, %v3487_v51  ;;  %v3065_v12 = vpop.permute.xlu1 %3064  ;;  %v4001_v51 = vmov 1983009808  }
 0x40d   : > { %v3299_v41 = vrot.slane %v3065_v12, %v6828_v48  ;;  %v6950_v15 = vunpack.c.l.s4 %v4001_v51 }
 0x40e   : > { %v3074_v9 = vpop.permute.xlu0 %3073 }
 0x40f   : > { %v3313_v39 = vrot.slane %v3074_v9, %v6825_v28  ;;  %v3300_v31 = vsel %vm3191_vm3, %v3299_v41, %v3295_v8 }
 0x410   : > { %v3489_v49 = vsel %vm3478_vm12, %v3300_v31, %v3488_v36  ;;  %v3071_v0 = vpop.permute.xlu1 %3070 }
 0x411   : > { %v3308_v10 = vrot.slane %v3071_v0, %v6828_v48 }
 0x412   : > { %v6920_v38 = vpop.permute.xlu0 %3079 }
 0x413   : > { %v3322_v3 = vrot.slane %v6920_v38, %v6825_v28  ;;  %v3309_v25 = vsel %vm3191_vm3, %v3308_v10, %v3304_v29 }
 0x414   : > { %v3490_v1 = vsel %vm3480_vm13, %v3309_v25, %v3489_v49  ;;  %v3077_v24 = vpop.permute.xlu1 %3076 }
 0x415   : > { %v3317_v11 = vrot.slane %v3077_v24, %v6828_v48 }
 0x416   : > { %v3089_v19 = vpop.permute.xlu0 %3088 }
 0x417   : > { %v3318_v43 = vsel %vm3191_vm3, %v3317_v11, %v3313_v39  ;;  %v3335_v40 = vrot.slane %v3089_v19, %v6828_v48 }
 0x418   : > { %v6929_v35 = vsel %vm3482_vm11, %v3318_v43, %v3490_v1  ;;  %v3086_v46 = vpop.permute.xlu1 %3085 }
 0x419   : > { %v3331_v60 = vrot.slane %v3086_v46, %v6825_v28 }
 0x41a   : > { %v3095_v22 = vpop.permute.xlu0 %3094 }
 0x41b   : > { %v3344_v16 = vrot.slane %v3095_v22, %v6828_v48  ;;  %v3336_v44 = vsel %vm3191_vm3, %v3335_v40, %v3331_v60 }
 0x41c   : > { %v3092_v2 = vpop.permute.xlu1 %3091 }
 0x41d   : > { %v3340_v62 = vrot.slane %v3092_v2, %v6825_v28 }
 0x41f   : > { %v3345_v61 = vsel %vm3191_vm3, %v3344_v16, %v3340_v62 }
 0x420   : > { %v3493_v43 = vsel %vm3472_vm2, %v3345_v61, %v3336_v44 }
 0x434   : > { %v3134_v32 = vpop.permute.xlu1 %3133 }
 0x435   : > { %v3403_v29 = vrot.slane %v3134_v32, %v6825_v28 }
 0x436   : > { %v3137_v30 = vpop.permute.xlu0 %3136 }
 0x437   : > { %v3407_v4 = vrot.slane %v3137_v30, %v6828_v48 }
 0x439   : > { %v3408_v25 = vsel %vm3191_vm3, %v3407_v4, %v3403_v29 }
 0x43a   : > { %v3140_v58 = vpop.permute.xlu1 %3139  ;;  %v3143_v27 = vpop.permute.xlu0 %3142 }
 0x43b   : > { %v3412_v34 = vrot.slane %v3140_v58, %v6825_v28  ;;  %v3416_v56 = vrot.slane %v3143_v27, %v6828_v48 }
 0x43d   : > { %v3417_v12 = vsel %vm3191_vm3, %v3416_v56, %v3412_v34  ;;  %v4002_v34 = vmov 1934713408  }
 0x43e   : > { %v3098_v45 = vpop.permute.xlu1 %3097  ;;  %v3101_v21 = vpop.permute.xlu0 %3100  ;;  %v3500_v19 = vsel %vm3472_vm2, %v3417_v12, %v3408_v25  ;;  %v3546_v56 = vunpack.c.l.s4 %v4002_v34 }
 0x43f   : > { %v3349_v37 = vrot.slane %v3098_v45, %v6825_v28  ;;  %v3353_v63 = vrot.slane %v3101_v21, %v6828_v48 }
 0x441   : > { %v3354_v41 = vsel %vm3191_vm3, %v3353_v63, %v3349_v37 }
 0x442   : > { %v3146_v55 = vpop.permute.xlu1 %3145  ;;  %v3149_v54 = vpop.permute.xlu0 %3148  ;;  %v3494_v30 = vsel %vm3474_vm5, %v3354_v41, %v3493_v43 }
 0x443   : > { %v3421_v9 = vrot.slane %v3146_v55, %v6825_v28  ;;  %v3425_v39 = vrot.slane %v3149_v54, %v6828_v48 }
 0x445   : > { %v3426_v21 = vsel %vm3191_vm3, %v3425_v39, %v3421_v9 }
 0x446   : > { %v3104_v20 = vpop.permute.xlu1 %3103  ;;  %v3107_v13 = vpop.permute.xlu0 %3106 }
 0x447   : > { %v3358_v8 = vrot.slane %v3104_v20, %v6825_v28  ;;  %v3362_v53 = vrot.slane %v3107_v13, %v6828_v48 }
 0x449   : > { %v3363_v1 = vsel %vm3191_vm3, %v3362_v53, %v3358_v8 }
 0x44a   : > { %v3152_v6 = vpop.permute.xlu1 %3151  ;;  %v3155_v18 = vpop.permute.xlu0 %3154  ;;  %v3495_v55 = vsel %vm3476_vm8, %v3363_v1, %v3494_v30 }
 0x44b   : > { %v3430_v31 = vrot.slane %v3152_v6, %v6825_v28  ;;  %v3434_v49 = vrot.slane %v3155_v18, %v6828_v48 }
 0x44d   : > { %v3435_v54 = vsel %vm3191_vm3, %v3434_v49, %v3430_v31 }
 0x44e   : > { %v3110_v50 = vpop.permute.xlu1 %3109  ;;  %v3113_v47 = vpop.permute.xlu0 %3112 }
 0x44f   : > { %v3367_v0 = vrot.slane %v3110_v50, %v6825_v28  ;;  %v3371_v10 = vrot.slane %v3113_v47, %v6828_v48 }
 0x451   : > { %v3372_v20 = vsel %vm3191_vm3, %v3371_v10, %v3367_v0 }
 0x452   : > { %v6931_v23 = vpop.permute.xlu1 %3157  ;;  %v6933_v52 = vpop.permute.xlu0 %3160 }
 0x453   : > { %v3439_v58 = vrot.slane %v6931_v23, %v6825_v28  ;;  %v3443_v27 = vrot.slane %v6933_v52, %v6828_v48 }
 0x455   : > { %v3444_v60 = vsel %vm3191_vm3, %v3443_v27, %v3439_v58 }
 0x456   : > { %v3116_v5 = vpop.permute.xlu1 %3115  ;;  %v3119_v14 = vpop.permute.xlu0 %3118 }
 0x457   : > { %v3376_v24 = vrot.slane %v3116_v5, %v6825_v28  ;;  %v3380_v11 = vrot.slane %v3119_v14, %v6828_v48 }
 0x459   : > { %v3381_v13 = vsel %vm3191_vm3, %v3380_v11, %v3376_v24 }
 0x45a   : > { %v6935_v42 = vpop.permute.xlu1 %3163  ;;  %v6937_v59 = vpop.permute.xlu0 %3166 }
 0x45b   : > { %v3448_v6 = vrot.slane %v6935_v42, %v6825_v28  ;;  %v3452_v18 = vrot.slane %v6937_v59, %v6828_v48  ;;  %v3496_v42 = vsel %vm3478_vm12, %v3372_v20, %v3495_v55 }
 0x45c   : > { %v3497_v62 = vsel %vm3480_vm13, %v3381_v13, %v3496_v42 }
 0x45d   : > { %v3453_v37 = vsel %vm3191_vm3, %v3452_v18, %v3448_v6 }
 0x45e   : > { %v3122_v33 = vpop.permute.xlu1 %3121  ;;  %v3125_v17 = vpop.permute.xlu0 %3124 }
 0x45f   : > { %v3385_v46 = vrot.slane %v3122_v33, %v6825_v28  ;;  %v3389_v22 = vrot.slane %v3125_v17, %v6828_v48  ;;  %v3515_v33 = vunpack.c.0.s8 %v6950_v15 }
 0x461   : > { %v3390_v47 = vsel %vm3191_vm3, %v3389_v22, %v3385_v46  ;;  %v3518_v12 = vsub.s32 %v3515_v33, %v7642_v7 }
 0x462   : > { %v3170_v57 = vpop.permute.xlu1 %3169  ;;  %v3173_v36 = vpop.permute.xlu0 %3172  ;;  %v3498_v63 = vsel %vm3482_vm11, %v3390_v47, %v3497_v62 }
 0x463   : > { %v3457_v23 = vrot.slane %v3170_v57, %v6825_v28  ;;  %v3461_v52 = vrot.slane %v3173_v36, %v6828_v48  ;;  %v3547_v57 = vunpack.c.0.s8 %v3546_v56 }
 0x465   : > { %v3462_v4 = vsel %vm3191_vm3, %v3461_v52, %v3457_v23  ;;  %v3550_v49 = vsub.s32 %v3547_v57, %v7642_v7 }
 0x466   : > { %v3083_v2 = vpop.permute.xlu1 %3082  ;;  %v3128_v32 = vpop.permute.xlu0 %3127 }
 0x467   : > { %v3326_v45 = vrot.slane %v3083_v2, %v6828_v48  ;;  %v3394_v59 = vrot.slane %v3128_v32, %v6825_v28 }
 0x469   : > { %v3327_v50 = vsel %vm3191_vm3, %v3326_v45, %v3322_v3  ;;  %v3501_v3 = vsel %vm3474_vm5, %v3426_v21, %v3500_v19  ;;  %v4004_v19 = vmov 0.0  }
 0x46a   : > { %v3492_v5 = vsel %vm3484_vm15, %v3327_v50, %v6929_v35  ;;  %v3131_v14 = vpop.permute.xlu1 %3130  ;;  %v3176_v17 = vpop.permute.xlu0 %3175  ;;  %v3502_v35 = vsel %vm3476_vm8, %v3435_v54, %v3501_v3 }
 0x46b   : > { %v3398_v38 = vrot.slane %v3131_v14, %v6828_v48  ;;  %v3503_v16 = vsel %vm3478_vm12, %v3444_v60, %v3502_v35  ;;  %v3466_v44 = vrot.slane %v3176_v17, %v6825_v28 }
 0x46c   : > { %v3504_v29 = vsel %vm3480_vm13, %v3453_v37, %v3503_v16 }
 0x46d   : > { %v3399_v40 = vsel %vm3191_vm3, %v3398_v38, %v3394_v59  ;;  %v3505_v36 = vsel %vm3482_vm11, %v3462_v4, %v3504_v29 }
 0x46e   : > { %v3499_v8 = vsel %vm3484_vm15, %v3399_v40, %v3498_v63  ;;  %v3179_v53 = vpop.permute.xlu1 %3178 }
 0x46f   : > { %v3511_v51 = vcombine.low %v6898_v26, %v3499_v8  ;;  %v3512_v15 = vcombine.high %v6898_v26, %v3499_v8  ;;  %v3470_v61 = vrot.slane %v3179_v53, %v6828_v48 }
 0x471   : > { %v3471_v41 = vsel %vm3191_vm3, %v3470_v61, %v3466_v44  ;;  %v3519_v26 = vrot.slane %v3511_v51, %v3518_v12  ;;  %v3526_v0 = vrot.slane %v3512_v15, %v3518_v12 }
 0x472   : > { %v3506_v9 = vsel %vm3484_vm15, %v3471_v41, %v3505_v36 }
 0x473   : > { %v3527_v39 = vcombine.low %v3492_v5, %v3506_v9  ;;  %v3528_v31 = vcombine.high %v3492_v5, %v3506_v9 }
 0x475   : > { %v3535_v28 = vrot.slane %v3527_v39, %v3518_v12  ;;  %v3542_v10 = vrot.slane %v3528_v31, %v3518_v12 }
 0x477   : > { %v3544_v48 = vcombine.high %v3519_v26, %v3535_v28  ;;  %v3543_v25 = vcombine.low %v3519_v26, %v3535_v28  ;;  %v3559_v1 = vcombine.low %v3526_v0, %v3542_v10  ;;  %v3560_v24 = vcombine.high %v3526_v0, %v3542_v10 }
 0x479   : > { %v3558_v11 = vrot.slane %v3544_v48, %v3550_v49  ;;  %v3551_v43 = vrot.slane %v3543_v25, %v3550_v49  ;;  %v3567_v22 = vrot.slane %v3559_v1, %v3550_v49  ;;  %v3574_v2 = vrot.slane %v3560_v24, %v3550_v49 }
 0x47b   : > { %3584 = vrot.lane.b32.xlu1 %v3558_v11, %s4003_s21  ;;  %v3575_v46 = vcombine.high %v3551_v43, %v4004_v19  ;;  %v3576_v7 = vcombine.high %v3558_v11, %v4004_v19  ;;  %v3577_v32 = vcombine.high %v3567_v22, %v4004_v19  ;;  %v3578_v30 = vcombine.high %v3574_v2, %v4004_v19  ;;  %s3634_s21 = sadd.s32 %s3975_s27, %s3741_s19  ;;  %s3623_s27 = scalar_lea.sflag [#allocation3], %s297_s17 }
 0x47d   : > { %3580 = vrot.lane.b32.xlu0 %v3575_v46, %s4005_s22  ;;  %s3742_s22 = sshll.u32 %s3634_s21, 6 }
 0x47f   : > { %3592 = vrot.lane.b32.xlu1 %v3567_v22, %s4006_s20  ;;  %s299_s20 = scalar_lea.vmem [#allocation5], %s3731_s18  ;;  %s4011_s18 = smov [#allocation5]  }
 0x480   : > { %s3899_s19 = sshll.u32 %s4011_s18, 4  ;;  %s3900_s19 = int_to_ptr.vmem [resolvable:$false] %s3899_s19 }
 0x481   : > { %3588 = vrot.lane.b32.xlu0 %v3576_v7, %s4007_s14  ;;  %s3638_s14 = sshll.u32 %s299_s20, 4  ;;  %s3901_s21 = scalar_lea.vmem %s3900_s19, 128  ;;  %s3639_s14 = int_to_ptr.vmem [resolvable:$true] %s3638_s14 }
 0x482   : > { %p3902_p13 = scmp.lt.s32.totalorder %s3639_s14, %s3900_s19 }
 0x483   : > { %3600 = vrot.lane.b32.xlu1 %v3574_v2, %s4008_s23 }
 0x485   : > { %3596 = vrot.lane.b32.xlu0 %v3577_v32, %s4009_s9  ;;  %s7025_s9 = scalar_lea.hbm %s7078_s7, %s3742_s22 }
 0x489   : > { %3604 = vrot.lane.b32.xlu0 %v3578_v30, %s4010_s13  ;;  %s3895_s13 = scalar_lea.vmem %s3639_s14, 64 }
 0x48a   : > { %p3896_p8 = scmp.ne.s32.totalorder %s3639_s14, %s3895_s13  ;;  %p3903_p0 = scmp.lt.s32.totalorder %s3901_s21, %s3895_s13 }
 0x48c   : > { %p3897_p10 = pnand %p3896_p8, %p4104_p3  ;;  %p3904_p1 = por %p3903_p0, %p3902_p13 }
 0x48e   : > { %p3898_p12 = pneg %p3897_p10 }
 0x490   : > { %p3905_p2 = pnand %p3904_p1, %p3898_p12 }
 0x4ed   : > { %v3585_v58 = vpop.permute.xlu1 %3584 }
 0x4ef   : > { %v3581_v27 = vpop.permute.xlu0 %3580 }
 0x4f0   : > { %v3608_v45 = vsel %vm3607_vm14, %v3551_v43, %v3581_v27 }
 0x4f1   : > { %v3610_v21 = vsel %vm3609_vm7, %v3608_v45, %v3585_v58  ;;  %v3593_v54 = vpop.permute.xlu1 %3592 }
 0x4f3   : > { %v3589_v55 = vpop.permute.xlu0 %3588 }
 0x4f4   : > { %v3612_v20 = vsel %vm3611_vm10, %v3610_v21, %v3589_v55 }
 0x4f5   : > { %v3614_v13 = vsel %vm3613_vm6, %v3612_v20, %v3593_v54  ;;  %v3601_v50 = vpop.permute.xlu1 %3600 }
 0x4f7   : > { %v3597_v6 = vpop.permute.xlu0 %3596 }
 0x4f8   : > { %v3616_v18 = vsel %vm3615_vm0, %v3614_v13, %v3597_v6 }
 0x4f9   : > { %v3618_v47 = vsel %vm3617_vm1, %v3616_v18, %v3601_v50 }
 0x4fb   : > { %v3605_v23 = vpop.permute.xlu0 %3604 }
 0x4fc   : > { %v3620_v52 = vsel %vm3619_vm4, %v3618_v47, %v3605_v23 }
 0x4fd   : > { %3621 = vst [vmem:[%s299_s20] sm:$0xf] %v3620_v52 }
 0x4fe   : > { %3908 = shalt.err (!%p3905_p2)
}
 0x4ff   : > { %s3909_s22 = scalar_lea.hbm %s7025_s9, 64  ;;  %s3913_s28 = scalar_lea.hbm %s7078_s7, 256 }
 0x500   : > { %p3910_p4 = scmp.ne.s32.totalorder %s7025_s9, %s3909_s22  ;;  %p3914_p7 = scmp.lt.s32.totalorder %s7025_s9, %s7078_s7 }
 0x501   : > { %p3915_p9 = scmp.lt.s32.totalorder %s3913_s28, %s3909_s22 }
 0x502   : > { %p3911_p5 = pnand %p3910_p4, %p4104_p3 }
 0x503   : > { %p3916_p11 = por %p3915_p9, %p3914_p7 }
 0x504   : > { %p3912_p6 = pneg %p3911_p5 }
 0x506   : > { %p3917_p8 = pnand %p3916_p11, %p3912_p6 }
 0x508   : > { %3920 = shalt.err (!%p3917_p8)
}
 0x509   : > { %3750 = dma.vmem_to_hbm [thread:$0]  (%p4104_p3), %s3639_s14, 64, %s7025_s9, %s3623_s27  }
 0x50a PF: > { %p3762_p10 = scmp.ge.s32.totalorder %s3991_s8, 2  ;;  %s3650_s13 = sand.u32 1, %s3963_s24  }
 0x50b   : > { %p7648_p12 = scmp.ne.s32.totalorder %s7184_s16, 0  ;;  %s3651_s19 = scalar_lea.sflag [#allocation3], %s3650_s13 }
 0x50d   : > { %p3757_p13 = pnand %p3762_p10, %p7648_p12 }
 0x50f   : > { %p3758_p0 = pneg %p3757_p13 }
 0x511   : > { %3958 = dma.done.wait (%p3758_p0), %s3651_s19, 64  }
 0x512   : > { %3960 = vsyncadd (%p3758_p0), %s3651_s19, 4294967232  ;;  %s21_s8 = sadd.s32 1, %s3991_s8   ;;  %s7649_s24 = smov %s3967_s25 }
 0x513   : > { %p18_p1 = scmp.ge.s32.totalorder %s21_s8, 6   ;;  %s7650_s25 = smov %s3971_s26 }
 0x514   : > { %s7651_s26 = smov %s4134_s10  ;;  %s7652_s27 = smov %s3983_s29 }
 0x515   : > { %s7653_s28 = smov %s3987_s30  ;;  %s7654_s29 = smov %s7657_s11 }
 0x516   : > { %s7655_s30 = smov %s7661_s12  ;;  %20 = sbr.rel (!%p18_p1) target bundleno = 6 (0x6), region = 89 }
 0x51b   :  { %3656 = vsyncpa [#allocation3], 1 }
 0x51c   :  { %3658 = vsyncpa [#allocation3 + $0x1], 1 }
 0x51d   :  { %3659 = vsyncpa [#allocation4], 1 }
 0x51e   :  { %3661 = vsyncpa [#allocation4 + $0x1], 1 }

</bundles_post_ra>
